<compile_context>
chip_gen: v5e
topology: v5e:2x2
jax: 0.10.0
libtpu: 0.0.40
codegen_flags: <defaults>
</compile_context>

<pallas_src>
import math

import jax
import jax.numpy as jnp
from jax import lax
from jax.experimental import pallas as pl
from jax.experimental.pallas import tpu as pltpu

# ----------------------------- problem sizes -----------------------------
B = 16           # total groups in the batch
GB = 8           # groups per grid step (fills sublanes)
NT = B // GB     # grid size over group tiles
M = 4            # members per group
T = 8            # action-sequence length per member
N = 3            # neighbors per member in the social graph
E = 32           # embed_size
NUM_ACT = 20
NUM_USER = 30
PAD_ACT = 32     # tables padded to sublane-friendly row counts
PAD_USER = 32
S_TILE = GB * M          # member rows handled per grid step (32)
R = T * S_TILE + GB      # fused act-table lookup rows per grid step (264)
AVG_M = 3.0              # dataset-wide average group size (get_avg_group_size())

assert B % GB == 0
assert (T * S_TILE) % 8 == 0 and R % 8 == 0


def pna_scalers():
    delta = math.log(AVG_M + 1.0)
    amp = math.log(M + 1.0) / delta
    att = delta / math.log(M + 1.0)
    return (1.0, amp, att)


# ----------------------------- fused Pallas kernel -----------------------------
def _fused_kernel(idx_ref, cat_ref,
                  act_tab_ref, user_tab_ref,
                  lstm_wx_ref, lstm_wh_ref, lstm_b_ref,
                  gcn_w_ref, gcn_b_ref,
                  pma_w1_ref, pma_b1_ref, pma_w2_ref, pma_b2_ref,
                  pma_w3_ref, pma_b3_ref,
                  pred_w1_ref, pred_b1_ref, pred_w2_ref, pred_b2_ref,
                  out_ref):
    """Embeddings -> LSTM -> GCN -> PMA -> Predict for one tile of GB groups."""
    f32 = jnp.float32
    bf16 = jnp.bfloat16
    act_tab = act_tab_ref[...]                                    # (PAD_ACT, E) bf16
    user_tab = user_tab_ref[...]                                  # (PAD_USER, E) bf16

    # ---- fused act-table gather: sequences + target acts in ONE one-hot matmul
    ids = idx_ref[...]                                            # (R, 1) int32
    oh = jnp.where(lax.broadcasted_iota(jnp.int32, (R, PAD_ACT), 1) == ids,
                   1.0, 0.0).astype(bf16)
    emb = jnp.dot(oh, act_tab, preferred_element_type=f32)        # (R, E) f32
    seq_emb = emb[:T * S_TILE, :]                                 # (256, E) aligned split
    tgt_act = emb[T * S_TILE:, :]                                 # (GB, E)

    # ---- GCN branch: multi-hot mean over {self} U neighbors -> Linear -> ReLU
    cat_ids = cat_ref[...]                                        # (S_TILE, 1+N) int32
    user_iota = lax.broadcasted_iota(jnp.int32, (S_TILE, PAD_USER), 1)
    pmat = jnp.zeros((S_TILE, PAD_USER), f32)
    for j in range(1 + N):
        pmat = pmat + jnp.where(user_iota == cat_ids[:, j:j + 1], 1.0, 0.0)
    pmat = (pmat * (1.0 / float(1 + N))).astype(bf16)             # multiples of 1/4: exact
    nbr_mean = jnp.dot(pmat, user_tab, preferred_element_type=f32)          # (S_TILE, E)
    member_gcn = jnp.maximum(
        jnp.dot(nbr_mean.astype(bf16), gcn_w_ref[...], preferred_element_type=f32)
        + gcn_b_ref[...], 0.0)                                    # (S_TILE, E)

    # ---- LSTM branch: fused 4E gates, x-projection hoisted out of recurrence
    gates_x = (jnp.dot(seq_emb.astype(bf16), lstm_wx_ref[...],
                       preferred_element_type=f32) + lstm_b_ref[...])       # (T*S_TILE, 4E)
    wh = lstm_wh_ref[...]                                         # (E, 4E) bf16 (g cols x2)
    h = jnp.zeros((S_TILE, E), f32)
    c = jnp.zeros((S_TILE, E), f32)
    for t in range(T):   # T=8 static -> fully unrolled
        gates = gates_x[t * S_TILE:(t + 1) * S_TILE, :] + jnp.dot(
            h.astype(bf16), wh, preferred_element_type=f32)       # (S_TILE, 4E)
        # One full-width EUP sigmoid over all four gate blocks; tanh(g) is
        # 2*sigmoid(2g)-1 (the x2 is pre-folded into the g-gate weight columns).
        sg = jax.nn.sigmoid(gates)
        i_g = sg[:, 0 * E:1 * E]
        f_g = sg[:, 1 * E:2 * E]
        g_g = 2.0 * sg[:, 2 * E:3 * E] - 1.0
        o_g = sg[:, 3 * E:4 * E]
        c = f_g * c + i_g * g_g
        h = o_g * jnp.tanh(c)
    member_act = h                                                # (S_TILE, E)

    fus = member_act + member_gcn                                 # (S_TILE, E)

    # ---- PMA / PNA group aggregation, vectorized over all GB groups.
    # Rows are member-major (row = member_slot*GB + group), so every member
    # slab is an aligned 8-row slice: mean/max/min/std are VPU tree reductions.
    # TODO(synk): PmaLayer source not provided; assumed PNA-style mean/max/min/
    # std aggregators x identity/amplification/attenuation scalers + 3-layer MLP.
    blk = fus[0:GB, :]
    s1, mx, mn, s2 = blk, blk, blk, blk * blk
    for j in range(1, M):
        bj = fus[j * GB:(j + 1) * GB, :]
        s1 = s1 + bj
        mx = jnp.maximum(mx, bj)
        mn = jnp.minimum(mn, bj)
        s2 = s2 + bj * bj
    inv_m = 1.0 / float(M)
    mean = s1 * inv_m
    std = jnp.sqrt(jnp.maximum(s2 * inv_m - mean * mean, 0.0) + 1e-5)

    # Scalers pre-folded into pma_w1's 4 aggregator row-blocks: 4 accumulated
    # matmuls, no lane concat.
    h1 = (jnp.dot(mean.astype(bf16), pma_w1_ref[0 * E:1 * E, :], preferred_element_type=f32)
          + jnp.dot(mx.astype(bf16), pma_w1_ref[1 * E:2 * E, :], preferred_element_type=f32)
          + jnp.dot(mn.astype(bf16), pma_w1_ref[2 * E:3 * E, :], preferred_element_type=f32)
          + jnp.dot(std.astype(bf16), pma_w1_ref[3 * E:4 * E, :], preferred_element_type=f32)
          + pma_b1_ref[...])
    h1 = jnp.maximum(h1, 0.0)
    h2 = jnp.maximum(
        jnp.dot(h1.astype(bf16), pma_w2_ref[...], preferred_element_type=f32)
        + pma_b2_ref[...], 0.0)
    group_emb = (jnp.dot(h2.astype(bf16), pma_w3_ref[...], preferred_element_type=f32)
                 + pma_b3_ref[...])                               # (GB, E)

    # ---- Predict head: three accumulated (GB,E)x(E,8) matmuls, no lane concat
    elem = group_emb * tgt_act
    hp = (jnp.dot(elem.astype(bf16), pred_w1_ref[0 * E:1 * E, :], preferred_element_type=f32)
          + jnp.dot(group_emb.astype(bf16), pred_w1_ref[1 * E:2 * E, :], preferred_element_type=f32)
          + jnp.dot(tgt_act.astype(bf16), pred_w1_ref[2 * E:3 * E, :], preferred_element_type=f32)
          + pred_b1_ref[...])
    hp = jnp.maximum(hp, 0.0)                                     # (GB, 8)

    # Lane-dense (1, GB) output row: w2_row (1,8) x hp (GB,8) contracted on
    # their last dims (same NT dot_general pattern as the flash-attn kernels).
    logits = lax.dot_general(pred_w2_ref[...], hp,
                             (((1,), (1,)), ((), ())),
                             preferred_element_type=f32)          # (1, GB)
    out_ref[...] = jax.nn.sigmoid(logits + pred_b2_ref[...]).reshape(1, 1, GB)


# ----------------------------- wrapper -----------------------------
_KERNEL_WEIGHTS = ("act_table_k", "user_table_k",
                   "lstm_wx_k", "lstm_wh_k", "lstm_b_k",
                   "gcn_w_k", "gcn_b",
                   "pma_w1_k", "pma_b1", "pma_w2_k", "pma_b2", "pma_w3_k", "pma_b3",
                   "pred_w1_k", "pred_b1", "pred_w2_k", "pred_b2")


@jax.jit
def forward(params, act_inputs, member_act_seqs, group_member_ids, neighbor_ids):
    # Host side: tiny int index prep only; all gathers happen in the kernel.
    # Within each tile, rows are member-major (row = member_slot*GB + group).
    seqs = (member_act_seqs.reshape(NT, GB, M, T)
            .transpose(0, 3, 2, 1).reshape(NT, T * S_TILE))
    acts = act_inputs.reshape(NT, GB)
    idx_all = jnp.concatenate([seqs, acts], axis=1).reshape(NT * R, 1).astype(jnp.int32)

    mem = group_member_ids.reshape(NT, GB, M).transpose(0, 2, 1).reshape(NT * S_TILE, 1)
    nbr = (neighbor_ids.reshape(NT, GB, M, N)
           .transpose(0, 2, 1, 3).reshape(NT * S_TILE, N))
    cat_ids = jnp.concatenate([mem, nbr], axis=1).astype(jnp.int32)

    weights = [params[n] for n in _KERNEL_WEIGHTS]
    # Constant index_maps: weights/tables stay VMEM-resident across grid steps.
    const_specs = [pl.BlockSpec(w.shape, lambda i: (0, 0)) for w in weights]

    out = pl.pallas_call(
        _fused_kernel,
        grid=(NT,),
        out_shape=jax.ShapeDtypeStruct((NT, 1, GB), jnp.float32),
        in_specs=[pl.BlockSpec((R, 1), lambda i: (i, 0)),
                  pl.BlockSpec((S_TILE, 1 + N), lambda i: (i, 0))] + const_specs,
        out_specs=pl.BlockSpec((1, 1, GB), lambda i: (i, 0, 0)),
        compiler_params=pltpu.CompilerParams(
            dimension_semantics=("parallel",)),   # lets v7x's 2nd TC take a tile
    )(idx_all, cat_ids, *weights)
    return out.reshape(B, 1)


# ----------------------------- parameters -----------------------------
def _round_bf16(x):
    # Round masters through bf16 so kernel-side bf16 casts of weights are exact.
    return x.astype(jnp.bfloat16).astype(jnp.float32)


def init_params(key):
    ks = list(jax.random.split(key, 16))
    bf16 = jnp.bfloat16
    p = {}

    act_table = _round_bf16(jax.random.normal(ks[0], (NUM_ACT, E), jnp.float32) * 0.1)
    user_table = _round_bf16(jax.random.normal(ks[1], (NUM_USER, E), jnp.float32) * 0.1)
    p["act_table"] = act_table
    p["user_table"] = user_table
    p["act_table_k"] = jnp.zeros((PAD_ACT, E), jnp.float32).at[:NUM_ACT].set(act_table).astype(bf16)
    p["user_table_k"] = jnp.zeros((PAD_USER, E), jnp.float32).at[:NUM_USER].set(user_table).astype(bf16)

    # LSTM (PyTorch layout: weight_ih (4E, E), gate row-blocks [i, f, g, o]).
    w_ih = _round_bf16(jax.random.normal(ks[2], (4 * E, E), jnp.float32) * 0.1)
    w_hh = _round_bf16(jax.random.normal(ks[3], (4 * E, E), jnp.float32) * 0.1)
    b_ih = jax.random.normal(ks[4], (4 * E,), jnp.float32) * 0.1
    b_hh = jax.random.normal(ks[5], (4 * E,), jnp.float32) * 0.1
    p["lstm_wx"] = w_ih.T                          # (E, 4E) fused-gate layout (reference)
    p["lstm_wh"] = w_hh.T
    p["lstm_b"] = (b_ih + b_hh).reshape(1, 4 * E)
    # Kernel copies: x2 folded into g-gate columns so tanh(g) = 2*sigmoid(2g)-1.
    gscale = jnp.ones((1, 4 * E), jnp.float32).at[:, 2 * E:3 * E].set(2.0)
    p["lstm_wx_k"] = (p["lstm_wx"] * gscale).astype(bf16)
    p["lstm_wh_k"] = (p["lstm_wh"] * gscale).astype(bf16)
    p["lstm_b_k"] = p["lstm_b"] * gscale           # bias stays f32

    # GCN Linear(E, E)
    w_gcn = _round_bf16(jax.random.normal(ks[6], (E, E), jnp.float32) * 0.1)
    p["gcn_w"] = w_gcn.T
    p["gcn_w_k"] = p["gcn_w"].astype(bf16)
    p["gcn_b"] = (jax.random.normal(ks[7], (E,), jnp.float32) * 0.1).reshape(1, E)

    # PMA / PNA MLP: Linear(12E, E) -> ReLU -> Linear(E, E) -> ReLU -> Linear(E, E)
    w1 = _round_bf16(jax.random.normal(ks[8], (E, 12 * E), jnp.float32) * 0.05)
    w1_blocks = jnp.stack([w1[:, k * E:(k + 1) * E].T for k in range(12)])   # (12, E, E)
    p["pma_w1_list"] = w1_blocks                   # unfused form for the JAX reference
    sc = pna_scalers()
    folded = [sum(sc[s] * w1_blocks[a * 3 + s] for s in range(3)) for a in range(4)]
    p["pma_w1_k"] = jnp.concatenate(folded, axis=0).astype(bf16)             # (4E, E)
    p["pma_b1"] = (jax.random.normal(ks[9], (E,), jnp.float32) * 0.1).reshape(1, E)
    p["pma_w2"] = _round_bf16(jax.random.normal(ks[10], (E, E), jnp.float32) * 0.1).T
    p["pma_w2_k"] = p["pma_w2"].astype(bf16)
    p["pma_b2"] = (jax.random.normal(ks[11], (E,), jnp.float32) * 0.1).reshape(1, E)
    p["pma_w3"] = _round_bf16(jax.random.normal(ks[12], (E, E), jnp.float32) * 0.1).T
    p["pma_w3_k"] = p["pma_w3"].astype(bf16)
    p["pma_b3"] = (jax.random.normal(ks[13], (E,), jnp.float32) * 0.1).reshape(1, E)

    # PredictLayer: Linear(3E, 8) -> ReLU -> Dropout(0) -> Linear(8, 1) -> sigmoid
    w1p = _round_bf16(jax.random.normal(ks[14], (8, 3 * E), jnp.float32) * 0.1)
    p["pred_w1"] = w1p.T                           # (3E, 8); row blocks (elem, group, act)
    p["pred_w1_k"] = p["pred_w1"].astype(bf16)
    kb = jax.random.split(ks[15], 3)
    p["pred_b1"] = (jax.random.normal(kb[0], (8,), jnp.float32) * 0.1).reshape(1, 8)
    w2 = _round_bf16(jax.random.normal(kb[1], (1, 8), jnp.float32) * 0.1)
    p["pred_w2"] = w2.T                            # (8, 1) for the reference
    p["pred_w2_k"] = w2                            # (1, 8) row layout, lane-dense output
    p["pred_b2"] = (jax.random.normal(kb[2], (1,), jnp.float32) * 0.1).reshape(1, 1)
    return p


# ----------------------------- pure-JAX reference -----------------------------
def ref_forward(p, act_inputs, member_act_seqs, group_member_ids, neighbor_ids):
    act_tab = p["act_table"]
    user_tab = p["user_table"]
    S = B * M
    all_act_embeds = act_tab[act_inputs]                           # (B, E)

    seq_embeds = act_tab[member_act_seqs].reshape(S, T, E)
    h = jnp.zeros((S, E), jnp.float32)
    c = jnp.zeros((S, E), jnp.float32)
    for t in range(T):
        gates = (seq_embeds[:, t, :] @ p["lstm_wx"] + h @ p["lstm_wh"] + p["lstm_b"])
        i = jax.nn.sigmoid(gates[:, 0:E])
        f = jax.nn.sigmoid(gates[:, E:2 * E])
        g = jnp.tanh(gates[:, 2 * E:3 * E])
        o = jax.nn.sigmoid(gates[:, 3 * E:4 * E])
        c = f * c + i * g
        h = o * jnp.tanh(c)
    member_act = h

    cat_ids = jnp.concatenate(
        [group_member_ids.reshape(S, 1), neighbor_ids.reshape(S, N)], axis=1)
    nbr_embeds = user_tab[cat_ids]                                 # (S, 1+N, E)
    member_gcn = jnp.maximum(nbr_embeds.mean(axis=1) @ p["gcn_w"] + p["gcn_b"], 0.0)

    fus = (member_act + member_gcn).reshape(B, M, E)
    mean = fus.mean(axis=1)
    mx = fus.max(axis=1)
    mn = fus.min(axis=1)
    std = jnp.sqrt(jnp.maximum((fus * fus).mean(axis=1) - mean * mean, 0.0) + 1e-5)
    h1 = p["pma_b1"]
    k = 0
    for a in (mean, mx, mn, std):       # unfused 12-term form: validates the folding
        for scv in pna_scalers():
            h1 = h1 + (a * scv) @ p["pma_w1_list"][k]
            k += 1
    h1 = jnp.maximum(h1, 0.0)
    h2 = jnp.maximum(h1 @ p["pma_w2"] + p["pma_b2"], 0.0)
    group_embeds = h2 @ p["pma_w3"] + p["pma_b3"]

    e = group_embeds * all_act_embeds
    cat = jnp.concatenate([e, group_embeds, all_act_embeds], axis=1)
    hp = jnp.maximum(cat @ p["pred_w1"] + p["pred_b1"], 0.0)
    return jax.nn.sigmoid(hp @ p["pred_w2"] + p["pred_b2"])


# ----------------------------- main -----------------------------
if __name__ == "__main__":
    key = jax.random.PRNGKey(0)
    k_param, k_act, k_seq, k_mem, k_nbr = jax.random.split(key, 5)

    params = init_params(k_param)

    act_inputs = jax.random.randint(k_act, (B,), 0, NUM_ACT)             # group target act
    member_act_seqs = jax.random.randint(k_seq, (B, M, T), 0, NUM_ACT)   # per-member act seqs
    group_member_ids = jax.random.randint(k_mem, (B, M), 0, NUM_USER)    # group members
    neighbor_ids = jax.random.randint(k_nbr, (B, M, N), 0, NUM_USER)     # graph neighbors

    y = forward(params, act_inputs, member_act_seqs, group_member_ids, neighbor_ids)
    y = jax.block_until_ready(y)

    y_ref = ref_forward(params, act_inputs, member_act_seqs, group_member_ids, neighbor_ids)
    assert y.shape == (B, 1)
    assert jnp.allclose(y, y_ref, atol=3e-3), (y, y_ref)

    print("KERNEL_OK")
</pallas_src>

<mosaic_0001>
module attributes {stable_mosaic.version = 11 : i64} {
  func.func @_fused_kernel(%arg0: i32, %arg1: memref<264x1xi32, #tpu.memory_space<vmem>>, %arg2: memref<32x4xi32, #tpu.memory_space<vmem>>, %arg3: memref<32x32xbf16, #tpu.memory_space<vmem>>, %arg4: memref<32x32xbf16, #tpu.memory_space<vmem>>, %arg5: memref<32x128xbf16, #tpu.memory_space<vmem>>, %arg6: memref<32x128xbf16, #tpu.memory_space<vmem>>, %arg7: memref<1x128xf32, #tpu.memory_space<vmem>>, %arg8: memref<32x32xbf16, #tpu.memory_space<vmem>>, %arg9: memref<1x32xf32, #tpu.memory_space<vmem>>, %arg10: memref<128x32xbf16, #tpu.memory_space<vmem>>, %arg11: memref<1x32xf32, #tpu.memory_space<vmem>>, %arg12: memref<32x32xbf16, #tpu.memory_space<vmem>>, %arg13: memref<1x32xf32, #tpu.memory_space<vmem>>, %arg14: memref<32x32xbf16, #tpu.memory_space<vmem>>, %arg15: memref<1x32xf32, #tpu.memory_space<vmem>>, %arg16: memref<96x8xbf16, #tpu.memory_space<vmem>>, %arg17: memref<1x8xf32, #tpu.memory_space<vmem>>, %arg18: memref<1x8xf32, #tpu.memory_space<vmem>>, %arg19: memref<1x1xf32, #tpu.memory_space<vmem>>, %arg20: memref<1x1x8xf32, #tpu.memory_space<vmem>>) attributes {dimension_semantics = [#tpu.dimension_semantics<parallel>], iteration_bounds = array<i64: 2>, scalar_prefetch = 0 : i64, scratch_operands = 0 : i64, tpu.core_type = #tpu.core_type<tc>, window_params = [{transform_indices = @transform_0, window_bounds = array<i64: 264, 1>}, {transform_indices = @transform_1, window_bounds = array<i64: 32, 4>}, {pipeline_mode = #tpu.pipeline_mode<synchronous>, transform_indices = @transform_2, window_bounds = array<i64: 32, 32>}, {pipeline_mode = #tpu.pipeline_mode<synchronous>, transform_indices = @transform_3, window_bounds = array<i64: 32, 32>}, {pipeline_mode = #tpu.pipeline_mode<synchronous>, transform_indices = @transform_4, window_bounds = array<i64: 32, 128>}, {pipeline_mode = #tpu.pipeline_mode<synchronous>, transform_indices = @transform_5, window_bounds = array<i64: 32, 128>}, {pipeline_mode = #tpu.pipeline_mode<synchronous>, transform_indices = @transform_6, window_bounds = array<i64: 1, 128>}, {pipeline_mode = #tpu.pipeline_mode<synchronous>, transform_indices = @transform_7, window_bounds = array<i64: 32, 32>}, {pipeline_mode = #tpu.pipeline_mode<synchronous>, transform_indices = @transform_8, window_bounds = array<i64: 1, 32>}, {pipeline_mode = #tpu.pipeline_mode<synchronous>, transform_indices = @transform_9, window_bounds = array<i64: 128, 32>}, {pipeline_mode = #tpu.pipeline_mode<synchronous>, transform_indices = @transform_10, window_bounds = array<i64: 1, 32>}, {pipeline_mode = #tpu.pipeline_mode<synchronous>, transform_indices = @transform_11, window_bounds = array<i64: 32, 32>}, {pipeline_mode = #tpu.pipeline_mode<synchronous>, transform_indices = @transform_12, window_bounds = array<i64: 1, 32>}, {pipeline_mode = #tpu.pipeline_mode<synchronous>, transform_indices = @transform_13, window_bounds = array<i64: 32, 32>}, {pipeline_mode = #tpu.pipeline_mode<synchronous>, transform_indices = @transform_14, window_bounds = array<i64: 1, 32>}, {pipeline_mode = #tpu.pipeline_mode<synchronous>, transform_indices = @transform_15, window_bounds = array<i64: 96, 8>}, {pipeline_mode = #tpu.pipeline_mode<synchronous>, transform_indices = @transform_16, window_bounds = array<i64: 1, 8>}, {pipeline_mode = #tpu.pipeline_mode<synchronous>, transform_indices = @transform_17, window_bounds = array<i64: 1, 8>}, {pipeline_mode = #tpu.pipeline_mode<synchronous>, transform_indices = @transform_18, window_bounds = array<i64: 1, 1>}, {transform_indices = @transform_19, window_bounds = array<i64: 1, 1, 8>}]} {
    %c0 = arith.constant 0 : index
    %c0_0 = arith.constant 0 : index
    %0 = vector.load %arg3[%c0, %c0_0] : memref<32x32xbf16, #tpu.memory_space<vmem>>, vector<32x32xbf16>
    %c0_1 = arith.constant 0 : index
    %c0_2 = arith.constant 0 : index
    %1 = vector.load %arg4[%c0_1, %c0_2] : memref<32x32xbf16, #tpu.memory_space<vmem>>, vector<32x32xbf16>
    %c0_3 = arith.constant 0 : index
    %c0_4 = arith.constant 0 : index
    %2 = vector.load %arg1[%c0_3, %c0_4] : memref<264x1xi32, #tpu.memory_space<vmem>>, vector<264x1xi32>
    %3 = tpu.iota {dimensions = array<i32: 1>} : vector<264x32xi32>
    %4 = vector.broadcast %2 : vector<264x1xi32> to vector<264x32xi32>
    %5 = arith.cmpi eq, %3, %4 : vector<264x32xi32>
    %cst = arith.constant 1.000000e+00 : f32
    %cst_5 = arith.constant 0.000000e+00 : f32
    %6 = vector.broadcast %cst : f32 to vector<264x32xf32>
    %7 = vector.broadcast %cst_5 : f32 to vector<264x32xf32>
    %8 = arith.select %5, %6, %7 : vector<264x32xi1>, vector<264x32xf32>
    %9 = arith.truncf %8 : vector<264x32xf32> to vector<264x32xbf16>
    %cst_6 = arith.constant dense<0.000000e+00> : vector<264x32xf32>
    %10 = tpu.matmul %9, %0, %cst_6 {dimension_numbers = #tpu.dot_dimension_numbers<[1], [0], [0], [1], [0, 0, 1, 1], [], []>} : vector<264x32xbf16>, vector<32x32xbf16>, vector<264x32xf32> -> vector<264x32xf32>
    %11 = vector.extract_strided_slice %10 {offsets = [0, 0], sizes = [256, 32], strides = [1, 1]} : vector<264x32xf32> to vector<256x32xf32>
    %12 = vector.extract_strided_slice %10 {offsets = [256, 0], sizes = [8, 32], strides = [1, 1]} : vector<264x32xf32> to vector<8x32xf32>
    %c0_7 = arith.constant 0 : index
    %c0_8 = arith.constant 0 : index
    %13 = vector.load %arg2[%c0_7, %c0_8] : memref<32x4xi32, #tpu.memory_space<vmem>>, vector<32x4xi32>
    %14 = tpu.iota {dimensions = array<i32: 1>} : vector<32x32xi32>
    %cst_9 = arith.constant 0.000000e+00 : f32
    %15 = vector.broadcast %cst_9 : f32 to vector<32x32xf32>
    %16 = vector.extract_strided_slice %13 {offsets = [0, 0], sizes = [32, 1], strides = [1, 1]} : vector<32x4xi32> to vector<32x1xi32>
    %17 = vector.broadcast %16 : vector<32x1xi32> to vector<32x32xi32>
    %18 = arith.cmpi eq, %14, %17 : vector<32x32xi32>
    %cst_10 = arith.constant 1.000000e+00 : f32
    %cst_11 = arith.constant 0.000000e+00 : f32
    %19 = vector.broadcast %cst_10 : f32 to vector<32x32xf32>
    %20 = vector.broadcast %cst_11 : f32 to vector<32x32xf32>
    %21 = arith.select %18, %19, %20 : vector<32x32xi1>, vector<32x32xf32>
    %22 = arith.addf %15, %21 : vector<32x32xf32>
    %23 = vector.extract_strided_slice %13 {offsets = [0, 1], sizes = [32, 1], strides = [1, 1]} : vector<32x4xi32> to vector<32x1xi32>
    %24 = vector.broadcast %23 : vector<32x1xi32> to vector<32x32xi32>
    %25 = arith.cmpi eq, %14, %24 : vector<32x32xi32>
    %cst_12 = arith.constant 1.000000e+00 : f32
    %cst_13 = arith.constant 0.000000e+00 : f32
    %26 = vector.broadcast %cst_12 : f32 to vector<32x32xf32>
    %27 = vector.broadcast %cst_13 : f32 to vector<32x32xf32>
    %28 = arith.select %25, %26, %27 : vector<32x32xi1>, vector<32x32xf32>
    %29 = arith.addf %22, %28 : vector<32x32xf32>
    %30 = vector.extract_strided_slice %13 {offsets = [0, 2], sizes = [32, 1], strides = [1, 1]} : vector<32x4xi32> to vector<32x1xi32>
    %31 = vector.broadcast %30 : vector<32x1xi32> to vector<32x32xi32>
    %32 = arith.cmpi eq, %14, %31 : vector<32x32xi32>
    %cst_14 = arith.constant 1.000000e+00 : f32
    %cst_15 = arith.constant 0.000000e+00 : f32
    %33 = vector.broadcast %cst_14 : f32 to vector<32x32xf32>
    %34 = vector.broadcast %cst_15 : f32 to vector<32x32xf32>
    %35 = arith.select %32, %33, %34 : vector<32x32xi1>, vector<32x32xf32>
    %36 = arith.addf %29, %35 : vector<32x32xf32>
    %37 = vector.extract_strided_slice %13 {offsets = [0, 3], sizes = [32, 1], strides = [1, 1]} : vector<32x4xi32> to vector<32x1xi32>
    %38 = vector.broadcast %37 : vector<32x1xi32> to vector<32x32xi32>
    %39 = arith.cmpi eq, %14, %38 : vector<32x32xi32>
    %cst_16 = arith.constant 1.000000e+00 : f32
    %cst_17 = arith.constant 0.000000e+00 : f32
    %40 = vector.broadcast %cst_16 : f32 to vector<32x32xf32>
    %41 = vector.broadcast %cst_17 : f32 to vector<32x32xf32>
    %42 = arith.select %39, %40, %41 : vector<32x32xi1>, vector<32x32xf32>
    %43 = arith.addf %36, %42 : vector<32x32xf32>
    %cst_18 = arith.constant 2.500000e-01 : f32
    %44 = vector.broadcast %cst_18 : f32 to vector<32x32xf32>
    %45 = arith.mulf %43, %44 : vector<32x32xf32>
    %46 = arith.truncf %45 : vector<32x32xf32> to vector<32x32xbf16>
    %cst_19 = arith.constant dense<0.000000e+00> : vector<32x32xf32>
    %47 = tpu.matmul %46, %1, %cst_19 {dimension_numbers = #tpu.dot_dimension_numbers<[1], [0], [0], [1], [0, 0, 1, 1], [], []>} : vector<32x32xbf16>, vector<32x32xbf16>, vector<32x32xf32> -> vector<32x32xf32>
    %48 = arith.truncf %47 : vector<32x32xf32> to vector<32x32xbf16>
    %c0_20 = arith.constant 0 : index
    %c0_21 = arith.constant 0 : index
    %49 = vector.load %arg8[%c0_20, %c0_21] : memref<32x32xbf16, #tpu.memory_space<vmem>>, vector<32x32xbf16>
    %cst_22 = arith.constant dense<0.000000e+00> : vector<32x32xf32>
    %50 = tpu.matmul %48, %49, %cst_22 {dimension_numbers = #tpu.dot_dimension_numbers<[1], [0], [0], [1], [0, 0, 1, 1], [], []>} : vector<32x32xbf16>, vector<32x32xbf16>, vector<32x32xf32> -> vector<32x32xf32>
    %c0_23 = arith.constant 0 : index
    %c0_24 = arith.constant 0 : index
    %51 = vector.load %arg9[%c0_23, %c0_24] : memref<1x32xf32, #tpu.memory_space<vmem>>, vector<1x32xf32>
    %52 = vector.broadcast %51 : vector<1x32xf32> to vector<32x32xf32>
    %53 = arith.addf %50, %52 : vector<32x32xf32>
    %cst_25 = arith.constant 0.000000e+00 : f32
    %54 = vector.broadcast %cst_25 : f32 to vector<32x32xf32>
    %55 = arith.maximumf %53, %54 : vector<32x32xf32>
    %56 = arith.truncf %11 : vector<256x32xf32> to vector<256x32xbf16>
    %c0_26 = arith.constant 0 : index
    %c0_27 = arith.constant 0 : index
    %57 = vector.load %arg5[%c0_26, %c0_27] : memref<32x128xbf16, #tpu.memory_space<vmem>>, vector<32x128xbf16>
    %cst_28 = arith.constant dense<0.000000e+00> : vector<256x128xf32>
    %58 = tpu.matmul %56, %57, %cst_28 {dimension_numbers = #tpu.dot_dimension_numbers<[1], [0], [0], [1], [0, 0, 1, 1], [], []>} : vector<256x32xbf16>, vector<32x128xbf16>, vector<256x128xf32> -> vector<256x128xf32>
    %c0_29 = arith.constant 0 : index
    %c0_30 = arith.constant 0 : index
    %59 = vector.load %arg7[%c0_29, %c0_30] : memref<1x128xf32, #tpu.memory_space<vmem>>, vector<1x128xf32>
    %60 = vector.broadcast %59 : vector<1x128xf32> to vector<256x128xf32>
    %61 = arith.addf %58, %60 : vector<256x128xf32>
    %c0_31 = arith.constant 0 : index
    %c0_32 = arith.constant 0 : index
    %62 = vector.load %arg6[%c0_31, %c0_32] : memref<32x128xbf16, #tpu.memory_space<vmem>>, vector<32x128xbf16>
    %cst_33 = arith.constant 0.000000e+00 : f32
    %63 = vector.broadcast %cst_33 : f32 to vector<32x32xf32>
    %cst_34 = arith.constant 0.000000e+00 : f32
    %64 = vector.broadcast %cst_34 : f32 to vector<32x32xf32>
    %65 = vector.extract_strided_slice %61 {offsets = [0, 0], sizes = [32, 128], strides = [1, 1]} : vector<256x128xf32> to vector<32x128xf32>
    %66 = arith.truncf %63 : vector<32x32xf32> to vector<32x32xbf16>
    %cst_35 = arith.constant dense<0.000000e+00> : vector<32x128xf32>
    %67 = tpu.matmul %66, %62, %cst_35 {dimension_numbers = #tpu.dot_dimension_numbers<[1], [0], [0], [1], [0, 0, 1, 1], [], []>} : vector<32x32xbf16>, vector<32x128xbf16>, vector<32x128xf32> -> vector<32x128xf32>
    %68 = arith.addf %65, %67 : vector<32x128xf32>
    %69 = arith.negf %68 : vector<32x128xf32>
    %70 = math.exp %69 : vector<32x128xf32>
    %cst_36 = arith.constant 1.000000e+00 : f32
    %71 = vector.broadcast %cst_36 : f32 to vector<32x128xf32>
    %72 = arith.addf %71, %70 : vector<32x128xf32>
    %73 = arith.divf %71, %72 : vector<32x128xf32>
    %74 = vector.extract_strided_slice %73 {offsets = [0, 0], sizes = [32, 32], strides = [1, 1]} : vector<32x128xf32> to vector<32x32xf32>
    %75 = vector.extract_strided_slice %73 {offsets = [0, 32], sizes = [32, 32], strides = [1, 1]} : vector<32x128xf32> to vector<32x32xf32>
    %76 = vector.extract_strided_slice %73 {offsets = [0, 64], sizes = [32, 32], strides = [1, 1]} : vector<32x128xf32> to vector<32x32xf32>
    %cst_37 = arith.constant 2.000000e+00 : f32
    %77 = vector.broadcast %cst_37 : f32 to vector<32x32xf32>
    %78 = arith.mulf %77, %76 : vector<32x32xf32>
    %cst_38 = arith.constant 1.000000e+00 : f32
    %79 = vector.broadcast %cst_38 : f32 to vector<32x32xf32>
    %80 = arith.subf %78, %79 : vector<32x32xf32>
    %81 = vector.extract_strided_slice %73 {offsets = [0, 96], sizes = [32, 32], strides = [1, 1]} : vector<32x128xf32> to vector<32x32xf32>
    %82 = arith.mulf %75, %64 : vector<32x32xf32>
    %83 = arith.mulf %74, %80 : vector<32x32xf32>
    %84 = arith.addf %82, %83 : vector<32x32xf32>
    %85 = math.tanh %84 : vector<32x32xf32>
    %86 = arith.mulf %81, %85 : vector<32x32xf32>
    %87 = vector.extract_strided_slice %61 {offsets = [32, 0], sizes = [32, 128], strides = [1, 1]} : vector<256x128xf32> to vector<32x128xf32>
    %88 = arith.truncf %86 : vector<32x32xf32> to vector<32x32xbf16>
    %cst_39 = arith.constant dense<0.000000e+00> : vector<32x128xf32>
    %89 = tpu.matmul %88, %62, %cst_39 {dimension_numbers = #tpu.dot_dimension_numbers<[1], [0], [0], [1], [0, 0, 1, 1], [], []>} : vector<32x32xbf16>, vector<32x128xbf16>, vector<32x128xf32> -> vector<32x128xf32>
    %90 = arith.addf %87, %89 : vector<32x128xf32>
    %91 = arith.negf %90 : vector<32x128xf32>
    %92 = math.exp %91 : vector<32x128xf32>
    %cst_40 = arith.constant 1.000000e+00 : f32
    %93 = vector.broadcast %cst_40 : f32 to vector<32x128xf32>
    %94 = arith.addf %93, %92 : vector<32x128xf32>
    %95 = arith.divf %93, %94 : vector<32x128xf32>
    %96 = vector.extract_strided_slice %95 {offsets = [0, 0], sizes = [32, 32], strides = [1, 1]} : vector<32x128xf32> to vector<32x32xf32>
    %97 = vector.extract_strided_slice %95 {offsets = [0, 32], sizes = [32, 32], strides = [1, 1]} : vector<32x128xf32> to vector<32x32xf32>
    %98 = vector.extract_strided_slice %95 {offsets = [0, 64], sizes = [32, 32], strides = [1, 1]} : vector<32x128xf32> to vector<32x32xf32>
    %cst_41 = arith.constant 2.000000e+00 : f32
    %99 = vector.broadcast %cst_41 : f32 to vector<32x32xf32>
    %100 = arith.mulf %99, %98 : vector<32x32xf32>
    %cst_42 = arith.constant 1.000000e+00 : f32
    %101 = vector.broadcast %cst_42 : f32 to vector<32x32xf32>
    %102 = arith.subf %100, %101 : vector<32x32xf32>
    %103 = vector.extract_strided_slice %95 {offsets = [0, 96], sizes = [32, 32], strides = [1, 1]} : vector<32x128xf32> to vector<32x32xf32>
    %104 = arith.mulf %97, %84 : vector<32x32xf32>
    %105 = arith.mulf %96, %102 : vector<32x32xf32>
    %106 = arith.addf %104, %105 : vector<32x32xf32>
    %107 = math.tanh %106 : vector<32x32xf32>
    %108 = arith.mulf %103, %107 : vector<32x32xf32>
    %109 = vector.extract_strided_slice %61 {offsets = [64, 0], sizes = [32, 128], strides = [1, 1]} : vector<256x128xf32> to vector<32x128xf32>
    %110 = arith.truncf %108 : vector<32x32xf32> to vector<32x32xbf16>
    %cst_43 = arith.constant dense<0.000000e+00> : vector<32x128xf32>
    %111 = tpu.matmul %110, %62, %cst_43 {dimension_numbers = #tpu.dot_dimension_numbers<[1], [0], [0], [1], [0, 0, 1, 1], [], []>} : vector<32x32xbf16>, vector<32x128xbf16>, vector<32x128xf32> -> vector<32x128xf32>
    %112 = arith.addf %109, %111 : vector<32x128xf32>
    %113 = arith.negf %112 : vector<32x128xf32>
    %114 = math.exp %113 : vector<32x128xf32>
    %cst_44 = arith.constant 1.000000e+00 : f32
    %115 = vector.broadcast %cst_44 : f32 to vector<32x128xf32>
    %116 = arith.addf %115, %114 : vector<32x128xf32>
    %117 = arith.divf %115, %116 : vector<32x128xf32>
    %118 = vector.extract_strided_slice %117 {offsets = [0, 0], sizes = [32, 32], strides = [1, 1]} : vector<32x128xf32> to vector<32x32xf32>
    %119 = vector.extract_strided_slice %117 {offsets = [0, 32], sizes = [32, 32], strides = [1, 1]} : vector<32x128xf32> to vector<32x32xf32>
    %120 = vector.extract_strided_slice %117 {offsets = [0, 64], sizes = [32, 32], strides = [1, 1]} : vector<32x128xf32> to vector<32x32xf32>
    %cst_45 = arith.constant 2.000000e+00 : f32
    %121 = vector.broadcast %cst_45 : f32 to vector<32x32xf32>
    %122 = arith.mulf %121, %120 : vector<32x32xf32>
    %cst_46 = arith.constant 1.000000e+00 : f32
    %123 = vector.broadcast %cst_46 : f32 to vector<32x32xf32>
    %124 = arith.subf %122, %123 : vector<32x32xf32>
    %125 = vector.extract_strided_slice %117 {offsets = [0, 96], sizes = [32, 32], strides = [1, 1]} : vector<32x128xf32> to vector<32x32xf32>
    %126 = arith.mulf %119, %106 : vector<32x32xf32>
    %127 = arith.mulf %118, %124 : vector<32x32xf32>
    %128 = arith.addf %126, %127 : vector<32x32xf32>
    %129 = math.tanh %128 : vector<32x32xf32>
    %130 = arith.mulf %125, %129 : vector<32x32xf32>
    %131 = vector.extract_strided_slice %61 {offsets = [96, 0], sizes = [32, 128], strides = [1, 1]} : vector<256x128xf32> to vector<32x128xf32>
    %132 = arith.truncf %130 : vector<32x32xf32> to vector<32x32xbf16>
    %cst_47 = arith.constant dense<0.000000e+00> : vector<32x128xf32>
    %133 = tpu.matmul %132, %62, %cst_47 {dimension_numbers = #tpu.dot_dimension_numbers<[1], [0], [0], [1], [0, 0, 1, 1], [], []>} : vector<32x32xbf16>, vector<32x128xbf16>, vector<32x128xf32> -> vector<32x128xf32>
    %134 = arith.addf %131, %133 : vector<32x128xf32>
    %135 = arith.negf %134 : vector<32x128xf32>
    %136 = math.exp %135 : vector<32x128xf32>
    %cst_48 = arith.constant 1.000000e+00 : f32
    %137 = vector.broadcast %cst_48 : f32 to vector<32x128xf32>
    %138 = arith.addf %137, %136 : vector<32x128xf32>
    %139 = arith.divf %137, %138 : vector<32x128xf32>
    %140 = vector.extract_strided_slice %139 {offsets = [0, 0], sizes = [32, 32], strides = [1, 1]} : vector<32x128xf32> to vector<32x32xf32>
    %141 = vector.extract_strided_slice %139 {offsets = [0, 32], sizes = [32, 32], strides = [1, 1]} : vector<32x128xf32> to vector<32x32xf32>
    %142 = vector.extract_strided_slice %139 {offsets = [0, 64], sizes = [32, 32], strides = [1, 1]} : vector<32x128xf32> to vector<32x32xf32>
    %cst_49 = arith.constant 2.000000e+00 : f32
    %143 = vector.broadcast %cst_49 : f32 to vector<32x32xf32>
    %144 = arith.mulf %143, %142 : vector<32x32xf32>
    %cst_50 = arith.constant 1.000000e+00 : f32
    %145 = vector.broadcast %cst_50 : f32 to vector<32x32xf32>
    %146 = arith.subf %144, %145 : vector<32x32xf32>
    %147 = vector.extract_strided_slice %139 {offsets = [0, 96], sizes = [32, 32], strides = [1, 1]} : vector<32x128xf32> to vector<32x32xf32>
    %148 = arith.mulf %141, %128 : vector<32x32xf32>
    %149 = arith.mulf %140, %146 : vector<32x32xf32>
    %150 = arith.addf %148, %149 : vector<32x32xf32>
    %151 = math.tanh %150 : vector<32x32xf32>
    %152 = arith.mulf %147, %151 : vector<32x32xf32>
    %153 = vector.extract_strided_slice %61 {offsets = [128, 0], sizes = [32, 128], strides = [1, 1]} : vector<256x128xf32> to vector<32x128xf32>
    %154 = arith.truncf %152 : vector<32x32xf32> to vector<32x32xbf16>
    %cst_51 = arith.constant dense<0.000000e+00> : vector<32x128xf32>
    %155 = tpu.matmul %154, %62, %cst_51 {dimension_numbers = #tpu.dot_dimension_numbers<[1], [0], [0], [1], [0, 0, 1, 1], [], []>} : vector<32x32xbf16>, vector<32x128xbf16>, vector<32x128xf32> -> vector<32x128xf32>
    %156 = arith.addf %153, %155 : vector<32x128xf32>
    %157 = arith.negf %156 : vector<32x128xf32>
    %158 = math.exp %157 : vector<32x128xf32>
    %cst_52 = arith.constant 1.000000e+00 : f32
    %159 = vector.broadcast %cst_52 : f32 to vector<32x128xf32>
    %160 = arith.addf %159, %158 : vector<32x128xf32>
    %161 = arith.divf %159, %160 : vector<32x128xf32>
    %162 = vector.extract_strided_slice %161 {offsets = [0, 0], sizes = [32, 32], strides = [1, 1]} : vector<32x128xf32> to vector<32x32xf32>
    %163 = vector.extract_strided_slice %161 {offsets = [0, 32], sizes = [32, 32], strides = [1, 1]} : vector<32x128xf32> to vector<32x32xf32>
    %164 = vector.extract_strided_slice %161 {offsets = [0, 64], sizes = [32, 32], strides = [1, 1]} : vector<32x128xf32> to vector<32x32xf32>
    %cst_53 = arith.constant 2.000000e+00 : f32
    %165 = vector.broadcast %cst_53 : f32 to vector<32x32xf32>
    %166 = arith.mulf %165, %164 : vector<32x32xf32>
    %cst_54 = arith.constant 1.000000e+00 : f32
    %167 = vector.broadcast %cst_54 : f32 to vector<32x32xf32>
    %168 = arith.subf %166, %167 : vector<32x32xf32>
    %169 = vector.extract_strided_slice %161 {offsets = [0, 96], sizes = [32, 32], strides = [1, 1]} : vector<32x128xf32> to vector<32x32xf32>
    %170 = arith.mulf %163, %150 : vector<32x32xf32>
    %171 = arith.mulf %162, %168 : vector<32x32xf32>
    %172 = arith.addf %170, %171 : vector<32x32xf32>
    %173 = math.tanh %172 : vector<32x32xf32>
    %174 = arith.mulf %169, %173 : vector<32x32xf32>
    %175 = vector.extract_strided_slice %61 {offsets = [160, 0], sizes = [32, 128], strides = [1, 1]} : vector<256x128xf32> to vector<32x128xf32>
    %176 = arith.truncf %174 : vector<32x32xf32> to vector<32x32xbf16>
    %cst_55 = arith.constant dense<0.000000e+00> : vector<32x128xf32>
    %177 = tpu.matmul %176, %62, %cst_55 {dimension_numbers = #tpu.dot_dimension_numbers<[1], [0], [0], [1], [0, 0, 1, 1], [], []>} : vector<32x32xbf16>, vector<32x128xbf16>, vector<32x128xf32> -> vector<32x128xf32>
    %178 = arith.addf %175, %177 : vector<32x128xf32>
    %179 = arith.negf %178 : vector<32x128xf32>
    %180 = math.exp %179 : vector<32x128xf32>
    %cst_56 = arith.constant 1.000000e+00 : f32
    %181 = vector.broadcast %cst_56 : f32 to vector<32x128xf32>
    %182 = arith.addf %181, %180 : vector<32x128xf32>
    %183 = arith.divf %181, %182 : vector<32x128xf32>
    %184 = vector.extract_strided_slice %183 {offsets = [0, 0], sizes = [32, 32], strides = [1, 1]} : vector<32x128xf32> to vector<32x32xf32>
    %185 = vector.extract_strided_slice %183 {offsets = [0, 32], sizes = [32, 32], strides = [1, 1]} : vector<32x128xf32> to vector<32x32xf32>
    %186 = vector.extract_strided_slice %183 {offsets = [0, 64], sizes = [32, 32], strides = [1, 1]} : vector<32x128xf32> to vector<32x32xf32>
    %cst_57 = arith.constant 2.000000e+00 : f32
    %187 = vector.broadcast %cst_57 : f32 to vector<32x32xf32>
    %188 = arith.mulf %187, %186 : vector<32x32xf32>
    %cst_58 = arith.constant 1.000000e+00 : f32
    %189 = vector.broadcast %cst_58 : f32 to vector<32x32xf32>
    %190 = arith.subf %188, %189 : vector<32x32xf32>
    %191 = vector.extract_strided_slice %183 {offsets = [0, 96], sizes = [32, 32], strides = [1, 1]} : vector<32x128xf32> to vector<32x32xf32>
    %192 = arith.mulf %185, %172 : vector<32x32xf32>
    %193 = arith.mulf %184, %190 : vector<32x32xf32>
    %194 = arith.addf %192, %193 : vector<32x32xf32>
    %195 = math.tanh %194 : vector<32x32xf32>
    %196 = arith.mulf %191, %195 : vector<32x32xf32>
    %197 = vector.extract_strided_slice %61 {offsets = [192, 0], sizes = [32, 128], strides = [1, 1]} : vector<256x128xf32> to vector<32x128xf32>
    %198 = arith.truncf %196 : vector<32x32xf32> to vector<32x32xbf16>
    %cst_59 = arith.constant dense<0.000000e+00> : vector<32x128xf32>
    %199 = tpu.matmul %198, %62, %cst_59 {dimension_numbers = #tpu.dot_dimension_numbers<[1], [0], [0], [1], [0, 0, 1, 1], [], []>} : vector<32x32xbf16>, vector<32x128xbf16>, vector<32x128xf32> -> vector<32x128xf32>
    %200 = arith.addf %197, %199 : vector<32x128xf32>
    %201 = arith.negf %200 : vector<32x128xf32>
    %202 = math.exp %201 : vector<32x128xf32>
    %cst_60 = arith.constant 1.000000e+00 : f32
    %203 = vector.broadcast %cst_60 : f32 to vector<32x128xf32>
    %204 = arith.addf %203, %202 : vector<32x128xf32>
    %205 = arith.divf %203, %204 : vector<32x128xf32>
    %206 = vector.extract_strided_slice %205 {offsets = [0, 0], sizes = [32, 32], strides = [1, 1]} : vector<32x128xf32> to vector<32x32xf32>
    %207 = vector.extract_strided_slice %205 {offsets = [0, 32], sizes = [32, 32], strides = [1, 1]} : vector<32x128xf32> to vector<32x32xf32>
    %208 = vector.extract_strided_slice %205 {offsets = [0, 64], sizes = [32, 32], strides = [1, 1]} : vector<32x128xf32> to vector<32x32xf32>
    %cst_61 = arith.constant 2.000000e+00 : f32
    %209 = vector.broadcast %cst_61 : f32 to vector<32x32xf32>
    %210 = arith.mulf %209, %208 : vector<32x32xf32>
    %cst_62 = arith.constant 1.000000e+00 : f32
    %211 = vector.broadcast %cst_62 : f32 to vector<32x32xf32>
    %212 = arith.subf %210, %211 : vector<32x32xf32>
    %213 = vector.extract_strided_slice %205 {offsets = [0, 96], sizes = [32, 32], strides = [1, 1]} : vector<32x128xf32> to vector<32x32xf32>
    %214 = arith.mulf %207, %194 : vector<32x32xf32>
    %215 = arith.mulf %206, %212 : vector<32x32xf32>
    %216 = arith.addf %214, %215 : vector<32x32xf32>
    %217 = math.tanh %216 : vector<32x32xf32>
    %218 = arith.mulf %213, %217 : vector<32x32xf32>
    %219 = vector.extract_strided_slice %61 {offsets = [224, 0], sizes = [32, 128], strides = [1, 1]} : vector<256x128xf32> to vector<32x128xf32>
    %220 = arith.truncf %218 : vector<32x32xf32> to vector<32x32xbf16>
    %cst_63 = arith.constant dense<0.000000e+00> : vector<32x128xf32>
    %221 = tpu.matmul %220, %62, %cst_63 {dimension_numbers = #tpu.dot_dimension_numbers<[1], [0], [0], [1], [0, 0, 1, 1], [], []>} : vector<32x32xbf16>, vector<32x128xbf16>, vector<32x128xf32> -> vector<32x128xf32>
    %222 = arith.addf %219, %221 : vector<32x128xf32>
    %223 = arith.negf %222 : vector<32x128xf32>
    %224 = math.exp %223 : vector<32x128xf32>
    %cst_64 = arith.constant 1.000000e+00 : f32
    %225 = vector.broadcast %cst_64 : f32 to vector<32x128xf32>
    %226 = arith.addf %225, %224 : vector<32x128xf32>
    %227 = arith.divf %225, %226 : vector<32x128xf32>
    %228 = vector.extract_strided_slice %227 {offsets = [0, 0], sizes = [32, 32], strides = [1, 1]} : vector<32x128xf32> to vector<32x32xf32>
    %229 = vector.extract_strided_slice %227 {offsets = [0, 32], sizes = [32, 32], strides = [1, 1]} : vector<32x128xf32> to vector<32x32xf32>
    %230 = vector.extract_strided_slice %227 {offsets = [0, 64], sizes = [32, 32], strides = [1, 1]} : vector<32x128xf32> to vector<32x32xf32>
    %cst_65 = arith.constant 2.000000e+00 : f32
    %231 = vector.broadcast %cst_65 : f32 to vector<32x32xf32>
    %232 = arith.mulf %231, %230 : vector<32x32xf32>
    %cst_66 = arith.constant 1.000000e+00 : f32
    %233 = vector.broadcast %cst_66 : f32 to vector<32x32xf32>
    %234 = arith.subf %232, %233 : vector<32x32xf32>
    %235 = vector.extract_strided_slice %227 {offsets = [0, 96], sizes = [32, 32], strides = [1, 1]} : vector<32x128xf32> to vector<32x32xf32>
    %236 = arith.mulf %229, %216 : vector<32x32xf32>
    %237 = arith.mulf %228, %234 : vector<32x32xf32>
    %238 = arith.addf %236, %237 : vector<32x32xf32>
    %239 = math.tanh %238 : vector<32x32xf32>
    %240 = arith.mulf %235, %239 : vector<32x32xf32>
    %241 = arith.addf %240, %55 : vector<32x32xf32>
    %242 = vector.extract_strided_slice %241 {offsets = [0, 0], sizes = [8, 32], strides = [1, 1]} : vector<32x32xf32> to vector<8x32xf32>
    %243 = arith.mulf %242, %242 : vector<8x32xf32>
    %244 = vector.extract_strided_slice %241 {offsets = [8, 0], sizes = [8, 32], strides = [1, 1]} : vector<32x32xf32> to vector<8x32xf32>
    %245 = arith.addf %242, %244 : vector<8x32xf32>
    %246 = arith.maximumf %242, %244 : vector<8x32xf32>
    %247 = arith.minimumf %242, %244 : vector<8x32xf32>
    %248 = arith.mulf %244, %244 : vector<8x32xf32>
    %249 = arith.addf %243, %248 : vector<8x32xf32>
    %250 = vector.extract_strided_slice %241 {offsets = [16, 0], sizes = [8, 32], strides = [1, 1]} : vector<32x32xf32> to vector<8x32xf32>
    %251 = arith.addf %245, %250 : vector<8x32xf32>
    %252 = arith.maximumf %246, %250 : vector<8x32xf32>
    %253 = arith.minimumf %247, %250 : vector<8x32xf32>
    %254 = arith.mulf %250, %250 : vector<8x32xf32>
    %255 = arith.addf %249, %254 : vector<8x32xf32>
    %256 = vector.extract_strided_slice %241 {offsets = [24, 0], sizes = [8, 32], strides = [1, 1]} : vector<32x32xf32> to vector<8x32xf32>
    %257 = arith.addf %251, %256 : vector<8x32xf32>
    %258 = arith.maximumf %252, %256 : vector<8x32xf32>
    %259 = arith.minimumf %253, %256 : vector<8x32xf32>
    %260 = arith.mulf %256, %256 : vector<8x32xf32>
    %261 = arith.addf %255, %260 : vector<8x32xf32>
    %cst_67 = arith.constant 2.500000e-01 : f32
    %262 = vector.broadcast %cst_67 : f32 to vector<8x32xf32>
    %263 = arith.mulf %257, %262 : vector<8x32xf32>
    %cst_68 = arith.constant 2.500000e-01 : f32
    %264 = vector.broadcast %cst_68 : f32 to vector<8x32xf32>
    %265 = arith.mulf %261, %264 : vector<8x32xf32>
    %266 = arith.mulf %263, %263 : vector<8x32xf32>
    %267 = arith.subf %265, %266 : vector<8x32xf32>
    %cst_69 = arith.constant 0.000000e+00 : f32
    %268 = vector.broadcast %cst_69 : f32 to vector<8x32xf32>
    %269 = arith.maximumf %267, %268 : vector<8x32xf32>
    %cst_70 = arith.constant 9.99999974E-6 : f32
    %270 = vector.broadcast %cst_70 : f32 to vector<8x32xf32>
    %271 = arith.addf %269, %270 : vector<8x32xf32>
    %272 = math.sqrt %271 : vector<8x32xf32>
    %273 = arith.truncf %263 : vector<8x32xf32> to vector<8x32xbf16>
    %c0_71 = arith.constant 0 : index
    %c0_72 = arith.constant 0 : index
    %274 = vector.load %arg10[%c0_71, %c0_72] : memref<128x32xbf16, #tpu.memory_space<vmem>>, vector<32x32xbf16>
    %cst_73 = arith.constant dense<0.000000e+00> : vector<8x32xf32>
    %275 = tpu.matmul %273, %274, %cst_73 {dimension_numbers = #tpu.dot_dimension_numbers<[1], [0], [0], [1], [0, 0, 1, 1], [], []>} : vector<8x32xbf16>, vector<32x32xbf16>, vector<8x32xf32> -> vector<8x32xf32>
    %276 = arith.truncf %258 : vector<8x32xf32> to vector<8x32xbf16>
    %c32 = arith.constant 32 : index
    %c0_74 = arith.constant 0 : index
    %277 = vector.load %arg10[%c32, %c0_74] : memref<128x32xbf16, #tpu.memory_space<vmem>>, vector<32x32xbf16>
    %cst_75 = arith.constant dense<0.000000e+00> : vector<8x32xf32>
    %278 = tpu.matmul %276, %277, %cst_75 {dimension_numbers = #tpu.dot_dimension_numbers<[1], [0], [0], [1], [0, 0, 1, 1], [], []>} : vector<8x32xbf16>, vector<32x32xbf16>, vector<8x32xf32> -> vector<8x32xf32>
    %279 = arith.addf %275, %278 : vector<8x32xf32>
    %280 = arith.truncf %259 : vector<8x32xf32> to vector<8x32xbf16>
    %c64 = arith.constant 64 : index
    %c0_76 = arith.constant 0 : index
    %281 = vector.load %arg10[%c64, %c0_76] : memref<128x32xbf16, #tpu.memory_space<vmem>>, vector<32x32xbf16>
    %cst_77 = arith.constant dense<0.000000e+00> : vector<8x32xf32>
    %282 = tpu.matmul %280, %281, %cst_77 {dimension_numbers = #tpu.dot_dimension_numbers<[1], [0], [0], [1], [0, 0, 1, 1], [], []>} : vector<8x32xbf16>, vector<32x32xbf16>, vector<8x32xf32> -> vector<8x32xf32>
    %283 = arith.addf %279, %282 : vector<8x32xf32>
    %284 = arith.truncf %272 : vector<8x32xf32> to vector<8x32xbf16>
    %c96 = arith.constant 96 : index
    %c0_78 = arith.constant 0 : index
    %285 = vector.load %arg10[%c96, %c0_78] : memref<128x32xbf16, #tpu.memory_space<vmem>>, vector<32x32xbf16>
    %cst_79 = arith.constant dense<0.000000e+00> : vector<8x32xf32>
    %286 = tpu.matmul %284, %285, %cst_79 {dimension_numbers = #tpu.dot_dimension_numbers<[1], [0], [0], [1], [0, 0, 1, 1], [], []>} : vector<8x32xbf16>, vector<32x32xbf16>, vector<8x32xf32> -> vector<8x32xf32>
    %287 = arith.addf %283, %286 : vector<8x32xf32>
    %c0_80 = arith.constant 0 : index
    %c0_81 = arith.constant 0 : index
    %288 = vector.load %arg11[%c0_80, %c0_81] : memref<1x32xf32, #tpu.memory_space<vmem>>, vector<1x32xf32>
    %289 = vector.broadcast %288 : vector<1x32xf32> to vector<8x32xf32>
    %290 = arith.addf %287, %289 : vector<8x32xf32>
    %cst_82 = arith.constant 0.000000e+00 : f32
    %291 = vector.broadcast %cst_82 : f32 to vector<8x32xf32>
    %292 = arith.maximumf %290, %291 : vector<8x32xf32>
    %293 = arith.truncf %292 : vector<8x32xf32> to vector<8x32xbf16>
    %c0_83 = arith.constant 0 : index
    %c0_84 = arith.constant 0 : index
    %294 = vector.load %arg12[%c0_83, %c0_84] : memref<32x32xbf16, #tpu.memory_space<vmem>>, vector<32x32xbf16>
    %cst_85 = arith.constant dense<0.000000e+00> : vector<8x32xf32>
    %295 = tpu.matmul %293, %294, %cst_85 {dimension_numbers = #tpu.dot_dimension_numbers<[1], [0], [0], [1], [0, 0, 1, 1], [], []>} : vector<8x32xbf16>, vector<32x32xbf16>, vector<8x32xf32> -> vector<8x32xf32>
    %c0_86 = arith.constant 0 : index
    %c0_87 = arith.constant 0 : index
    %296 = vector.load %arg13[%c0_86, %c0_87] : memref<1x32xf32, #tpu.memory_space<vmem>>, vector<1x32xf32>
    %297 = vector.broadcast %296 : vector<1x32xf32> to vector<8x32xf32>
    %298 = arith.addf %295, %297 : vector<8x32xf32>
    %cst_88 = arith.constant 0.000000e+00 : f32
    %299 = vector.broadcast %cst_88 : f32 to vector<8x32xf32>
    %300 = arith.maximumf %298, %299 : vector<8x32xf32>
    %301 = arith.truncf %300 : vector<8x32xf32> to vector<8x32xbf16>
    %c0_89 = arith.constant 0 : index
    %c0_90 = arith.constant 0 : index
    %302 = vector.load %arg14[%c0_89, %c0_90] : memref<32x32xbf16, #tpu.memory_space<vmem>>, vector<32x32xbf16>
    %cst_91 = arith.constant dense<0.000000e+00> : vector<8x32xf32>
    %303 = tpu.matmul %301, %302, %cst_91 {dimension_numbers = #tpu.dot_dimension_numbers<[1], [0], [0], [1], [0, 0, 1, 1], [], []>} : vector<8x32xbf16>, vector<32x32xbf16>, vector<8x32xf32> -> vector<8x32xf32>
    %c0_92 = arith.constant 0 : index
    %c0_93 = arith.constant 0 : index
    %304 = vector.load %arg15[%c0_92, %c0_93] : memref<1x32xf32, #tpu.memory_space<vmem>>, vector<1x32xf32>
    %305 = vector.broadcast %304 : vector<1x32xf32> to vector<8x32xf32>
    %306 = arith.addf %303, %305 : vector<8x32xf32>
    %307 = arith.mulf %306, %12 : vector<8x32xf32>
    %308 = arith.truncf %307 : vector<8x32xf32> to vector<8x32xbf16>
    %c0_94 = arith.constant 0 : index
    %c0_95 = arith.constant 0 : index
    %309 = vector.load %arg16[%c0_94, %c0_95] : memref<96x8xbf16, #tpu.memory_space<vmem>>, vector<32x8xbf16>
    %cst_96 = arith.constant dense<0.000000e+00> : vector<8x8xf32>
    %310 = tpu.matmul %308, %309, %cst_96 {dimension_numbers = #tpu.dot_dimension_numbers<[1], [0], [0], [1], [0, 0, 1, 1], [], []>} : vector<8x32xbf16>, vector<32x8xbf16>, vector<8x8xf32> -> vector<8x8xf32>
    %311 = arith.truncf %306 : vector<8x32xf32> to vector<8x32xbf16>
    %c32_97 = arith.constant 32 : index
    %c0_98 = arith.constant 0 : index
    %312 = vector.load %arg16[%c32_97, %c0_98] : memref<96x8xbf16, #tpu.memory_space<vmem>>, vector<32x8xbf16>
    %cst_99 = arith.constant dense<0.000000e+00> : vector<8x8xf32>
    %313 = tpu.matmul %311, %312, %cst_99 {dimension_numbers = #tpu.dot_dimension_numbers<[1], [0], [0], [1], [0, 0, 1, 1], [], []>} : vector<8x32xbf16>, vector<32x8xbf16>, vector<8x8xf32> -> vector<8x8xf32>
    %314 = arith.addf %310, %313 : vector<8x8xf32>
    %315 = arith.truncf %12 : vector<8x32xf32> to vector<8x32xbf16>
    %c64_100 = arith.constant 64 : index
    %c0_101 = arith.constant 0 : index
    %316 = vector.load %arg16[%c64_100, %c0_101] : memref<96x8xbf16, #tpu.memory_space<vmem>>, vector<32x8xbf16>
    %cst_102 = arith.constant dense<0.000000e+00> : vector<8x8xf32>
    %317 = tpu.matmul %315, %316, %cst_102 {dimension_numbers = #tpu.dot_dimension_numbers<[1], [0], [0], [1], [0, 0, 1, 1], [], []>} : vector<8x32xbf16>, vector<32x8xbf16>, vector<8x8xf32> -> vector<8x8xf32>
    %318 = arith.addf %314, %317 : vector<8x8xf32>
    %c0_103 = arith.constant 0 : index
    %c0_104 = arith.constant 0 : index
    %319 = vector.load %arg17[%c0_103, %c0_104] : memref<1x8xf32, #tpu.memory_space<vmem>>, vector<1x8xf32>
    %320 = vector.broadcast %319 : vector<1x8xf32> to vector<8x8xf32>
    %321 = arith.addf %318, %320 : vector<8x8xf32>
    %cst_105 = arith.constant 0.000000e+00 : f32
    %322 = vector.broadcast %cst_105 : f32 to vector<8x8xf32>
    %323 = arith.maximumf %321, %322 : vector<8x8xf32>
    %c0_106 = arith.constant 0 : index
    %c0_107 = arith.constant 0 : index
    %324 = vector.load %arg18[%c0_106, %c0_107] : memref<1x8xf32, #tpu.memory_space<vmem>>, vector<1x8xf32>
    %cst_108 = arith.constant dense<0.000000e+00> : vector<1x8xf32>
    %325 = tpu.matmul %324, %323, %cst_108 {dimension_numbers = #tpu.dot_dimension_numbers<[1], [1], [0], [0], [0, 0, 1, 0], [], []>} : vector<1x8xf32>, vector<8x8xf32>, vector<1x8xf32> -> vector<1x8xf32>
    %c0_109 = arith.constant 0 : index
    %c0_110 = arith.constant 0 : index
    %326 = vector.load %arg19[%c0_109, %c0_110] : memref<1x1xf32, #tpu.memory_space<vmem>>, vector<1x1xf32>
    %327 = vector.broadcast %326 : vector<1x1xf32> to vector<1x8xf32>
    %328 = arith.addf %325, %327 : vector<1x8xf32>
    %329 = arith.negf %328 : vector<1x8xf32>
    %330 = math.exp %329 : vector<1x8xf32>
    %cst_111 = arith.constant 1.000000e+00 : f32
    %331 = vector.broadcast %cst_111 : f32 to vector<1x8xf32>
    %332 = arith.addf %331, %330 : vector<1x8xf32>
    %333 = arith.divf %331, %332 : vector<1x8xf32>
    %334 = vector.shape_cast %333 : vector<1x8xf32> to vector<1x1x8xf32>
    %c0_112 = arith.constant 0 : index
    %c0_113 = arith.constant 0 : index
    %c0_114 = arith.constant 0 : index
    %335 = vector.load %arg20[%c0_112, %c0_113, %c0_114] : memref<1x1x8xf32, #tpu.memory_space<vmem>>, vector<1x1x8xf32>
    tpu.vector_store %arg20[%c0_112, %c0_113, %c0_114], %334 {strides = array<i32>} : memref<1x1x8xf32, #tpu.memory_space<vmem>>, vector<1x1x8xf32>,
    return
  }
  func.func @transform_0(%arg0: i32) -> (i32, i32) {
    %c0_i32 = arith.constant 0 : i32
    %c0_i32_0 = arith.constant 0 : i32
    return %arg0, %c0_i32 : i32, i32
  }
  func.func @transform_1(%arg0: i32) -> (i32, i32) {
    %c0_i32 = arith.constant 0 : i32
    %c0_i32_0 = arith.constant 0 : i32
    return %arg0, %c0_i32 : i32, i32
  }
  func.func @transform_2(%arg0: i32) -> (i32, i32) {
    %c0_i32 = arith.constant 0 : i32
    %c0_i32_0 = arith.constant 0 : i32
    %c0_i32_1 = arith.constant 0 : i32
    return %c0_i32, %c0_i32_0 : i32, i32
  }
  func.func @transform_3(%arg0: i32) -> (i32, i32) {
    %c0_i32 = arith.constant 0 : i32
    %c0_i32_0 = arith.constant 0 : i32
    %c0_i32_1 = arith.constant 0 : i32
    return %c0_i32, %c0_i32_0 : i32, i32
  }
  func.func @transform_4(%arg0: i32) -> (i32, i32) {
    %c0_i32 = arith.constant 0 : i32
    %c0_i32_0 = arith.constant 0 : i32
    %c0_i32_1 = arith.constant 0 : i32
    return %c0_i32, %c0_i32_0 : i32, i32
  }
  func.func @transform_5(%arg0: i32) -> (i32, i32) {
    %c0_i32 = arith.constant 0 : i32
    %c0_i32_0 = arith.constant 0 : i32
    %c0_i32_1 = arith.constant 0 : i32
    return %c0_i32, %c0_i32_0 : i32, i32
  }
  func.func @transform_6(%arg0: i32) -> (i32, i32) {
    %c0_i32 = arith.constant 0 : i32
    %c0_i32_0 = arith.constant 0 : i32
    %c0_i32_1 = arith.constant 0 : i32
    return %c0_i32, %c0_i32_0 : i32, i32
  }
  func.func @transform_7(%arg0: i32) -> (i32, i32) {
    %c0_i32 = arith.constant 0 : i32
    %c0_i32_0 = arith.constant 0 : i32
    %c0_i32_1 = arith.constant 0 : i32
    return %c0_i32, %c0_i32_0 : i32, i32
  }
  func.func @transform_8(%arg0: i32) -> (i32, i32) {
    %c0_i32 = arith.constant 0 : i32
    %c0_i32_0 = arith.constant 0 : i32
    %c0_i32_1 = arith.constant 0 : i32
    return %c0_i32, %c0_i32_0 : i32, i32
  }
  func.func @transform_9(%arg0: i32) -> (i32, i32) {
    %c0_i32 = arith.constant 0 : i32
    %c0_i32_0 = arith.constant 0 : i32
    %c0_i32_1 = arith.constant 0 : i32
    return %c0_i32, %c0_i32_0 : i32, i32
  }
  func.func @transform_10(%arg0: i32) -> (i32, i32) {
    %c0_i32 = arith.constant 0 : i32
    %c0_i32_0 = arith.constant 0 : i32
    %c0_i32_1 = arith.constant 0 : i32
    return %c0_i32, %c0_i32_0 : i32, i32
  }
  func.func @transform_11(%arg0: i32) -> (i32, i32) {
    %c0_i32 = arith.constant 0 : i32
    %c0_i32_0 = arith.constant 0 : i32
    %c0_i32_1 = arith.constant 0 : i32
    return %c0_i32, %c0_i32_0 : i32, i32
  }
  func.func @transform_12(%arg0: i32) -> (i32, i32) {
    %c0_i32 = arith.constant 0 : i32
    %c0_i32_0 = arith.constant 0 : i32
    %c0_i32_1 = arith.constant 0 : i32
    return %c0_i32, %c0_i32_0 : i32, i32
  }
  func.func @transform_13(%arg0: i32) -> (i32, i32) {
    %c0_i32 = arith.constant 0 : i32
    %c0_i32_0 = arith.constant 0 : i32
    %c0_i32_1 = arith.constant 0 : i32
    return %c0_i32, %c0_i32_0 : i32, i32
  }
  func.func @transform_14(%arg0: i32) -> (i32, i32) {
    %c0_i32 = arith.constant 0 : i32
    %c0_i32_0 = arith.constant 0 : i32
    %c0_i32_1 = arith.constant 0 : i32
    return %c0_i32, %c0_i32_0 : i32, i32
  }
  func.func @transform_15(%arg0: i32) -> (i32, i32) {
    %c0_i32 = arith.constant 0 : i32
    %c0_i32_0 = arith.constant 0 : i32
    %c0_i32_1 = arith.constant 0 : i32
    return %c0_i32, %c0_i32_0 : i32, i32
  }
  func.func @transform_16(%arg0: i32) -> (i32, i32) {
    %c0_i32 = arith.constant 0 : i32
    %c0_i32_0 = arith.constant 0 : i32
    %c0_i32_1 = arith.constant 0 : i32
    return %c0_i32, %c0_i32_0 : i32, i32
  }
  func.func @transform_17(%arg0: i32) -> (i32, i32) {
    %c0_i32 = arith.constant 0 : i32
    %c0_i32_0 = arith.constant 0 : i32
    %c0_i32_1 = arith.constant 0 : i32
    return %c0_i32, %c0_i32_0 : i32, i32
  }
  func.func @transform_18(%arg0: i32) -> (i32, i32) {
    %c0_i32 = arith.constant 0 : i32
    %c0_i32_0 = arith.constant 0 : i32
    %c0_i32_1 = arith.constant 0 : i32
    return %c0_i32, %c0_i32_0 : i32, i32
  }
  func.func @transform_19(%arg0: i32) -> (i32, i32, i32) {
    %c0_i32 = arith.constant 0 : i32
    %c0_i32_0 = arith.constant 0 : i32
    %c0_i32_1 = arith.constant 0 : i32
    return %arg0, %c0_i32, %c0_i32_0 : i32, i32, i32
  }
}

</mosaic_0001>

<bundles_post_ra>
// kernel: forward.1
= control target key start
LH: loop header
LB: loop body
LE: loop exit
PB: predicated region body
PF: predicated region fallthrough
CT: control target
= control target key end

     0   :  { %s4038_s20 = smov 0   ;;  %s4868_s0 = inlined_call_operand.vmem [shape: s32[528,1], index: 0, kind: input, shape index: {}]   ;;  %s4869_s1 = inlined_call_operand.vmem [shape: s32[64,4], index: 1, kind: input, shape index: {}]   ;;  %s4870_s2 = inlined_call_operand.vmem [shape: bf16[32,32], index: 2, kind: input, shape index: {}]   ;;  %s4871_s3 = inlined_call_operand.vmem [shape: bf16[32,32], index: 3, kind: input, shape index: {}]   ;;  %s4872_s4 = inlined_call_operand.vmem [shape: bf16[32,128], index: 4, kind: input, shape index: {}]   ;;  %s4873_s5 = inlined_call_operand.vmem [shape: bf16[32,128], index: 5, kind: input, shape index: {}]   ;;  %s4874_s6 = inlined_call_operand.vmem [shape: f32[1,128], index: 6, kind: input, shape index: {}]   ;;  %s4875_s7 = inlined_call_operand.vmem [shape: bf16[32,32], index: 7, kind: input, shape index: {}]   ;;  %s4876_s8 = inlined_call_operand.vmem [shape: f32[1,32], index: 8, kind: input, shape index: {}]   ;;  %s4877_s9 = inlined_call_operand.vmem [shape: bf16[128,32], index: 9, kind: input, shape index: {}]   ;;  %s4878_s10 = inlined_call_operand.vmem [shape: f32[1,32], index: 10, kind: input, shape index: {}]   ;;  %s4879_s11 = inlined_call_operand.vmem [shape: bf16[32,32], index: 11, kind: input, shape index: {}]   ;;  %s4880_s12 = inlined_call_operand.vmem [shape: f32[1,32], index: 12, kind: input, shape index: {}]   ;;  %s4881_s13 = inlined_call_operand.vmem [shape: bf16[32,32], index: 13, kind: input, shape index: {}]   ;;  %s4882_s14 = inlined_call_operand.vmem [shape: f32[1,32], index: 14, kind: input, shape index: {}]   ;;  %s4883_s15 = inlined_call_operand.vmem [shape: bf16[96,8], index: 15, kind: input, shape index: {}]   ;;  %s4884_s16 = inlined_call_operand.vmem [shape: f32[1,8], index: 16, kind: input, shape index: {}]   ;;  %s4885_s17 = inlined_call_operand.vmem [shape: f32[1,8], index: 17, kind: input, shape index: {}]   ;;  %s4886_s18 = inlined_call_operand.<no memory space> [shape: f32[1,1], index: 18, kind: input, shape index: {}]   ;;  %s4887_s19 = inlined_call_operand.vmem [shape: f32[2,1,8], index: 19, kind: output, shape index: {}]  }
   0x1   :  { %4890 = sst [smem:[#allocation3_spill]] %s4868_s0  ;;  %v24_v0 = vstv %s4886_s18 }
   0x2   :  { %4891 = sst [smem:[#allocation4_spill]] %s4869_s1  ;;  %25 = vst [vmem:[#allocation2] sm:$0x1] %v24_v0 }
   0x3   :  { %4892 = sst [smem:[#allocation5_spill]] %s4870_s2 }
   0x4   :  { %4893 = sst [smem:[#allocation6_spill]] %s4871_s3 }
   0x5 LB: > { %s4044_s21 = sadd.s32 4294967295, %s3925_s20   ;;  %p3399_p0 = scmp.ge.s32.totalorder %s3925_s20, 1  ;;  %s3925_s20 = sphi %s4038_s20, %s31_s20  }
   0x6   : > { %p551_p1 = scmp.lt.s32.totalorder %s3925_s20, 3 }
   0x8   : > { %p552_p2 = pnand %p3399_p0, %p551_p1 }
   0x9   : > { %s610_s18 = smul.u32 (!%p552_p2), 33, %s4044_s21  ;;  %s3401_s1 = sshll.u32 (!%p552_p2), %s4044_s21, 2 }
   0xa   : > { %555 = sbr.rel (%p552_p2) target bundleno = 6056 (0x17a8), region = 96  ;;  %p617_p3 = scmp.lt.s32.totalorder (!%p552_p2), %s3401_s1, 7 }
   0xb   : > { %p611_p4 = scmp.lt.s32.totalorder (!%p552_p2), %s610_s18, 65  ;;  %s4894_s25 = sld [smem:[#allocation4_spill]] (!%p552_p2) }
   0xc   : > { %s4895_s28 = sld [smem:[#allocation3_spill]] (!%p552_p2)  ;;  %s3933_s26 = smov (!%p552_p2), 32  }
   0xd   : > { %s4897_s24 = sld [smem:[#allocation6_spill]] (!%p552_p2)  ;;  %p622_p5 = scmp.lt.s32.totalorder (!%p552_p2), %s4044_s21, 1 }
   0xf   : > { %v3927_v1 = vmov 0   ;;  %s4899_s1 = smov (!%p617_p3, %s3401_s1), 7  ;;  %s4901_s18 = smov (!%p611_p4, %s610_s18), 65  ;;  %v3928_v8 = vmov 2   ;;  %v3929_v9 = vmov 1   ;;  %v3930_v10 = vmov 3  }
  0x10   : > { %3690 = vset.pattern.permute.xlu0 %v3927_v1  ;;  %3691 = vset.pattern.permute.xlu1 %v3927_v1  ;;  %s3402_s22 = sshll.u32 %s4899_s1, 3  ;;  %s3400_s2 = sshll.u32 %s4901_s18, 3  ;;  %v667_v16 = vlaneseq  ;;  %v3931_v25 = vmov 0.0   ;;  %vm863_vm2 = vcmask 261120  }
  0x11   : > { %3692 = vset.pattern.permute.xlu2 %v3927_v1  ;;  %s4056_s3 = scalar_lea.vmem %s4894_s25, %s3402_s22  ;;  %s4896_s18 = sld [smem:[#allocation5_spill]] }
  0x12   : > { %s4061_s29 = scalar_lea.vmem %s4895_s28, %s3400_s2  ;;  %v1008_v2 = vld [vmem:[%s4056_s3] sm:$0xff]  ;;  %v1009_v7 = vld [vmem:[%s4056_s3 + $0x8] sm:$0xff]  ;;  %v1010_v11 = vld [vmem:[%s4056_s3 + $0x10] sm:$0xff]  ;;  %v4085_v20 = vand.u32 127, %v667_v16  ;;  %s3934_s2 = smov 96  }
  0x13   : > { %v634_v3 = vld [vmem:[%s4061_s29] sm:$0xff]  ;;  %v636_v4 = vld [vmem:[%s4061_s29 + $0x10] sm:$0xff]  ;;  %1013 = vperm.xlu2 %3692, %v1008_v2   ;;  %v635_v5 = vld [vmem:[%s4061_s29 + $0x8] sm:$0xff]  ;;  %s4903_s21 = smov (!%p622_p5, %s4044_s21), 1 }
  0x14   : > { %670 = vperm.xlu0 %3690, %v634_v3   ;;  %676 = vperm.xlu1 %3691, %v636_v4   ;;  %v637_v6 = vld [vmem:[%s4061_s29 + $0x18] sm:$0xff]  ;;  %v3647_v19 = vld [vmem:[%s4897_s24 + $0x8] sm:$0xff]  ;;  %v3646_v22 = vld [vmem:[%s4897_s24] sm:$0xff] }
  0x15   : > { %v1011_v12 = vld [vmem:[%s4056_s3 + $0x18] sm:$0xff]  ;;  %1138 = vmatpush.bf16.msra.mxu1 %v3647_v19  ;;  %v3650_v19 = vld [vmem:[%s4872_s4] sm:$0xff]  ;;  %s3932_s3 = smov 64  }
  0x17   : > { %v3645_v13 = vld [vmem:[%s4896_s18 + $0x8] sm:$0xff]  ;;  %v3644_v14 = vld [vmem:[%s4896_s18] sm:$0xff] }
  0x18   : > { %921 = vmatpush.bf16.msra.mxu0 %v3645_v13  ;;  %3672 = vmatpush.bf16.msra.mxu2 %v3645_v13 }
  0x19   : > { %1139 = vmatpush.bf16.msra.mxu1 %v3646_v22 }
  0x1b   : > { %1016 = vperm.xlu2 %3692, %v1009_v7  }
  0x1c   : > { %673 = vperm.xlu0 %3690, %v635_v5   ;;  %679 = vperm.xlu1 %3691, %v637_v6  }
  0x1d   : > { %922 = vmatpush.bf16.msra.mxu0 %v3644_v14  ;;  %3673 = vmatpush.bf16.msra.mxu2 %v3644_v14 }
  0x23   : > { %3695 = vset.pattern.permute.xlu2 %v3928_v8 }
  0x24   : > { %3694 = vset.pattern.permute.xlu1 %v3929_v9  ;;  %3693 = vset.pattern.permute.xlu0 %v3929_v9 }
  0x25   : > { %1040 = vperm.xlu1 %3694, %v1009_v7   ;;  %1037 = vperm.xlu0 %3693, %v1008_v2  }
  0x26   : > { %1061 = vperm.xlu2 %3695, %v1008_v2  }
  0x2d   : > { %3696 = vset.pattern.permute.xlu1 %v3928_v8  ;;  %3698 = vset.pattern.permute.xlu0 %v3930_v10 }
  0x2e   : > { %1064 = vperm.xlu1 %3696, %v1009_v7   ;;  %1088 = vperm.xlu0 %3698, %v1009_v7  }
  0x2f   : > { %3697 = vset.pattern.permute.xlu2 %v3930_v10 }
  0x30   : > { %1085 = vperm.xlu2 %3697, %v1008_v2  }
  0x36   : > { %3699 = vset.pattern.permute.xlu1 %v3927_v1  ;;  %3703 = vset.pattern.permute.xlu0 %v3928_v8 }
  0x37   : > { %1019 = vperm.xlu1 %3699, %v1010_v11   ;;  %1067 = vperm.xlu0 %3703, %v1010_v11  }
  0x38   : > { %3700 = vset.pattern.permute.xlu2 %v3927_v1 }
  0x39   : > { %1022 = vperm.xlu2 %3700, %v1011_v12  }
  0x3f   : > { %3701 = vset.pattern.permute.xlu1 %v3929_v9  ;;  %3708 = vset.pattern.permute.xlu0 %v3927_v1 }
  0x40   : > { %1043 = vperm.xlu1 %3701, %v1010_v11  }
  0x41   : > { %3702 = vset.pattern.permute.xlu2 %v3929_v9 }
  0x42   : > { %1046 = vperm.xlu2 %3702, %v1011_v12  }
  0x48   : > { %3704 = vset.pattern.permute.xlu1 %v3928_v8 }
  0x49   : > { %1070 = vperm.xlu1 %3704, %v1011_v12  }
  0x4a   : > { %3705 = vset.pattern.permute.xlu2 %v3930_v10 }
  0x4b   : > { %1091 = vperm.xlu2 %3705, %v1010_v11  }
  0x51   : > { %3706 = vset.pattern.permute.xlu1 %v3930_v10 }
  0x52   : > { %1094 = vperm.xlu1 %3706, %v1011_v12  }
  0x53   : > { %3707 = vset.pattern.permute.xlu2 %v3927_v1 }
  0x5a   : > { %3709 = vset.pattern.permute.xlu1 %v3927_v1 }
  0x6d   : > { %v1014_v15 = vpop.permute.xlu2 %1013 }
  0x6e   : > { %vm1024_vm3 = vcmp.eq.s32.totalorder %v4085_v20, %v1014_v15 }
  0x6f   : > { %v1028_v30 = vsel %vm1024_vm3, 1.0, %v3931_v25 }
  0x75   : > { %v1017_v21 = vpop.permute.xlu2 %1016 }
  0x76   : > { %vm1025_vm6 = vcmp.eq.s32.totalorder %v4085_v20, %v1017_v21  ;;  %v4149_v21 = vld [vmem:[%s4873_s5] sm:$0xff] }
  0x77   : > { %v1029_v37 = vsel %vm1025_vm6, 1.0, %v3931_v25 }
  0x80   : > { %v1062_v29 = vpop.permute.xlu2 %1061 }
  0x81   : > { %vm1072_vm4 = vcmp.eq.s32.totalorder %v4085_v20, %v1062_v29 }
  0x82   : > { %v1076_v34 = vsel %vm1072_vm4, 1.0, %v3931_v25 }
  0x86   : > { %v671_v17 = vpop.permute.xlu0 %670  ;;  %v677_v18 = vpop.permute.xlu1 %676 }
  0x87   : > { %vm768_vm0 = vcmp.eq.s32.totalorder %v4085_v20, %v671_v17  ;;  %vm770_vm8 = vcmp.eq.s32.totalorder %v4085_v20, %v677_v18  ;;  %v4137_v17 = vld [vmem:[%s4873_s5 + $0x8] sm:$0xff] }
  0x88   : > { %v801_v26 = vsel %vm768_vm0, 1.0, %v3931_v25  ;;  %v803_v40 = vsel %vm770_vm8, 1.0, %v3931_v25  ;;  %v3651_v18 = vld [vmem:[%s4872_s4 + $0x8] sm:$0xff]  ;;  %1400 = vmatpush.bf16.msrb.mxu1 %v4137_v17 }
  0x89   : > { %1292 = vmatpush.bf16.msra.mxu3 %v3651_v18 }
  0x8a   : > { %v1086_v36 = vpop.permute.xlu2 %1085 }
  0x8b   : > { %vm1096_vm10 = vcmp.eq.s32.totalorder %v4085_v20, %v1086_v36 }
  0x8c   : > { %v1100_v42 = vsel %vm1096_vm10, 1.0, %v3931_v25  ;;  %1401 = vmatpush.bf16.msrb.mxu1 %v4149_v21 }
  0x8d   : > { %1293 = vmatpush.bf16.msra.mxu3 %v3650_v19 }
  0x8e   : > { %v674_v23 = vpop.permute.xlu0 %673  ;;  %v680_v24 = vpop.permute.xlu1 %679 }
  0x8f   : > { %vm769_vm1 = vcmp.eq.s32.totalorder %v4085_v20, %v674_v23  ;;  %vm771_vm9 = vcmp.eq.s32.totalorder %v4085_v20, %v680_v24 }
  0x90   : > { %v802_v27 = vsel %vm769_vm1, 1.0, %v3931_v25  ;;  %v804_v41 = vsel %vm771_vm9, 1.0, %v3931_v25 }
  0x91   : > { %v834_v28 = vpack.c.bf16 %v802_v27, %v801_v26  ;;  %v835_v46 = vpack.c.bf16 %v804_v41, %v803_v40 }
  0x93   : > { %3411 = vmatmul.msk.bf16.vlgmr.msra.gmra.mxu0 %vm863_vm2, %v834_v28  ;;  %v1023_v53 = vpop.permute.xlu2 %1022 }
  0x94   : > { %vm1027_vm15 = vcmp.eq.s32.totalorder %v4085_v20, %v1023_v53 }
  0x95   : > { %v1031_v2 = vsel %vm1027_vm15, 1.0, %v3931_v25 }
  0x97   : > { %v1041_v31 = vpop.permute.xlu1 %1040  ;;  %v1038_v32 = vpop.permute.xlu0 %1037 }
  0x98   : > { %vm1048_vm5 = vcmp.eq.s32.totalorder %v4085_v20, %v1038_v32  ;;  %vm1049_vm7 = vcmp.eq.s32.totalorder %v4085_v20, %v1041_v31 }
  0x99   : > { %v1052_v33 = vsel %vm1048_vm5, 1.0, %v3931_v25  ;;  %v1053_v38 = vsel %vm1049_vm7, 1.0, %v3931_v25 }
  0x9a   : > { %v1056_v35 = vadd.f32 %v1052_v33, %v1028_v30  ;;  %v1057_v43 = vadd.f32 %v1053_v38, %v1029_v37  ;;  %v639_v33 = vld [vmem:[%s4061_s29 + $0x28] sm:$0xff]  ;;  %v638_v38 = vld [vmem:[%s4061_s29 + $0x20] sm:$0xff] }
  0x9b   : > { %685 = vperm.xlu0 %3708, %v639_v33   ;;  %682 = vperm.xlu2 %3707, %v638_v38   ;;  %v640_v33 = vld [vmem:[%s4061_s29 + $0x30] sm:$0xff] }
  0x9c   : > { %v1080_v39 = vadd.f32 %v1076_v34, %v1056_v35  ;;  %v1047_v57 = vpop.permute.xlu2 %1046  ;;  %v4172_v34 = vld [vmem:[%s4874_s6] ss:$0 sm:$0xff] }
  0x9d   : > { %vm1051_vm0 = vcmp.eq.s32.totalorder %v4085_v20, %v1047_v57 }
  0x9e   : > { %v1104_v47 = vadd.f32 %v1100_v42, %v1080_v39  ;;  %v1055_v3 = vsel %vm1051_vm0, 1.0, %v3931_v25 }
  0x9f   : > { %v1059_v5 = vadd.f32 %v1055_v3, %v1031_v2 }
  0xa0   : > { %v1065_v44 = vpop.permute.xlu1 %1064  ;;  %v1089_v45 = vpop.permute.xlu0 %1088  ;;  %v1108_v51 = vmul.f32 0.25, %v1104_v47 }
  0xa1   : > { %vm1073_vm11 = vcmp.eq.s32.totalorder %v4085_v20, %v1065_v44  ;;  %vm1097_vm12 = vcmp.eq.s32.totalorder %v4085_v20, %v1089_v45 }
  0xa2   : > { %v1077_v48 = vsel %vm1073_vm11, 1.0, %v3931_v25  ;;  %v1101_v49 = vsel %vm1097_vm12, 1.0, %v3931_v25 }
  0xa3   : > { %3412 = vmatmul.msk.bf16.gmra.mxu0 %vm863_vm2, %v835_v46  ;;  %v1081_v50 = vadd.f32 %v1077_v48, %v1057_v43 }
  0xa5   : > { %v1105_v52 = vadd.f32 %v1101_v49, %v1081_v50  ;;  %v1092_v62 = vpop.permute.xlu2 %1091 }
  0xa6   : > { %vm1098_vm4 = vcmp.eq.s32.totalorder %v4085_v20, %v1092_v62 }
  0xa7   : > { %v1109_v54 = vmul.f32 0.25, %v1105_v52  ;;  %v1102_v8 = vsel %vm1098_vm4, 1.0, %v3931_v25 }
  0xa9   : > { %v1020_v55 = vpop.permute.xlu1 %1019  ;;  %v1112_v56 = vpack.c.bf16 %v1109_v54, %v1108_v51  ;;  %v1068_v59 = vpop.permute.xlu0 %1067 }
  0xaa   : > { %vm1026_vm13 = vcmp.eq.s32.totalorder %v4085_v20, %v1020_v55  ;;  %vm1074_vm1 = vcmp.eq.s32.totalorder %v4085_v20, %v1068_v59 }
  0xab   : > { %3436 = vmatmul.msk.bf16.vlgmr.msra.gmra.mxu1 %vm863_vm2, %v1112_v56  ;;  %v1030_v60 = vsel %vm1026_vm13, 1.0, %v3931_v25  ;;  %v1078_v4 = vsel %vm1074_vm1, 1.0, %v3931_v25 }
  0xac   : > { %1778 = vmatpush.bf16.msra.mxu1 %v4137_v17 }
  0xb0   : > { %1779 = vmatpush.bf16.msra.mxu1 %v4149_v21 }
  0xb2   : > { %v1044_v58 = vpop.permute.xlu1 %1043 }
  0xb3   : > { %vm1050_vm14 = vcmp.eq.s32.totalorder %v4085_v20, %v1044_v58 }
  0xb4   : > { %v1054_v61 = vsel %vm1050_vm14, 1.0, %v3931_v25 }
  0xb5   : > { %v1058_v63 = vadd.f32 %v1054_v61, %v1030_v60 }
  0xb7   : > { %v1082_v6 = vadd.f32 %v1078_v4, %v1058_v63 }
  0xb9   : > { %v1106_v10 = vadd.f32 %v1102_v8, %v1082_v6 }
  0xbb   : > { %v1071_v0 = vpop.permute.xlu1 %1070  ;;  %v1110_v13 = vmul.f32 0.25, %v1106_v10 }
  0xbc   : > { %vm1075_vm3 = vcmp.eq.s32.totalorder %v4085_v20, %v1071_v0 }
  0xbd   : > { %v1079_v7 = vsel %vm1075_vm3, 1.0, %v3931_v25 }
  0xbe   : > { %v1083_v9 = vadd.f32 %v1079_v7, %v1059_v5 }
  0xc4   : > { %v1095_v11 = vpop.permute.xlu1 %1094 }
  0xc5   : > { %vm1099_vm5 = vcmp.eq.s32.totalorder %v4085_v20, %v1095_v11 }
  0xc6   : > { %v1103_v12 = vsel %vm1099_vm5, 1.0, %v3931_v25 }
  0xc7   : > { %v1107_v14 = vadd.f32 %v1103_v12, %v1083_v9 }
  0xc9   : > { %v1111_v15 = vmul.f32 0.25, %v1107_v14 }
  0xcb   : > { %v1113_v16 = vpack.c.bf16 %v1111_v15, %v1110_v13 }
  0xcd   : > { %3437 = vmatmul.msk.bf16.gmra.mxu1 %vm863_vm2, %v1113_v16 }
  0xdd   : > { %1402 = vmatmul.bf16.vlgmr.msrb.gmra.mxu1 %v3927_v1 }
  0xde   : > { %2156 = vmatpush.bf16.msrb.mxu1 %v4137_v17 }
  0xe2   : > { %2157 = vmatpush.bf16.msrb.mxu1 %v4149_v21 }
  0xed   : > { %1407 = vmatmul.bf16.gmra.mxu1 %v3927_v1 }
 0x110   : > { %v924_v22 = vpop.f32.mrf.mxu0 }
 0x118   : > { %v926_v23 = vpop.f32.mrf.mxu0 }
 0x119   : > { %v1202_v24 = vpack.c.bf16 %v926_v23, %v924_v22 }
 0x11b   : > { %3456 = vmatmul.msk.bf16.vlgmr.msra.gmra.mxu3 %vm863_vm2, %v1202_v24 }
 0x120   : > { %v929_v26 = vpop.f32.mrf.mxu0 }
 0x128   : > { %v931_v27 = vpop.f32.mrf.mxu0  ;;  %v4160_v29 = vpop.f32.mrf.mxu1 }
 0x129   : > { %v1203_v28 = vpack.c.bf16 %v931_v27, %v929_v26 }
 0x12b   : > { %3457 = vmatmul.msk.bf16.gmra.mxu3 %vm863_vm2, %v1203_v28 }
 0x130   : > { %v4162_v30 = vpop.f32.mrf.mxu1 }
 0x14a   : > { %v4164_v31 = vpop.f32.mrf.mxu1 }
 0x152   : > { %v4166_v32 = vpop.f32.mrf.mxu1 }
 0x15a   : > { %v1403_v1 = vpop.f32.mrf.mxu1 }
 0x162   : > { %v1405_v40 = vpop.f32.mrf.mxu1 }
 0x16a   : > { %v1408_v47 = vpop.f32.mrf.mxu1 }
 0x172   : > { %v1410_v59 = vpop.f32.mrf.mxu1 }
 0x19e   : > { %v1295_v35 = vpop.f32.mrf.mxu3 }
 0x19f   : > { %v1296_v36 = vadd.f32 %v4172_v34, %v1295_v35 }
 0x1a1   : > { %v1413_v37 = vadd.f32 %v1403_v1, %v1296_v36 }
 0x1a3   : > { %v3480_v39 = vmul.f32 -1.442695, %v1413_v37 }
 0x1a5   : > { %3716 = vpow2.f32 %v3480_v39 }
 0x1a6   : > { %v1297_v41 = vpop.f32.mrf.mxu3 }
 0x1a7   : > { %v1298_v42 = vadd.f32 %v4172_v34, %v1297_v41 }
 0x1a9   : > { %v1414_v43 = vadd.f32 %v1405_v40, %v1298_v42 }
 0x1ab   : > { %v3717_v44 = vpop.eup %3716  ;;  %v3481_v45 = vmul.f32 -1.442695, %v1414_v43 }
 0x1ac   : > { %v1429_v46 = vadd.f32 1.0, %v3717_v44 }
 0x1ad   : > { %3718 = vpow2.f32 %v3481_v45 }
 0x1ae   : > { %3720 = vrcp.f32 %v1429_v46  ;;  %v1300_v48 = vpop.f32.mrf.mxu3  ;;  %v1444_v60 = vand.u32 2147483648, %v1429_v46  ;;  %v1442_v63 = vand.u32 2147483647, %v1429_v46  ;;  %vm1438_vm7 = vweird.f32 %v1429_v46 }
 0x1af   : > { %v1301_v49 = vadd.f32 %v4172_v34, %v1300_v48  ;;  %v641_v48 = vld [vmem:[%s4061_s29 + $0x38] sm:$0xff] }
 0x1b0   : > { %v1445_v6 = vor.u32 1.1754944e-38, %v1444_v60  ;;  %vm1443_vm9 = vcmp.eq.f32.partialorder %v1442_v63, 8.507059e+37  ;;  %v686_v60 = vpop.permute.xlu0 %685 }
 0x1b1   : > { %v1415_v50 = vadd.f32 %v1408_v47, %v1301_v49 }
 0x1b3   : > { %v3719_v51 = vpop.eup %3718  ;;  %v3482_v52 = vmul.f32 -1.442695, %v1415_v50 }
 0x1b4   : > { %v3721_v53 = vpop.eup %3720  ;;  %v1430_v54 = vadd.f32 1.0, %v3719_v51 }
 0x1b5   : > { %v1434_v55 = vmul.f32 %v3721_v53, %v1429_v46  ;;  %3722 = vpow2.f32 %v3482_v52  ;;  %vm1439_vm6 = vweird.f32 %v3721_v53 }
 0x1b6   : > { %3724 = vrcp.f32 %v1430_v54  ;;  %v1302_v56 = vpop.f32.mrf.mxu3  ;;  %vm1440_vm8 = vmor %vm1438_vm7, %vm1439_vm6  ;;  %v1459_v12 = vand.u32 2147483648, %v1430_v54  ;;  %v1457_v15 = vand.u32 2147483647, %v1430_v54  ;;  %vm1453_vm11 = vweird.f32 %v1430_v54 }
 0x1b7   : > { %v1435_v57 = vsub.f32 1.0, %v1434_v55  ;;  %v1303_v58 = vadd.f32 %v4172_v34, %v1302_v56 }
 0x1b8   : > { %v1460_v23 = vor.u32 1.1754944e-38, %v1459_v12  ;;  %vm1458_vm13 = vcmp.eq.f32.partialorder %v1457_v15, 8.507059e+37  ;;  %v3649_v15 = vld [vmem:[%s4875_s7 + $0x8] sm:$0xff] }
 0x1b9   : > { %v1416_v61 = vadd.f32 %v1410_v59, %v1303_v58  ;;  %v1436_v62 = vmul.f32 %v3721_v53, %v1435_v57  ;;  %v683_v58 = vpop.permute.xlu2 %682  ;;  %1185 = vmatpush.bf16.msrb.mxu2 %v3649_v15 }
 0x1ba   : > { %vm772_vm7 = vcmp.eq.s32.totalorder %v4085_v20, %v683_v58 }
 0x1bb   : > { %v3723_v0 = vpop.eup %3722  ;;  %v3483_v2 = vmul.f32 -1.442695, %v1416_v61  ;;  %v1437_v3 = vadd.f32 %v3721_v53, %v1436_v62  ;;  %v805_v59 = vsel %vm772_vm7, 1.0, %v3931_v25 }
 0x1bc   : > { %v3725_v4 = vpop.eup %3724  ;;  %v1431_v5 = vadd.f32 1.0, %v3723_v0 }
 0x1bd   : > { %v1449_v7 = vmul.f32 %v3725_v4, %v1430_v54  ;;  %3726 = vpow2.f32 %v3483_v2  ;;  %v1441_v8 = vsel %vm1440_vm8, %v3721_v53, %v1437_v3  ;;  %vm1454_vm10 = vweird.f32 %v3725_v4  ;;  %v666_v2 = vld [vmem:[%s4061_s29 + $0x100] sm:$0xff] }
 0x1be   : > { %3728 = vrcp.f32 %v1431_v5  ;;  %v4179_v9 = vsel %vm1443_vm9, %v1445_v6, %v1441_v8  ;;  %vm1455_vm12 = vmor %vm1453_vm11, %vm1454_vm10  ;;  %v1474_v35 = vand.u32 2147483648, %v1431_v5  ;;  %v1472_v38 = vand.u32 2147483647, %v1431_v5 }
 0x1bf   : > { %v1493_v10 = vmul.f32 2.0, %v4179_v9  ;;  %v1450_v11 = vsub.f32 1.0, %v1449_v7  ;;  %vm1468_vm15 = vweird.f32 %v1431_v5  ;;  %vm773_vm8 = vcmp.eq.s32.totalorder %v4085_v20, %v686_v60  ;;  %v643_v60 = vld [vmem:[%s4061_s29 + $0x48] sm:$0xff] }
 0x1c0   : > { %v1475_v41 = vor.u32 1.1754944e-38, %v1474_v35  ;;  %vm1473_vm1 = vcmp.eq.f32.partialorder %v1472_v38, 8.507059e+37  ;;  %v806_v61 = vsel %vm773_vm8, 1.0, %v3931_v25 }
 0x1c1   : > { %v3484_v13 = vadd.f32 -1.0, %v1493_v10  ;;  %v1451_v14 = vmul.f32 %v3725_v4, %v1450_v11  ;;  %v836_v62 = vpack.c.bf16 %v806_v61, %v805_v59 }
 0x1c3   : > { %v3727_v16 = vpop.eup %3726  ;;  %1509 = vrot.lane.b32.xlu1 %v3484_v13, %s3932_s3  ;;  %v1452_v18 = vadd.f32 %v3725_v4, %v1451_v14  ;;  %3413 = vmatmul.msk.bf16.gmra.mxu0 %vm863_vm2, %v836_v62 }
 0x1c4   : > { %v3729_v19 = vpop.eup %3728  ;;  %v1432_v22 = vadd.f32 1.0, %v3727_v16 }
 0x1c5   : > { %v1464_v24 = vmul.f32 %v3729_v19, %v1431_v5  ;;  %v1456_v26 = vsel %vm1455_vm12, %v3725_v4, %v1452_v18  ;;  %vm1469_vm14 = vweird.f32 %v3729_v19  ;;  %v3648_v18 = vld [vmem:[%s4875_s7] sm:$0xff] }
 0x1c6   : > { %3730 = vrcp.f32 %v1432_v22  ;;  %v4183_v27 = vsel %vm1458_vm13, %v1460_v23, %v1456_v26  ;;  %vm1470_vm0 = vmor %vm1468_vm15, %vm1469_vm14  ;;  %v1489_v47 = vand.u32 2147483648, %v1432_v22  ;;  %v1487_v51 = vand.u32 2147483647, %v1432_v22  ;;  %1186 = vmatpush.bf16.msrb.mxu2 %v3648_v18 }
 0x1c7   : > { %v1465_v28 = vsub.f32 1.0, %v1464_v24  ;;  %v1494_v1 = vmul.f32 2.0, %v4183_v27  ;;  %vm1483_vm4 = vweird.f32 %v1432_v22 }
 0x1c8   : > { %v1490_v53 = vor.u32 1.1754944e-38, %v1489_v47  ;;  %vm1488_vm6 = vcmp.eq.f32.partialorder %v1487_v51, 8.507059e+37  ;;  %v642_v47 = vld [vmem:[%s4061_s29 + $0x40] sm:$0xff]  ;;  %v645_v51 = vld [vmem:[%s4061_s29 + $0x58] sm:$0xff] }
 0x1c9   : > { %v3485_v36 = vadd.f32 -1.0, %v1494_v1  ;;  %v1466_v37 = vmul.f32 %v3729_v19, %v1465_v28  ;;  %v1502_v28 = vmul.f32 0.0, %v4183_v27 }
 0x1cb   : > { %1511 = vrot.lane.b32.xlu2 %v3485_v36, %s3932_s3  ;;  %688 = vperm.xlu1 %3709, %v640_v33   ;;  %v1467_v39 = vadd.f32 %v3729_v19, %v1466_v37 }
 0x1cc   : > { %v3731_v40 = vpop.eup %3730 }
 0x1cd   : > { %v1479_v42 = vmul.f32 %v3731_v40, %v1432_v22  ;;  %v1471_v43 = vsel %vm1470_vm0, %v3729_v19, %v1467_v39  ;;  %vm1484_vm3 = vweird.f32 %v3731_v40  ;;  %v1501_v19 = vmul.f32 0.0, %v4179_v9 }
 0x1ce   : > { %v4188_v44 = vsel %vm1473_vm1, %v1475_v41, %v1471_v43  ;;  %vm1485_vm5 = vmor %vm1483_vm4, %vm1484_vm3 }
 0x1cf   : > { %v1495_v45 = vmul.f32 2.0, %v4188_v44  ;;  %v1480_v46 = vsub.f32 1.0, %v1479_v42 }
 0x1d1   : > { %v3486_v49 = vadd.f32 -1.0, %v1495_v45  ;;  %v1481_v50 = vmul.f32 %v3731_v40, %v1480_v46  ;;  %v1151_v45 = vpack.c.bf16 %v4162_v30, %v4160_v29  ;;  %v1503_v46 = vmul.f32 0.0, %v4188_v44 }
 0x1d2   : > { %v1152_v29 = vpack.c.bf16 %v4166_v32, %v4164_v31 }
 0x1d3   : > { %1513 = vrot.lane.b32.xlu0 %v3486_v49, %s3932_s3  ;;  %v1482_v52 = vadd.f32 %v3731_v40, %v1481_v50  ;;  %691 = vperm.xlu2 %3707, %v641_v48  }
 0x1d5   : > { %v1486_v54 = vsel %vm1485_vm5, %v3731_v40, %v1482_v52 }
 0x1d6   : > { %v4193_v55 = vsel %vm1488_vm6, %v1490_v53, %v1486_v54 }
 0x1d7   : > { %v1496_v56 = vmul.f32 2.0, %v4193_v55  ;;  %v1504_v40 = vmul.f32 0.0, %v4193_v55 }
 0x1d9   : > { %v3487_v57 = vadd.f32 -1.0, %v1496_v56 }
 0x1db   : > { %1515 = vrot.lane.b32.xlu1 %v3487_v57, %s3932_s3 }
 0x225   : > { %v1512_v63 = vpop.permute.xlu2 %1511 }
 0x226   : > { %v1522_v0 = vmul.f32 %v1512_v63, %v4183_v27 }
 0x228   : > { %1531 = vrot.lane.b32.xlu0 %v1522_v0, %s3933_s26 }
 0x22d   : > { %v692_v5 = vpop.permute.xlu2 %691 }
 0x22e   : > { %vm775_vm9 = vcmp.eq.s32.totalorder %v4085_v20, %v692_v5 }
 0x22f   : > { %v808_v7 = vsel %vm775_vm9, 1.0, %v3931_v25 }
 0x230   : > { %766 = vperm.xlu0 %3708, %v666_v2  }
 0x235   : > { %v1510_v3 = vpop.permute.xlu1 %1509 }
 0x236   : > { %v1521_v4 = vmul.f32 %v1510_v3, %v4179_v9 }
 0x238   : > { %1529 = vrot.lane.b32.xlu2 %v1521_v4, %s3933_s26  ;;  %v3711_v4 = vld [vmem:[%s4876_s8] ss:$0 sm:$0xff] }
 0x23d   : > { %v689_v6 = vpop.permute.xlu1 %688 }
 0x23e   : > { %vm774_vm10 = vcmp.eq.s32.totalorder %v4085_v20, %v689_v6 }
 0x23f   : > { %v807_v8 = vsel %vm774_vm10, 1.0, %v3931_v25 }
 0x240   : > { %v837_v10 = vpack.c.bf16 %v808_v7, %v807_v8  ;;  %v934_v16 = vpop.f32.mrf.mxu0 }
 0x242   : > { %3414 = vmatmul.msk.bf16.gmra.mxu0 %vm863_vm2, %v837_v10 }
 0x245   : > { %v1514_v11 = vpop.permute.xlu0 %1513 }
 0x246   : > { %v1523_v12 = vmul.f32 %v1514_v11, %v4188_v44 }
 0x248   : > { %1533 = vrot.lane.b32.xlu1 %v1523_v12, %s3933_s26  ;;  %v936_v24 = vpop.f32.mrf.mxu0 }
 0x249   : > { %v1204_v26 = vpack.c.bf16 %v936_v24, %v934_v16 }
 0x24b   : > { %3458 = vmatmul.msk.bf16.gmra.mxu3 %vm863_vm2, %v1204_v26 }
 0x24d   : > { %v1516_v13 = vpop.permute.xlu1 %1515 }
 0x24e   : > { %v1524_v14 = vmul.f32 %v1516_v13, %v4193_v55 }
 0x250   : > { %1535 = vrot.lane.b32.xlu2 %v1524_v14, %s3933_s26 }
 0x292   : > { %v1530_v22 = vpop.permute.xlu2 %1529 }
 0x293   : > { %v4223_v23 = vadd.f32 %v1530_v22, %v1501_v19 }
 0x295   : > { %3732 = vtanh.f32 %v4223_v23 }
 0x29a   : > { %v1532_v1 = vpop.permute.xlu0 %1531 }
 0x29b   : > { %v3733_v33 = vpop.eup %3732  ;;  %v4228_v35 = vadd.f32 %v1532_v1, %v1502_v28 }
 0x29c   : > { %1553 = vrot.lane.b32.xlu1 %v3733_v33, %s3932_s3 }
 0x29d   : > { %3734 = vtanh.f32 %v4228_v35 }
 0x2a2   : > { %v767_v36 = vpop.permute.xlu0 %766 }
 0x2a3   : > { %v3735_v37 = vpop.eup %3734  ;;  %vm800_vm11 = vcmp.eq.s32.totalorder %v4085_v20, %v767_v36 }
 0x2a4   : > { %v833_v38 = vsel %vm800_vm11, 1.0, %v3931_v25  ;;  %1555 = vrot.lane.b32.xlu2 %v3735_v37, %s3932_s3 }
 0x2a5   : > { %v850_v39 = vpack.c.bf16 %v833_v38, %v833_v38 }
 0x2a7   : > { %3427 = vmatmul.msk.bf16.vlgmr.msra.gmra.mxu2 %vm863_vm2, %v850_v39 }
 0x2a8   : > { %1589 = vmatpush.bf16.msra.mxu2 %v4137_v17 }
 0x2aa   : > { %v1536_v41 = vpop.permute.xlu2 %1535 }
 0x2ab   : > { %v4238_v42 = vadd.f32 %v1536_v41, %v1504_v40 }
 0x2ac   : > { %1590 = vmatpush.bf16.msra.mxu2 %v4149_v21 }
 0x2ad   : > { %3736 = vtanh.f32 %v4238_v42 }
 0x2b3   : > { %v3737_v43 = vpop.eup %3736 }
 0x2b4   : > { %1559 = vrot.lane.b32.xlu1 %v3737_v43, %s3932_s3 }
 0x2b7   : > { %3446 = vmatmul.msk.bf16.vlgmr.msrb.gmra.mxu2 %vm863_vm2, %v1151_v45 }
 0x2b8   : > { %1967 = vmatpush.bf16.msrb.mxu2 %v4137_v17 }
 0x2ba   : > { %v1534_v48 = vpop.permute.xlu1 %1533 }
 0x2bb   : > { %v4249_v49 = vadd.f32 %v1534_v48, %v1503_v46 }
 0x2bc   : > { %694 = vperm.xlu1 %3709, %v642_v47   ;;  %1968 = vmatpush.bf16.msrb.mxu2 %v4149_v21 }
 0x2bd   : > { %3738 = vtanh.f32 %v4249_v49 }
 0x2bf   : > { %v939_v50 = vpop.f32.mrf.mxu0 }
 0x2c3   : > { %v3739_v52 = vpop.eup %3738 }
 0x2c4   : > { %703 = vperm.xlu1 %3709, %v645_v51   ;;  %1557 = vrot.lane.b32.xlu0 %v3739_v52, %s3932_s3 }
 0x2c7   : > { %3447 = vmatmul.msk.bf16.gmra.mxu2 %vm863_vm2, %v1152_v29  ;;  %v941_v30 = vpop.f32.mrf.mxu0 }
 0x2c8   : > { %v1205_v53 = vpack.c.bf16 %v941_v30, %v939_v50 }
 0x2ca   : > { %3459 = vmatmul.msk.bf16.gmra.mxu3 %vm863_vm2, %v1205_v53 }
 0x2ce   : > { %v1305_v22 = vpop.f32.mrf.mxu3 }
 0x2cf   : > { %v1306_v24 = vadd.f32 %v4172_v34, %v1305_v22 }
 0x2d6   : > { %v1307_v33 = vpop.f32.mrf.mxu3 }
 0x2d7   : > { %v1308_v37 = vadd.f32 %v4172_v34, %v1307_v33 }
 0x2fe   : > { %v1556_v54 = vpop.permute.xlu2 %1555 }
 0x2ff   : > { %v1566_v57 = vmul.f32 %v1556_v54, %v4183_v27 }
 0x30e   : > { %v1554_v56 = vpop.permute.xlu1 %1553 }
 0x30f   : > { %v1565_v58 = vmul.f32 %v1554_v56, %v4179_v9  ;;  %v644_v9 = vld [vmem:[%s4061_s29 + $0x50] sm:$0xff] }
 0x311   : > { %v1569_v59 = vpack.c.bf16 %v1566_v57, %v1565_v58 }
 0x313   : > { %1573 = vrot.lane.b32.xlu2 %v1569_v59, %s3933_s26 }
 0x31b   : > { %697 = vperm.xlu2 %3707, %v643_v60  }
 0x326   : > { %v1560_v32 = vpop.permute.xlu1 %1559 }
 0x327   : > { %v1568_v63 = vmul.f32 %v1560_v32, %v4193_v55 }
 0x32a   : > { %v4263_v61 = vpop.f32.mrf.mxu2 }
 0x332   : > { %v1006_v31 = vpop.f32.mrf.mxu2 }
 0x336   : > { %v1558_v62 = vpop.permute.xlu0 %1557 }
 0x337   : > { %v1567_v0 = vmul.f32 %v1558_v62, %v4188_v44  ;;  %v695_v44 = vpop.permute.xlu1 %694 }
 0x338   : > { %vm776_vm12 = vcmp.eq.s32.totalorder %v4085_v20, %v695_v44 }
 0x339   : > { %v1570_v2 = vpack.c.bf16 %v1568_v63, %v1567_v0  ;;  %v809_v8 = vsel %vm776_vm12, 1.0, %v3931_v25 }
 0x33a   : > { %v4267_v3 = vpop.f32.mrf.mxu2 }
 0x33b   : > { %1575 = vrot.lane.b32.xlu0 %v1570_v2, %s3933_s26 }
 0x33f   : > { %v704_v13 = vpop.permute.xlu1 %703 }
 0x340   : > { %vm779_vm14 = vcmp.eq.s32.totalorder %v4085_v20, %v704_v13 }
 0x341   : > { %v812_v15 = vsel %vm779_vm14, 1.0, %v3931_v25 }
 0x342   : > { %v4271_v27 = vpop.f32.mrf.mxu2 }
 0x343   : > { %700 = vperm.xlu0 %3708, %v644_v9  }
 0x34a   : > { %v1193_v5 = vpop.f32.mrf.mxu2 }
 0x34b   : > { %v4276_v6 = vadd.f32 %v3711_v4, %v1193_v5 }
 0x352   : > { %v4292_v19 = vpop.f32.mrf.mxu2 }
 0x36d   : > { %v1574_v7 = vpop.permute.xlu2 %1573 }
 0x36e   : > { %3488 = vmatmul.msk.bf16.vlgmr.msra.gmra.mxu2 %vm863_vm2, %v1574_v7 }
 0x36f   : > { %2345 = vmatpush.bf16.msra.mxu2 %v4137_v17 }
 0x373   : > { %2346 = vmatpush.bf16.msra.mxu2 %v4149_v21 }
 0x375   : > { %v698_v55 = vpop.permute.xlu2 %697 }
 0x376   : > { %vm777_vm13 = vcmp.eq.s32.totalorder %v4085_v20, %v698_v55 }
 0x377   : > { %v810_v10 = vsel %vm777_vm13, 1.0, %v3931_v25 }
 0x378   : > { %v838_v11 = vpack.c.bf16 %v810_v10, %v809_v8  ;;  %v1310_v8 = vpop.f32.mrf.mxu3 }
 0x379   : > { %v1311_v10 = vadd.f32 %v4172_v34, %v1310_v8 }
 0x37a   : > { %3415 = vmatmul.msk.bf16.gmra.mxu0 %vm863_vm2, %v838_v11 }
 0x3ad   : > { %v1576_v12 = vpop.permute.xlu0 %1575 }
 0x3ae   : > { %3489 = vmatmul.msk.bf16.gmra.mxu2 %vm863_vm2, %v1576_v12 }
 0x3b5   : > { %v701_v14 = vpop.permute.xlu0 %700 }
 0x3b6   : > { %vm778_vm15 = vcmp.eq.s32.totalorder %v4085_v20, %v701_v14  ;;  %v1312_v14 = vpop.f32.mrf.mxu3 }
 0x3b7   : > { %v811_v16 = vsel %vm778_vm15, 1.0, %v3931_v25 }
 0x3b8   : > { %v839_v18 = vpack.c.bf16 %v812_v15, %v811_v16  ;;  %v1313_v16 = vadd.f32 %v4172_v34, %v1312_v14 }
 0x3ba   : > { %3416 = vmatmul.msk.bf16.gmra.mxu0 %vm863_vm2, %v839_v18 }
 0x3f1   : > { %v1592_v26 = vpop.f32.mrf.mxu2 }
 0x3f2   : > { %v1602_v28 = vadd.f32 %v1592_v26, %v1306_v24 }
 0x3f4   : > { %v3490_v1 = vmul.f32 -1.442695, %v1602_v28 }
 0x3f6   : > { %3740 = vpow2.f32 %v3490_v1 }
 0x3f7   : > { %v944_v36 = vpop.f32.mrf.mxu0 }
 0x3f9   : > { %v1594_v38 = vpop.f32.mrf.mxu2 }
 0x3fa   : > { %v1603_v39 = vadd.f32 %v1594_v38, %v1308_v37 }
 0x3fc   : > { %v3741_v40 = vpop.eup %3740  ;;  %v3491_v41 = vmul.f32 -1.442695, %v1603_v39 }
 0x3fd   : > { %v1618_v43 = vadd.f32 1.0, %v3741_v40 }
 0x3fe   : > { %3742 = vpow2.f32 %v3491_v41 }
 0x3ff   : > { %3744 = vrcp.f32 %v1618_v43  ;;  %v946_v45 = vpop.f32.mrf.mxu0  ;;  %v1633_v29 = vand.u32 2147483648, %v1618_v43  ;;  %v1631_v53 = vand.u32 2147483647, %v1618_v43  ;;  %vm1627_vm1 = vweird.f32 %v1618_v43 }
 0x400   : > { %v1206_v46 = vpack.c.bf16 %v946_v45, %v944_v36 }
 0x401   : > { %v1634_v57 = vor.u32 1.1754944e-38, %v1633_v29  ;;  %vm1632_vm4 = vcmp.eq.f32.partialorder %v1631_v53, 8.507059e+37 }
 0x402   : > { %3460 = vmatmul.msk.bf16.gmra.mxu3 %vm863_vm2, %v1206_v46 }
 0x404   : > { %v3743_v47 = vpop.eup %3742 }
 0x405   : > { %v3745_v48 = vpop.eup %3744  ;;  %v1619_v50 = vadd.f32 1.0, %v3743_v47 }
 0x406   : > { %v1623_v51 = vmul.f32 %v3745_v48, %v1618_v43  ;;  %vm1628_vm0 = vweird.f32 %v3745_v48 }
 0x407   : > { %3746 = vrcp.f32 %v1619_v50  ;;  %vm1629_vm3 = vmor %vm1627_vm1, %vm1628_vm0  ;;  %v1648_v62 = vand.u32 2147483648, %v1619_v50  ;;  %v1646_v2 = vand.u32 2147483647, %v1619_v50  ;;  %vm1642_vm6 = vweird.f32 %v1619_v50 }
 0x408   : > { %v1624_v52 = vsub.f32 1.0, %v1623_v51 }
 0x409   : > { %v1649_v4 = vor.u32 1.1754944e-38, %v1648_v62  ;;  %vm1647_vm8 = vcmp.eq.f32.partialorder %v1646_v2, 8.507059e+37 }
 0x40a   : > { %v1625_v30 = vmul.f32 %v3745_v48, %v1624_v52 }
 0x40c   : > { %v1626_v54 = vadd.f32 %v3745_v48, %v1625_v30 }
 0x40d   : > { %v3747_v56 = vpop.eup %3746 }
 0x40e   : > { %v1638_v58 = vmul.f32 %v3747_v56, %v1619_v50  ;;  %v1630_v59 = vsel %vm1629_vm3, %v3745_v48, %v1626_v54  ;;  %vm1643_vm5 = vweird.f32 %v3747_v56 }
 0x40f   : > { %v4297_v60 = vsel %vm1632_vm4, %v1634_v57, %v1630_v59  ;;  %vm1644_vm7 = vmor %vm1642_vm6, %vm1643_vm5 }
 0x410   : > { %v1639_v31 = vsub.f32 1.0, %v1638_v58  ;;  %v1682_v32 = vmul.f32 2.0, %v4297_v60 }
 0x412   : > { %v3494_v63 = vadd.f32 -1.0, %v1682_v32  ;;  %v1640_v0 = vmul.f32 %v3747_v56, %v1639_v31 }
 0x414   : > { %1698 = vrot.lane.b32.xlu2 %v3494_v63, %s3932_s3  ;;  %v1641_v9 = vadd.f32 %v3747_v56, %v1640_v0 }
 0x416   : > { %v1645_v5 = vsel %vm1644_vm7, %v3747_v56, %v1641_v9 }
 0x417   : > { %v4301_v7 = vsel %vm1647_vm8, %v1649_v4, %v1645_v5 }
 0x418   : > { %v1683_v44 = vmul.f32 2.0, %v4301_v7  ;;  %v1691_v14 = vmul.f32 %v4301_v7, %v4228_v35 }
 0x41a   : > { %v3495_v55 = vadd.f32 -1.0, %v1683_v44 }
 0x41c   : > { %1700 = vrot.lane.b32.xlu0 %v3495_v55, %s3932_s3 }
 0x431   : > { %v1597_v11 = vpop.f32.mrf.mxu2 }
 0x432   : > { %v1604_v12 = vadd.f32 %v1597_v11, %v1311_v10  ;;  %v1690_v10 = vmul.f32 %v4297_v60, %v4223_v23 }
 0x434   : > { %v3492_v13 = vmul.f32 -1.442695, %v1604_v12 }
 0x436   : > { %3748 = vpow2.f32 %v3492_v13 }
 0x437   : > { %v949_v15 = vpop.f32.mrf.mxu0 }
 0x439   : > { %v1599_v18 = vpop.f32.mrf.mxu2 }
 0x43a   : > { %v1605_v22 = vadd.f32 %v1599_v18, %v1313_v16 }
 0x43c   : > { %v3749_v24 = vpop.eup %3748  ;;  %v3493_v26 = vmul.f32 -1.442695, %v1605_v22 }
 0x43d   : > { %v1620_v28 = vadd.f32 1.0, %v3749_v24 }
 0x43e   : > { %3750 = vpow2.f32 %v3493_v26 }
 0x43f   : > { %3752 = vrcp.f32 %v1620_v28  ;;  %v951_v1 = vpop.f32.mrf.mxu0  ;;  %v1663_v41 = vand.u32 2147483648, %v1620_v28  ;;  %v1661_v45 = vand.u32 2147483647, %v1620_v28  ;;  %vm1657_vm10 = vweird.f32 %v1620_v28 }
 0x440   : > { %v1207_v33 = vpack.c.bf16 %v951_v1, %v949_v15 }
 0x441   : > { %v1664_v48 = vor.u32 1.1754944e-38, %v1663_v41  ;;  %vm1662_vm12 = vcmp.eq.f32.partialorder %v1661_v45, 8.507059e+37  ;;  %v648_v41 = vld [vmem:[%s4061_s29 + $0x70] sm:$0xff] }
 0x442   : > { %3461 = vmatmul.msk.bf16.gmra.mxu3 %vm863_vm2, %v1207_v33 }
 0x444   : > { %v3751_v36 = vpop.eup %3750 }
 0x445   : > { %v3753_v37 = vpop.eup %3752  ;;  %v1621_v38 = vadd.f32 1.0, %v3751_v36 }
 0x446   : > { %v1653_v39 = vmul.f32 %v3753_v37, %v1620_v28  ;;  %vm1658_vm9 = vweird.f32 %v3753_v37 }
 0x447   : > { %3754 = vrcp.f32 %v1621_v38  ;;  %vm1659_vm11 = vmor %vm1657_vm10, %vm1658_vm9  ;;  %v1678_v53 = vand.u32 2147483648, %v1621_v38  ;;  %v1676_v57 = vand.u32 2147483647, %v1621_v38  ;;  %vm1672_vm14 = vweird.f32 %v1621_v38 }
 0x448   : > { %v1654_v40 = vsub.f32 1.0, %v1653_v39 }
 0x449   : > { %v1679_v59 = vor.u32 1.1754944e-38, %v1678_v53  ;;  %vm1677_vm0 = vcmp.eq.f32.partialorder %v1676_v57, 8.507059e+37 }
 0x44a   : > { %v1655_v43 = vmul.f32 %v3753_v37, %v1654_v40  ;;  %v647_v40 = vld [vmem:[%s4061_s29 + $0x68] sm:$0xff] }
 0x44c   : > { %v1656_v46 = vadd.f32 %v3753_v37, %v1655_v43 }
 0x44d   : > { %v3755_v47 = vpop.eup %3754 }
 0x44e   : > { %v1668_v50 = vmul.f32 %v3755_v47, %v1621_v38  ;;  %v1660_v51 = vsel %vm1659_vm11, %v3753_v37, %v1656_v46  ;;  %vm1673_vm13 = vweird.f32 %v3755_v47 }
 0x44f   : > { %v4308_v52 = vsel %vm1662_vm12, %v1664_v48, %v1660_v51  ;;  %vm1674_vm15 = vmor %vm1672_vm14, %vm1673_vm13 }
 0x450   : > { %v1669_v29 = vsub.f32 1.0, %v1668_v50  ;;  %v1684_v30 = vmul.f32 2.0, %v4308_v52  ;;  %v1692_v23 = vmul.f32 %v4308_v52, %v4249_v49  ;;  %v646_v49 = vld [vmem:[%s4061_s29 + $0x60] sm:$0xff] }
 0x452   : > { %v3496_v54 = vadd.f32 -1.0, %v1684_v30  ;;  %v1670_v56 = vmul.f32 %v3755_v47, %v1669_v29 }
 0x454   : > { %1702 = vrot.lane.b32.xlu1 %v3496_v54, %s3932_s3  ;;  %v1671_v58 = vadd.f32 %v3755_v47, %v1670_v56 }
 0x456   : > { %v1675_v31 = vsel %vm1674_vm15, %v3755_v47, %v1671_v58 }
 0x457   : > { %v1680_v32 = vsel %vm1677_vm0, %v1679_v59, %v1675_v31 }
 0x458   : > { %v1685_v62 = vmul.f32 2.0, %v1680_v32  ;;  %v1693_v26 = vmul.f32 %v1680_v32, %v4238_v42 }
 0x45a   : > { %v3497_v63 = vadd.f32 -1.0, %v1685_v62 }
 0x45c   : > { %1704 = vrot.lane.b32.xlu2 %v3497_v63, %s3932_s3 }
 0x46e   : > { %v1699_v0 = vpop.permute.xlu2 %1698 }
 0x46f   : > { %v1710_v2 = vmul.f32 %v1699_v0, %v4297_v60 }
 0x471   : > { %1718 = vrot.lane.b32.xlu0 %v1710_v2, %s3933_s26 }
 0x485   : > { %v1315_v53 = vpop.f32.mrf.mxu3 }
 0x48d   : > { %v1317_v57 = vpop.f32.mrf.mxu3 }
 0x48e   : > { %v1701_v9 = vpop.permute.xlu0 %1700  ;;  %v1318_v58 = vadd.f32 %v4172_v34, %v1317_v57 }
 0x48f   : > { %v1711_v4 = vmul.f32 %v1701_v9, %v4301_v7 }
 0x491   : > { %1720 = vrot.lane.b32.xlu1 %v1711_v4, %s3933_s26 }
 0x4b6   : > { %v1705_v5 = vpop.permute.xlu2 %1704 }
 0x4b7   : > { %v1713_v44 = vmul.f32 %v1705_v5, %v1680_v32 }
 0x4b9   : > { %1724 = vrot.lane.b32.xlu0 %v1713_v44, %s3933_s26 }
 0x4c6   : > { %v1703_v55 = vpop.permute.xlu1 %1702 }
 0x4c7   : > { %v1712_v8 = vmul.f32 %v1703_v55, %v4308_v52 }
 0x4c9   : > { %1722 = vrot.lane.b32.xlu2 %v1712_v8, %s3933_s26 }
 0x4e3   : > { %v1719_v11 = vpop.permute.xlu0 %1718 }
 0x4e4   : > { %v4322_v12 = vadd.f32 %v1719_v11, %v1690_v10 }
 0x4e6   : > { %3756 = vtanh.f32 %v4322_v12 }
 0x4ec   : > { %v3757_v13 = vpop.eup %3756 }
 0x4ed   : > { %1742 = vrot.lane.b32.xlu1 %v3757_v13, %s3932_s3 }
 0x503   : > { %v1721_v15 = vpop.permute.xlu1 %1720 }
 0x504   : > { %v4328_v16 = vadd.f32 %v1721_v15, %v1691_v14 }
 0x506   : > { %3758 = vtanh.f32 %v4328_v16 }
 0x50c   : > { %v3759_v18 = vpop.eup %3758 }
 0x50d   : > { %1744 = vrot.lane.b32.xlu2 %v3759_v18, %s3932_s3 }
 0x523   : > { %v1723_v22 = vpop.permute.xlu2 %1722 }
 0x524   : > { %v4334_v24 = vadd.f32 %v1723_v22, %v1692_v23 }
 0x526   : > { %3760 = vtanh.f32 %v4334_v24 }
 0x52b   : > { %v1725_v35 = vpop.permute.xlu0 %1724 }
 0x52c   : > { %v3761_v28 = vpop.eup %3760  ;;  %v4338_v1 = vadd.f32 %v1725_v35, %v1693_v26 }
 0x52d   : > { %1746 = vrot.lane.b32.xlu0 %v3761_v28, %s3932_s3 }
 0x52e   : > { %3762 = vtanh.f32 %v4338_v1 }
 0x534   : > { %v3763_v33 = vpop.eup %3762 }
 0x535   : > { %1748 = vrot.lane.b32.xlu1 %v3763_v33, %s3932_s3 }
 0x53d   : > { %706 = vperm.xlu1 %3709, %v646_v49  }
 0x55f   : > { %v1743_v36 = vpop.permute.xlu1 %1742 }
 0x560   : > { %v1754_v38 = vmul.f32 %v1743_v36, %v4297_v60 }
 0x567   : > { %v1745_v37 = vpop.permute.xlu2 %1744 }
 0x568   : > { %v1755_v42 = vmul.f32 %v1745_v37, %v4301_v7 }
 0x56a   : > { %v1758_v39 = vpack.c.bf16 %v1755_v42, %v1754_v38 }
 0x56c   : > { %1762 = vrot.lane.b32.xlu2 %v1758_v39, %s3933_s26 }
 0x574   : > { %709 = vperm.xlu2 %3707, %v647_v40  }
 0x57c   : > { %712 = vperm.xlu2 %3707, %v648_v41  }
 0x59f   : > { %v1747_v43 = vpop.permute.xlu0 %1746 }
 0x5a0   : > { %v1756_v46 = vmul.f32 %v1747_v43, %v4308_v52  ;;  %v649_v43 = vld [vmem:[%s4061_s29 + $0x78] sm:$0xff] }
 0x5a7   : > { %v1749_v45 = vpop.permute.xlu1 %1748 }
 0x5a8   : > { %v1757_v47 = vmul.f32 %v1749_v45, %v1680_v32 }
 0x5aa   : > { %v1759_v48 = vpack.c.bf16 %v1757_v47, %v1756_v46  ;;  %v1320_v46 = vpop.f32.mrf.mxu3 }
 0x5ab   : > { %v1321_v47 = vadd.f32 %v4172_v34, %v1320_v46 }
 0x5ac   : > { %1764 = vrot.lane.b32.xlu0 %v1759_v48, %s3933_s26 }
 0x5af   : > { %v707_v60 = vpop.permute.xlu1 %706 }
 0x5b0   : > { %vm780_vm1 = vcmp.eq.s32.totalorder %v4085_v20, %v707_v60 }
 0x5b1   : > { %v813_v51 = vsel %vm780_vm1, 1.0, %v3931_v25 }
 0x5c6   : > { %v1763_v50 = vpop.permute.xlu2 %1762 }
 0x5c7   : > { %3498 = vmatmul.msk.bf16.vlgmr.msra.gmra.mxu1 %vm863_vm2, %v1763_v50 }
 0x5c8   : > { %2534 = vmatpush.bf16.msra.mxu1 %v4137_v17  ;;  %v1316_v17 = vadd.f32 %v4172_v34, %v1315_v53 }
 0x5cc   : > { %2535 = vmatpush.bf16.msra.mxu1 %v4149_v21 }
 0x5ce   : > { %v710_v7 = vpop.permute.xlu2 %709 }
 0x5cf   : > { %vm781_vm3 = vcmp.eq.s32.totalorder %v4085_v20, %v710_v7  ;;  %v1322_v7 = vpop.f32.mrf.mxu3 }
 0x5d0   : > { %v814_v52 = vsel %vm781_vm3, 1.0, %v3931_v25 }
 0x5d1   : > { %v840_v29 = vpack.c.bf16 %v814_v52, %v813_v51  ;;  %v1323_v51 = vadd.f32 %v4172_v34, %v1322_v7 }
 0x5d3   : > { %3417 = vmatmul.msk.bf16.gmra.mxu0 %vm863_vm2, %v840_v29 }
 0x61e   : > { %v1765_v30 = vpop.permute.xlu0 %1764 }
 0x61f   : > { %3499 = vmatmul.msk.bf16.gmra.mxu1 %vm863_vm2, %v1765_v30 }
 0x644   : > { %v1781_v54 = vpop.f32.mrf.mxu1 }
 0x645   : > { %v1791_v21 = vadd.f32 %v1781_v54, %v1316_v17 }
 0x647   : > { %v3500_v56 = vmul.f32 -1.442695, %v1791_v21 }
 0x649   : > { %3764 = vpow2.f32 %v3500_v56 }
 0x64c   : > { %v1783_v59 = vpop.f32.mrf.mxu1 }
 0x64d   : > { %v1792_v31 = vadd.f32 %v1783_v59, %v1318_v58 }
 0x64f   : > { %v3765_v32 = vpop.eup %3764  ;;  %v3501_v62 = vmul.f32 -1.442695, %v1792_v31 }
 0x650   : > { %v1807_v63 = vadd.f32 1.0, %v3765_v32  ;;  %v954_v0 = vpop.f32.mrf.mxu0 }
 0x651   : > { %3766 = vpow2.f32 %v3501_v62 }
 0x652   : > { %3768 = vrcp.f32 %v1807_v63  ;;  %v1822_v10 = vand.u32 2147483648, %v1807_v63  ;;  %v1820_v13 = vand.u32 2147483647, %v1807_v63  ;;  %vm1816_vm5 = vweird.f32 %v1807_v63 }
 0x654   : > { %v1823_v18 = vor.u32 1.1754944e-38, %v1822_v10  ;;  %vm1821_vm7 = vcmp.eq.f32.partialorder %v1820_v13, 8.507059e+37 }
 0x657   : > { %v3767_v2 = vpop.eup %3766 }
 0x658   : > { %v3769_v9 = vpop.eup %3768  ;;  %v1808_v4 = vadd.f32 1.0, %v3767_v2  ;;  %v956_v5 = vpop.f32.mrf.mxu0 }
 0x659   : > { %v1812_v44 = vmul.f32 %v3769_v9, %v1807_v63  ;;  %v1208_v55 = vpack.c.bf16 %v956_v5, %v954_v0  ;;  %vm1817_vm4 = vweird.f32 %v3769_v9 }
 0x65a   : > { %3770 = vrcp.f32 %v1808_v4  ;;  %vm1818_vm6 = vmor %vm1816_vm5, %vm1817_vm4  ;;  %v1837_v33 = vand.u32 2147483648, %v1808_v4  ;;  %v1835_v37 = vand.u32 2147483647, %v1808_v4  ;;  %vm1831_vm9 = vweird.f32 %v1808_v4 }
 0x65b   : > { %v1813_v8 = vsub.f32 1.0, %v1812_v44  ;;  %3462 = vmatmul.msk.bf16.gmra.mxu3 %vm863_vm2, %v1208_v55 }
 0x65c   : > { %v1838_v42 = vor.u32 1.1754944e-38, %v1837_v33  ;;  %vm1836_vm11 = vcmp.eq.f32.partialorder %v1835_v37, 8.507059e+37 }
 0x65d   : > { %v1814_v11 = vmul.f32 %v3769_v9, %v1813_v8 }
 0x65f   : > { %v1815_v14 = vadd.f32 %v3769_v9, %v1814_v11 }
 0x660   : > { %v3771_v15 = vpop.eup %3770 }
 0x661   : > { %v1827_v23 = vmul.f32 %v3771_v15, %v1808_v4  ;;  %v1819_v22 = vsel %vm1818_vm6, %v3769_v9, %v1815_v14  ;;  %vm1832_vm8 = vweird.f32 %v3771_v15 }
 0x662   : > { %v4363_v26 = vsel %vm1821_vm7, %v1823_v18, %v1819_v22  ;;  %vm1833_vm10 = vmor %vm1831_vm9, %vm1832_vm8 }
 0x663   : > { %v1828_v35 = vsub.f32 1.0, %v1827_v23  ;;  %v1871_v28 = vmul.f32 2.0, %v4363_v26  ;;  %v1879_v46 = vmul.f32 %v4363_v26, %v4322_v12 }
 0x665   : > { %v3504_v49 = vadd.f32 -1.0, %v1871_v28  ;;  %v1829_v36 = vmul.f32 %v3771_v15, %v1828_v35  ;;  %v713_v28 = vpop.permute.xlu2 %712 }
 0x666   : > { %vm782_vm5 = vcmp.eq.s32.totalorder %v4085_v20, %v713_v28 }
 0x667   : > { %1887 = vrot.lane.b32.xlu0 %v3504_v49, %s3932_s3  ;;  %v1830_v38 = vadd.f32 %v3771_v15, %v1829_v36  ;;  %v815_v37 = vsel %vm782_vm5, 1.0, %v3931_v25 }
 0x669   : > { %v1834_v39 = vsel %vm1833_vm10, %v3771_v15, %v1830_v38 }
 0x66a   : > { %v4367_v40 = vsel %vm1836_vm11, %v1838_v42, %v1834_v39 }
 0x66b   : > { %v1872_v41 = vmul.f32 2.0, %v4367_v40 }
 0x66d   : > { %v3505_v45 = vadd.f32 -1.0, %v1872_v41 }
 0x66f   : > { %1889 = vrot.lane.b32.xlu1 %v3505_v45, %s3932_s3  ;;  %715 = vperm.xlu0 %3708, %v649_v43  }
 0x69c   : > { %v1786_v48 = vpop.f32.mrf.mxu1 }
 0x69d   : > { %v1793_v50 = vadd.f32 %v1786_v48, %v1321_v47 }
 0x69f   : > { %v3502_v60 = vmul.f32 -1.442695, %v1793_v50  ;;  %v1880_v50 = vmul.f32 %v4367_v40, %v4328_v16 }
 0x6a1   : > { %3772 = vpow2.f32 %v3502_v60 }
 0x6a4   : > { %v1788_v52 = vpop.f32.mrf.mxu1 }
 0x6a5   : > { %v1794_v29 = vadd.f32 %v1788_v52, %v1323_v51 }
 0x6a7   : > { %v3773_v30 = vpop.eup %3772  ;;  %v3503_v53 = vmul.f32 -1.442695, %v1794_v29 }
 0x6a8   : > { %v1809_v17 = vadd.f32 1.0, %v3773_v30 }
 0x6a9   : > { %3774 = vpow2.f32 %v3503_v53 }
 0x6aa   : > { %3776 = vrcp.f32 %v1809_v17  ;;  %v1852_v59 = vand.u32 2147483648, %v1809_v17  ;;  %v1850_v32 = vand.u32 2147483647, %v1809_v17  ;;  %vm1846_vm13 = vweird.f32 %v1809_v17 }
 0x6ac   : > { %v1853_v63 = vor.u32 1.1754944e-38, %v1852_v59  ;;  %vm1851_vm15 = vcmp.eq.f32.partialorder %v1850_v32, 8.507059e+37  ;;  %v653_v59 = vld [vmem:[%s4061_s29 + $0x98] sm:$0xff] }
 0x6af   : > { %v3775_v54 = vpop.eup %3774 }
 0x6b0   : > { %v3777_v21 = vpop.eup %3776  ;;  %v1810_v56 = vadd.f32 1.0, %v3775_v54 }
 0x6b1   : > { %v1842_v57 = vmul.f32 %v3777_v21, %v1809_v17  ;;  %vm1847_vm12 = vweird.f32 %v3777_v21 }
 0x6b2   : > { %3778 = vrcp.f32 %v1810_v56  ;;  %vm1848_vm14 = vmor %vm1846_vm13, %vm1847_vm12  ;;  %v1867_v44 = vand.u32 2147483648, %v1810_v56  ;;  %v1865_v10 = vand.u32 2147483647, %v1810_v56  ;;  %vm1861_vm1 = vweird.f32 %v1810_v56 }
 0x6b3   : > { %v1843_v58 = vsub.f32 1.0, %v1842_v57 }
 0x6b4   : > { %v1868_v13 = vor.u32 1.1754944e-38, %v1867_v44  ;;  %vm1866_vm4 = vcmp.eq.f32.partialorder %v1865_v10, 8.507059e+37 }
 0x6b5   : > { %v1844_v31 = vmul.f32 %v3777_v21, %v1843_v58 }
 0x6b7   : > { %v1845_v62 = vadd.f32 %v3777_v21, %v1844_v31 }
 0x6b8   : > { %v3779_v34 = vpop.eup %3778 }
 0x6b9   : > { %v1857_v0 = vmul.f32 %v3779_v34, %v1810_v56  ;;  %v1849_v2 = vsel %vm1848_vm14, %v3777_v21, %v1845_v62  ;;  %vm1862_vm0 = vweird.f32 %v3779_v34 }
 0x6ba   : > { %v4374_v9 = vsel %vm1851_vm15, %v1853_v63, %v1849_v2  ;;  %vm1863_vm3 = vmor %vm1861_vm1, %vm1862_vm0  ;;  %v651_v63 = vld [vmem:[%s4061_s29 + $0x88] sm:$0xff] }
 0x6bb   : > { %v1858_v4 = vsub.f32 1.0, %v1857_v0  ;;  %v1873_v5 = vmul.f32 2.0, %v4374_v9  ;;  %v1881_v16 = vmul.f32 %v4374_v9, %v4334_v24  ;;  %v650_v24 = vld [vmem:[%s4061_s29 + $0x80] sm:$0xff] }
 0x6bd   : > { %v3506_v55 = vadd.f32 -1.0, %v1873_v5  ;;  %v1859_v8 = vmul.f32 %v3779_v34, %v1858_v4 }
 0x6bf   : > { %1891 = vrot.lane.b32.xlu1 %v3506_v55, %s3932_s3  ;;  %v1860_v11 = vadd.f32 %v3779_v34, %v1859_v8  ;;  %v652_v55 = vld [vmem:[%s4061_s29 + $0x90] sm:$0xff] }
 0x6c1   : > { %v1864_v14 = vsel %vm1863_vm3, %v3779_v34, %v1860_v11 }
 0x6c2   : > { %v4378_v15 = vsel %vm1866_vm4, %v1868_v13, %v1864_v14 }
 0x6c3   : > { %v1874_v18 = vmul.f32 2.0, %v4378_v15  ;;  %v1882_v54 = vmul.f32 %v4378_v15, %v4338_v1 }
 0x6c5   : > { %v3507_v23 = vadd.f32 -1.0, %v1874_v18 }
 0x6c7   : > { %1893 = vrot.lane.b32.xlu2 %v3507_v23, %s3932_s3 }
 0x6d9   : > { %v1888_v22 = vpop.permute.xlu0 %1887 }
 0x6da   : > { %v1899_v35 = vmul.f32 %v1888_v22, %v4363_v26 }
 0x6dc   : > { %1907 = vrot.lane.b32.xlu0 %v1899_v35, %s3933_s26 }
 0x6e1   : > { %v1890_v33 = vpop.permute.xlu1 %1889  ;;  %v716_v49 = vpop.permute.xlu0 %715 }
 0x6e2   : > { %v1900_v36 = vmul.f32 %v1890_v33, %v4367_v40  ;;  %vm783_vm6 = vcmp.eq.s32.totalorder %v4085_v20, %v716_v49  ;;  %v1325_v33 = vpop.f32.mrf.mxu3  ;;  %v4451_v49 = vld [vmem:[%s4874_s6] ss:$0 sm:$0xff] }
 0x6e3   : > { %v816_v38 = vsel %vm783_vm6, 1.0, %v3931_v25 }
 0x6e4   : > { %v841_v42 = vpack.c.bf16 %v816_v38, %v815_v37  ;;  %1909 = vrot.lane.b32.xlu1 %v1900_v36, %s3933_s26  ;;  %v1326_v36 = vadd.f32 %v4451_v49, %v1325_v33 }
 0x6e6   : > { %3418 = vmatmul.msk.bf16.gmra.mxu0 %vm863_vm2, %v841_v42 }
 0x721   : > { %v1894_v39 = vpop.permute.xlu2 %1893 }
 0x722   : > { %v1902_v41 = vmul.f32 %v1894_v39, %v4378_v15  ;;  %v1327_v39 = vpop.f32.mrf.mxu3 }
 0x724   : > { %1913 = vrot.lane.b32.xlu0 %v1902_v41, %s3933_s26 }
 0x731   : > { %v1892_v43 = vpop.permute.xlu1 %1891 }
 0x732   : > { %v1901_v45 = vmul.f32 %v1892_v43, %v4374_v9  ;;  %v1328_v43 = vadd.f32 %v4451_v49, %v1327_v39 }
 0x734   : > { %1911 = vrot.lane.b32.xlu2 %v1901_v45, %s3933_s26 }
 0x74e   : > { %v1908_v47 = vpop.permute.xlu0 %1907 }
 0x74f   : > { %v4397_v48 = vadd.f32 %v1908_v47, %v1879_v46 }
 0x751   : > { %3780 = vtanh.f32 %v4397_v48 }
 0x756   : > { %v1910_v60 = vpop.permute.xlu1 %1909 }
 0x757   : > { %v3781_v7 = vpop.eup %3780  ;;  %v4402_v51 = vadd.f32 %v1910_v60, %v1880_v50 }
 0x758   : > { %1931 = vrot.lane.b32.xlu1 %v3781_v7, %s3932_s3 }
 0x759   : > { %3782 = vtanh.f32 %v4402_v51 }
 0x75f   : > { %v3783_v52 = vpop.eup %3782 }
 0x760   : > { %1933 = vrot.lane.b32.xlu2 %v3783_v52, %s3932_s3 }
 0x763   : > { %v959_v12 = vpop.f32.mrf.mxu0 }
 0x76b   : > { %v961_v29 = vpop.f32.mrf.mxu0 }
 0x76c   : > { %v1209_v30 = vpack.c.bf16 %v961_v29, %v959_v12 }
 0x76e   : > { %3463 = vmatmul.msk.bf16.gmra.mxu3 %vm863_vm2, %v1209_v30 }
 0x78e   : > { %v1912_v53 = vpop.permute.xlu2 %1911 }
 0x78f   : > { %v4410_v17 = vadd.f32 %v1912_v53, %v1881_v16 }
 0x791   : > { %3784 = vtanh.f32 %v4410_v17 }
 0x796   : > { %v1914_v21 = vpop.permute.xlu0 %1913 }
 0x797   : > { %v3785_v56 = vpop.eup %3784  ;;  %v4415_v57 = vadd.f32 %v1914_v21, %v1882_v54 }
 0x798   : > { %1935 = vrot.lane.b32.xlu0 %v3785_v56, %s3932_s3 }
 0x799   : > { %3786 = vtanh.f32 %v4415_v57 }
 0x79f   : > { %v3787_v58 = vpop.eup %3786 }
 0x7a0   : > { %1937 = vrot.lane.b32.xlu1 %v3787_v58, %s3932_s3 }
 0x7a8   : > { %718 = vperm.xlu1 %3709, %v650_v24  }
 0x7b0   : > { %727 = vperm.xlu1 %3709, %v653_v59  }
 0x7ba   : > { %v1934_v31 = vpop.permute.xlu2 %1933 }
 0x7bb   : > { %v1944_v1 = vmul.f32 %v1934_v31, %v4367_v40 }
 0x7ca   : > { %v1932_v32 = vpop.permute.xlu1 %1931 }
 0x7cb   : > { %v1943_v62 = vmul.f32 %v1932_v32, %v4363_v26  ;;  %v3914_v26 = vld [vmem:[%s4873_s5 + $0x8] sm:$0xff] }
 0x7cd   : > { %v1947_v34 = vpack.c.bf16 %v1944_v1, %v1943_v62 }
 0x7cf   : > { %1951 = vrot.lane.b32.xlu2 %v1947_v34, %s3933_s26 }
 0x7d7   : > { %721 = vperm.xlu2 %3707, %v651_v63  }
 0x80a   : > { %v1936_v0 = vpop.permute.xlu0 %1935 }
 0x80b   : > { %v1945_v4 = vmul.f32 %v1936_v0, %v4374_v9  ;;  %v3915_v9 = vld [vmem:[%s4873_s5] sm:$0xff] }
 0x812   : > { %v1938_v2 = vpop.permute.xlu1 %1937 }
 0x813   : > { %v1946_v5 = vmul.f32 %v1938_v2, %v4378_v15 }
 0x815   : > { %v1948_v44 = vpack.c.bf16 %v1946_v5, %v1945_v4 }
 0x817   : > { %1953 = vrot.lane.b32.xlu0 %v1948_v44, %s3933_s26 }
 0x81a   : > { %v719_v40 = vpop.permute.xlu1 %718 }
 0x81b   : > { %vm784_vm7 = vcmp.eq.s32.totalorder %v4085_v20, %v719_v40 }
 0x81c   : > { %v817_v11 = vsel %vm784_vm7, 1.0, %v3931_v25 }
 0x81f   : > { %724 = vperm.xlu0 %3708, %v652_v55  }
 0x822   : > { %v728_v18 = vpop.permute.xlu1 %727 }
 0x823   : > { %vm787_vm9 = vcmp.eq.s32.totalorder %v4085_v20, %v728_v18 }
 0x824   : > { %v820_v22 = vsel %vm787_vm9, 1.0, %v3931_v25 }
 0x829   : > { %v1952_v8 = vpop.permute.xlu2 %1951 }
 0x82a   : > { %3508 = vmatmul.msk.bf16.vlgmr.msrb.gmra.mxu2 %vm863_vm2, %v1952_v8 }
 0x82b   : > { %2723 = vmatpush.bf16.msrb.mxu2 %v3914_v26 }
 0x82f   : > { %2724 = vmatpush.bf16.msrb.mxu2 %v3915_v9  ;;  %v1330_v9 = vpop.f32.mrf.mxu3 }
 0x831   : > { %v722_v10 = vpop.permute.xlu2 %721 }
 0x832   : > { %vm785_vm8 = vcmp.eq.s32.totalorder %v4085_v20, %v722_v10  ;;  %v1331_v10 = vadd.f32 %v4451_v49, %v1330_v9 }
 0x833   : > { %v818_v13 = vsel %vm785_vm8, 1.0, %v3931_v25 }
 0x834   : > { %v842_v14 = vpack.c.bf16 %v818_v13, %v817_v11 }
 0x836   : > { %3419 = vmatmul.msk.bf16.gmra.mxu0 %vm863_vm2, %v842_v14 }
 0x889   : > { %v1954_v15 = vpop.permute.xlu0 %1953 }
 0x88a   : > { %3509 = vmatmul.msk.bf16.gmra.mxu2 %vm863_vm2, %v1954_v15  ;;  %v1332_v15 = vpop.f32.mrf.mxu3 }
 0x891   : > { %v725_v23 = vpop.permute.xlu0 %724 }
 0x892   : > { %vm786_vm10 = vcmp.eq.s32.totalorder %v4085_v20, %v725_v23  ;;  %v1333_v23 = vadd.f32 %v4451_v49, %v1332_v15 }
 0x893   : > { %v819_v35 = vsel %vm786_vm10, 1.0, %v3931_v25 }
 0x894   : > { %v843_v28 = vpack.c.bf16 %v820_v22, %v819_v35 }
 0x896   : > { %3420 = vmatmul.msk.bf16.gmra.mxu0 %vm863_vm2, %v843_v28 }
 0x8ad   : > { %v1970_v37 = vpop.f32.mrf.mxu2 }
 0x8ae   : > { %v1980_v38 = vadd.f32 %v1970_v37, %v1326_v36 }
 0x8b0   : > { %v3510_v42 = vmul.f32 -1.442695, %v1980_v38 }
 0x8b2   : > { %3788 = vpow2.f32 %v3510_v42 }
 0x8b3   : > { %v964_v41 = vpop.f32.mrf.mxu0 }
 0x8b5   : > { %v1972_v45 = vpop.f32.mrf.mxu2 }
 0x8b6   : > { %v1981_v46 = vadd.f32 %v1972_v45, %v1328_v43 }
 0x8b8   : > { %v3789_v47 = vpop.eup %3788  ;;  %v3511_v50 = vmul.f32 -1.442695, %v1981_v46 }
 0x8b9   : > { %v1996_v60 = vadd.f32 1.0, %v3789_v47 }
 0x8ba   : > { %3790 = vpow2.f32 %v3511_v50 }
 0x8bb   : > { %3792 = vrcp.f32 %v1996_v60  ;;  %v966_v7 = vpop.f32.mrf.mxu0  ;;  %v2011_v54 = vand.u32 2147483648, %v1996_v60  ;;  %v2009_v56 = vand.u32 2147483647, %v1996_v60  ;;  %vm2005_vm12 = vweird.f32 %v1996_v60 }
 0x8bc   : > { %v1210_v52 = vpack.c.bf16 %v966_v7, %v964_v41 }
 0x8bd   : > { %v2012_v59 = vor.u32 1.1754944e-38, %v2011_v54  ;;  %vm2010_vm14 = vcmp.eq.f32.partialorder %v2009_v56, 8.507059e+37 }
 0x8be   : > { %3464 = vmatmul.msk.bf16.gmra.mxu3 %vm863_vm2, %v1210_v52 }
 0x8c0   : > { %v3791_v12 = vpop.eup %3790 }
 0x8c1   : > { %v3793_v29 = vpop.eup %3792  ;;  %v1997_v30 = vadd.f32 1.0, %v3791_v12 }
 0x8c2   : > { %v2001_v16 = vmul.f32 %v3793_v29, %v1996_v60  ;;  %vm2006_vm11 = vweird.f32 %v3793_v29 }
 0x8c3   : > { %3794 = vrcp.f32 %v1997_v30  ;;  %vm2007_vm13 = vmor %vm2005_vm12, %vm2006_vm11  ;;  %v2026_v63 = vand.u32 2147483648, %v1997_v30  ;;  %v2024_v4 = vand.u32 2147483647, %v1997_v30  ;;  %vm2020_vm0 = vweird.f32 %v1997_v30 }
 0x8c4   : > { %v2002_v53 = vsub.f32 1.0, %v2001_v16 }
 0x8c5   : > { %v2027_v44 = vor.u32 1.1754944e-38, %v2026_v63  ;;  %vm2025_vm3 = vcmp.eq.f32.partialorder %v2024_v4, 8.507059e+37 }
 0x8c6   : > { %v2003_v21 = vmul.f32 %v3793_v29, %v2002_v53 }
 0x8c8   : > { %v2004_v58 = vadd.f32 %v3793_v29, %v2003_v21 }
 0x8c9   : > { %v3795_v24 = vpop.eup %3794 }
 0x8ca   : > { %v2016_v31 = vmul.f32 %v3795_v24, %v1997_v30  ;;  %v2008_v32 = vsel %vm2007_vm13, %v3793_v29, %v2004_v58  ;;  %vm2021_vm15 = vweird.f32 %v3795_v24 }
 0x8cb   : > { %v4456_v1 = vsel %vm2010_vm14, %v2012_v59, %v2008_v32  ;;  %vm2022_vm1 = vmor %vm2020_vm0, %vm2021_vm15 }
 0x8cc   : > { %v2017_v62 = vsub.f32 1.0, %v2016_v31  ;;  %v2060_v34 = vmul.f32 2.0, %v4456_v1 }
 0x8ce   : > { %v3514_v0 = vadd.f32 -1.0, %v2060_v34  ;;  %v2018_v2 = vmul.f32 %v3795_v24, %v2017_v62 }
 0x8d0   : > { %2076 = vrot.lane.b32.xlu2 %v3514_v0, %s3932_s3  ;;  %v2019_v5 = vadd.f32 %v3795_v24, %v2018_v2 }
 0x8d2   : > { %v2023_v55 = vsel %vm2022_vm1, %v3795_v24, %v2019_v5 }
 0x8d3   : > { %v4460_v8 = vsel %vm2025_vm3, %v2027_v44, %v2023_v55  ;;  %v2068_v55 = vmul.f32 %v4456_v1, %v4397_v48 }
 0x8d4   : > { %v2061_v26 = vmul.f32 2.0, %v4460_v8 }
 0x8d6   : > { %v3515_v40 = vadd.f32 -1.0, %v2061_v26 }
 0x8d8   : > { %2078 = vrot.lane.b32.xlu0 %v3515_v40, %s3932_s3 }
 0x90d   : > { %v1975_v11 = vpop.f32.mrf.mxu2 }
 0x90e   : > { %v1982_v13 = vadd.f32 %v1975_v11, %v1331_v10 }
 0x910   : > { %v3512_v14 = vmul.f32 -1.442695, %v1982_v13  ;;  %v2069_v13 = vmul.f32 %v4460_v8, %v4402_v51 }
 0x912   : > { %3796 = vpow2.f32 %v3512_v14 }
 0x913   : > { %v969_v18 = vpop.f32.mrf.mxu0 }
 0x915   : > { %v1977_v22 = vpop.f32.mrf.mxu2 }
 0x916   : > { %v1983_v35 = vadd.f32 %v1977_v22, %v1333_v23 }
 0x918   : > { %v3797_v28 = vpop.eup %3796  ;;  %v3513_v33 = vmul.f32 -1.442695, %v1983_v35 }
 0x919   : > { %v1998_v36 = vadd.f32 1.0, %v3797_v28 }
 0x91a   : > { %3798 = vpow2.f32 %v3513_v33 }
 0x91b   : > { %3800 = vrcp.f32 %v1998_v36  ;;  %v971_v37 = vpop.f32.mrf.mxu0  ;;  %v2041_v46 = vand.u32 2147483648, %v1998_v36  ;;  %v2039_v50 = vand.u32 2147483647, %v1998_v36  ;;  %vm2035_vm5 = vweird.f32 %v1998_v36 }
 0x91c   : > { %v1211_v38 = vpack.c.bf16 %v971_v37, %v969_v18 }
 0x91d   : > { %v2042_v52 = vor.u32 1.1754944e-38, %v2041_v46  ;;  %vm2040_vm7 = vcmp.eq.f32.partialorder %v2039_v50, 8.507059e+37 }
 0x91e   : > { %3465 = vmatmul.msk.bf16.gmra.mxu3 %vm863_vm2, %v1211_v38 }
 0x920   : > { %v3799_v42 = vpop.eup %3798 }
 0x921   : > { %v3801_v39 = vpop.eup %3800  ;;  %v1999_v41 = vadd.f32 1.0, %v3799_v42 }
 0x922   : > { %v2031_v43 = vmul.f32 %v3801_v39, %v1998_v36  ;;  %vm2036_vm4 = vweird.f32 %v3801_v39 }
 0x923   : > { %3802 = vrcp.f32 %v1999_v41  ;;  %vm2037_vm6 = vmor %vm2035_vm5, %vm2036_vm4  ;;  %v2056_v56 = vand.u32 2147483648, %v1999_v41  ;;  %v2054_v59 = vand.u32 2147483647, %v1999_v41  ;;  %vm2050_vm9 = vweird.f32 %v1999_v41 }
 0x924   : > { %v2032_v45 = vsub.f32 1.0, %v2031_v43  ;;  %v656_v43 = vld [vmem:[%s4061_s29 + $0xb0] sm:$0xff] }
 0x925   : > { %v2057_v32 = vor.u32 1.1754944e-38, %v2056_v56  ;;  %vm2055_vm11 = vcmp.eq.f32.partialorder %v2054_v59, 8.507059e+37 }
 0x926   : > { %v2033_v47 = vmul.f32 %v3801_v39, %v2032_v45 }
 0x928   : > { %v2034_v60 = vadd.f32 %v3801_v39, %v2033_v47 }
 0x929   : > { %v3803_v7 = vpop.eup %3802 }
 0x92a   : > { %v2046_v12 = vmul.f32 %v3803_v7, %v1999_v41  ;;  %v2077_v29 = vpop.permute.xlu2 %2076  ;;  %v2038_v30 = vsel %vm2037_vm6, %v3801_v39, %v2034_v60  ;;  %vm2051_vm8 = vweird.f32 %v3803_v7  ;;  %v655_v41 = vld [vmem:[%s4061_s29 + $0xa8] sm:$0xff] }
 0x92b   : > { %v2088_v16 = vmul.f32 %v2077_v29, %v4456_v1  ;;  %v4468_v53 = vsel %vm2040_vm7, %v2042_v52, %v2038_v30  ;;  %vm2052_vm10 = vmor %vm2050_vm9, %vm2051_vm8 }
 0x92c   : > { %v2047_v54 = vsub.f32 1.0, %v2046_v12  ;;  %v2062_v21 = vmul.f32 2.0, %v4468_v53  ;;  %v2070_v18 = vmul.f32 %v4468_v53, %v4410_v17  ;;  %v654_v17 = vld [vmem:[%s4061_s29 + $0xa0] sm:$0xff] }
 0x92d   : > { %2096 = vrot.lane.b32.xlu0 %v2088_v16, %s3933_s26 }
 0x92e   : > { %v3516_v58 = vadd.f32 -1.0, %v2062_v21  ;;  %v2048_v24 = vmul.f32 %v3803_v7, %v2047_v54 }
 0x930   : > { %2080 = vrot.lane.b32.xlu1 %v3516_v58, %s3932_s3  ;;  %v2049_v31 = vadd.f32 %v3803_v7, %v2048_v24 }
 0x932   : > { %v2053_v62 = vsel %vm2052_vm10, %v3803_v7, %v2049_v31 }
 0x933   : > { %v2058_v34 = vsel %vm2055_vm11, %v2057_v32, %v2053_v62 }
 0x934   : > { %v2063_v63 = vmul.f32 2.0, %v2058_v34  ;;  %v2071_v35 = vmul.f32 %v2058_v34, %v4415_v57 }
 0x936   : > { %v3517_v0 = vadd.f32 -1.0, %v2063_v63 }
 0x938   : > { %2082 = vrot.lane.b32.xlu2 %v3517_v0, %s3932_s3 }
 0x941   : > { %v1335_v30 = vpop.f32.mrf.mxu3 }
 0x949   : > { %v1337_v58 = vpop.f32.mrf.mxu3 }
 0x94a   : > { %v2079_v2 = vpop.permute.xlu0 %2078  ;;  %v1338_v24 = vadd.f32 %v4451_v49, %v1337_v58 }
 0x94b   : > { %v2089_v4 = vmul.f32 %v2079_v2, %v4460_v8 }
 0x94d   : > { %2098 = vrot.lane.b32.xlu1 %v2089_v4, %s3933_s26 }
 0x992   : > { %v2083_v5 = vpop.permute.xlu2 %2082 }
 0x993   : > { %v2091_v44 = vmul.f32 %v2083_v5, %v2058_v34 }
 0x995   : > { %2102 = vrot.lane.b32.xlu0 %v2091_v44, %s3933_s26 }
 0x99f   : > { %v2097_v26 = vpop.permute.xlu0 %2096 }
 0x9a0   : > { %v4479_v40 = vadd.f32 %v2097_v26, %v2068_v55 }
 0x9a2   : > { %3804 = vtanh.f32 %v4479_v40  ;;  %v2081_v9 = vpop.permute.xlu1 %2080 }
 0x9a3   : > { %v2090_v10 = vmul.f32 %v2081_v9, %v4468_v53 }
 0x9a5   : > { %2100 = vrot.lane.b32.xlu2 %v2090_v10, %s3933_s26 }
 0x9a8   : > { %v3805_v11 = vpop.eup %3804 }
 0x9a9   : > { %2120 = vrot.lane.b32.xlu1 %v3805_v11, %s3932_s3 }
 0x9bf   : > { %v2099_v14 = vpop.permute.xlu1 %2098 }
 0x9c0   : > { %v4487_v15 = vadd.f32 %v2099_v14, %v2069_v13 }
 0x9c2   : > { %3806 = vtanh.f32 %v4487_v15 }
 0x9c8   : > { %v3807_v48 = vpop.eup %3806 }
 0x9c9   : > { %2122 = vrot.lane.b32.xlu2 %v3807_v48, %s3932_s3 }
 0x9ff   : > { %v2101_v23 = vpop.permute.xlu2 %2100 }
 0xa00   : > { %v4493_v22 = vadd.f32 %v2101_v23, %v2070_v18 }
 0xa02   : > { %3808 = vtanh.f32 %v4493_v22 }
 0xa07   : > { %v2103_v51 = vpop.permute.xlu0 %2102 }
 0xa08   : > { %v3809_v28 = vpop.eup %3808  ;;  %v4497_v33 = vadd.f32 %v2103_v51, %v2071_v35 }
 0xa09   : > { %2124 = vrot.lane.b32.xlu0 %v3809_v28, %s3932_s3 }
 0xa0a   : > { %3810 = vtanh.f32 %v4497_v33 }
 0xa10   : > { %v3811_v36 = vpop.eup %3810 }
 0xa11   : > { %2126 = vrot.lane.b32.xlu1 %v3811_v36, %s3932_s3 }
 0xa19   : > { %730 = vperm.xlu1 %3709, %v654_v17  }
 0xa1b   : > { %v2121_v37 = vpop.permute.xlu1 %2120 }
 0xa1c   : > { %v2132_v42 = vmul.f32 %v2121_v37, %v4456_v1 }
 0xa23   : > { %v2123_v38 = vpop.permute.xlu2 %2122 }
 0xa24   : > { %v2133_v57 = vmul.f32 %v2123_v38, %v4460_v8 }
 0xa26   : > { %v2136_v39 = vpack.c.bf16 %v2133_v57, %v2132_v42 }
 0xa28   : > { %2140 = vrot.lane.b32.xlu2 %v2136_v39, %s3933_s26 }
 0xa30   : > { %733 = vperm.xlu2 %3707, %v655_v41  }
 0xa38   : > { %736 = vperm.xlu2 %3707, %v656_v43  }
 0xa7b   : > { %v2125_v45 = vpop.permute.xlu0 %2124 }
 0xa7c   : > { %v2134_v50 = vmul.f32 %v2125_v45, %v4468_v53  ;;  %v1336_v53 = vadd.f32 %v4451_v49, %v1335_v30  ;;  %v657_v45 = vld [vmem:[%s4061_s29 + $0xb8] sm:$0xff] }
 0xa82   : > { %v2141_v46 = vpop.permute.xlu2 %2140 }
 0xa83   : > { %3518 = vmatmul.msk.bf16.vlgmr.msrb.gmra.mxu1 %vm863_vm2, %v2141_v46  ;;  %v2127_v47 = vpop.permute.xlu1 %2126 }
 0xa84   : > { %v2135_v60 = vmul.f32 %v2127_v47, %v2058_v34  ;;  %v1340_v47 = vpop.f32.mrf.mxu3 }
 0xa86   : > { %v2137_v7 = vpack.c.bf16 %v2135_v60, %v2134_v50  ;;  %v1341_v50 = vadd.f32 %v4451_v49, %v1340_v47 }
 0xa88   : > { %2142 = vrot.lane.b32.xlu0 %v2137_v7, %s3933_s26 }
 0xa8a   : > { %v734_v1 = vpop.permute.xlu2 %733 }
 0xa8b   : > { %vm789_vm12 = vcmp.eq.s32.totalorder %v4085_v20, %v734_v1  ;;  %v731_v8 = vpop.permute.xlu1 %730 }
 0xa8c   : > { %v822_v52 = vsel %vm789_vm12, 1.0, %v3931_v25  ;;  %vm788_vm13 = vcmp.eq.s32.totalorder %v4085_v20, %v731_v8  ;;  %v1342_v8 = vpop.f32.mrf.mxu3 }
 0xa8d   : > { %v821_v12 = vsel %vm788_vm13, 1.0, %v3931_v25 }
 0xa8e   : > { %v844_v29 = vpack.c.bf16 %v822_v52, %v821_v12  ;;  %v1343_v52 = vadd.f32 %v4451_v49, %v1342_v8 }
 0xa90   : > { %3421 = vmatmul.msk.bf16.gmra.mxu0 %vm863_vm2, %v844_v29 }
 0xafa   : > { %v2143_v16 = vpop.permute.xlu0 %2142 }
 0xafb   : > { %3519 = vmatmul.msk.bf16.gmra.mxu1 %vm863_vm2, %v2143_v16 }
 0xb00   : > { %v2159_v54 = vpop.f32.mrf.mxu1 }
 0xb01   : > { %v2169_v21 = vadd.f32 %v2159_v54, %v1336_v53 }
 0xb03   : > { %v3520_v56 = vmul.f32 -1.442695, %v2169_v21 }
 0xb05   : > { %3812 = vpow2.f32 %v3520_v56 }
 0xb08   : > { %v2161_v59 = vpop.f32.mrf.mxu1 }
 0xb09   : > { %v2170_v31 = vadd.f32 %v2161_v59, %v1338_v24 }
 0xb0b   : > { %v3813_v32 = vpop.eup %3812  ;;  %v3521_v62 = vmul.f32 -1.442695, %v2170_v31 }
 0xb0c   : > { %v2185_v34 = vadd.f32 1.0, %v3813_v32 }
 0xb0d   : > { %3814 = vpow2.f32 %v3521_v62  ;;  %v974_v63 = vpop.f32.mrf.mxu0 }
 0xb0e   : > { %3816 = vrcp.f32 %v2185_v34  ;;  %v2200_v9 = vand.u32 2147483648, %v2185_v34  ;;  %v2198_v11 = vand.u32 2147483647, %v2185_v34  ;;  %vm2194_vm15 = vweird.f32 %v2185_v34 }
 0xb10   : > { %v2201_v48 = vor.u32 1.1754944e-38, %v2200_v9  ;;  %vm2199_vm1 = vcmp.eq.f32.partialorder %v2198_v11, 8.507059e+37 }
 0xb13   : > { %v3815_v0 = vpop.eup %3814 }
 0xb14   : > { %v3817_v2 = vpop.eup %3816  ;;  %v2186_v4 = vadd.f32 1.0, %v3815_v0 }
 0xb15   : > { %v2190_v5 = vmul.f32 %v3817_v2, %v2185_v34  ;;  %v976_v44 = vpop.f32.mrf.mxu0  ;;  %vm2195_vm14 = vweird.f32 %v3817_v2 }
 0xb16   : > { %3818 = vrcp.f32 %v2186_v4  ;;  %v1212_v55 = vpack.c.bf16 %v976_v44, %v974_v63  ;;  %vm2196_vm0 = vmor %vm2194_vm15, %vm2195_vm14  ;;  %v2215_v36 = vand.u32 2147483648, %v2186_v4  ;;  %v2213_v38 = vand.u32 2147483647, %v2186_v4 }
 0xb17   : > { %v2191_v26 = vsub.f32 1.0, %v2190_v5  ;;  %vm2209_vm4 = vweird.f32 %v2186_v4 }
 0xb18   : > { %3466 = vmatmul.msk.bf16.gmra.mxu3 %vm863_vm2, %v1212_v55  ;;  %v2216_v57 = vor.u32 1.1754944e-38, %v2215_v36  ;;  %vm2214_vm6 = vcmp.eq.f32.partialorder %v2213_v38, 8.507059e+37 }
 0xb19   : > { %v2192_v10 = vmul.f32 %v3817_v2, %v2191_v26 }
 0xb1b   : > { %v2193_v13 = vadd.f32 %v3817_v2, %v2192_v10  ;;  %v737_v10 = vpop.permute.xlu2 %736 }
 0xb1c   : > { %v3819_v14 = vpop.eup %3818  ;;  %vm790_vm13 = vcmp.eq.s32.totalorder %v4085_v20, %v737_v10 }
 0xb1d   : > { %v2205_v18 = vmul.f32 %v3819_v14, %v2186_v4  ;;  %v2197_v23 = vsel %vm2196_vm0, %v3817_v2, %v2193_v13  ;;  %vm2210_vm3 = vweird.f32 %v3819_v14 }
 0xb1e   : > { %v4520_v35 = vsel %vm2199_vm1, %v2201_v48, %v2197_v23  ;;  %vm2211_vm5 = vmor %vm2209_vm4, %vm2210_vm3 }
 0xb1f   : > { %v2206_v51 = vsub.f32 1.0, %v2205_v18  ;;  %v2249_v28 = vmul.f32 2.0, %v4520_v35 }
 0xb21   : > { %v3524_v17 = vadd.f32 -1.0, %v2249_v28  ;;  %v2207_v37 = vmul.f32 %v3819_v14, %v2206_v51 }
 0xb23   : > { %2265 = vrot.lane.b32.xlu0 %v3524_v17, %s3932_s3  ;;  %v2208_v42 = vadd.f32 %v3819_v14, %v2207_v37  ;;  %v823_v17 = vsel %vm790_vm13, 1.0, %v3931_v25 }
 0xb25   : > { %v2212_v39 = vsel %vm2211_vm5, %v3819_v14, %v2208_v42 }
 0xb26   : > { %v4524_v41 = vsel %vm2214_vm6, %v2216_v57, %v2212_v39 }
 0xb27   : > { %v2250_v43 = vmul.f32 2.0, %v4524_v41  ;;  %v2258_v8 = vmul.f32 %v4524_v41, %v4487_v15 }
 0xb29   : > { %v3525_v46 = vadd.f32 -1.0, %v2250_v43 }
 0xb2b   : > { %2267 = vrot.lane.b32.xlu1 %v3525_v46, %s3932_s3  ;;  %739 = vperm.xlu0 %3708, %v657_v45   ;;  %v2257_v46 = vmul.f32 %v4520_v35, %v4479_v40 }
 0xb78   : > { %v2164_v60 = vpop.f32.mrf.mxu1 }
 0xb79   : > { %v2171_v7 = vadd.f32 %v2164_v60, %v1341_v50 }
 0xb7b   : > { %v3522_v1 = vmul.f32 -1.442695, %v2171_v7 }
 0xb7d   : > { %3820 = vpow2.f32 %v3522_v1 }
 0xb80   : > { %v2166_v12 = vpop.f32.mrf.mxu1 }
 0xb81   : > { %v2172_v29 = vadd.f32 %v2166_v12, %v1343_v52 }
 0xb83   : > { %v3821_v30 = vpop.eup %3820  ;;  %v3523_v16 = vmul.f32 -1.442695, %v2172_v29 }
 0xb84   : > { %v2187_v53 = vadd.f32 1.0, %v3821_v30 }
 0xb85   : > { %3822 = vpow2.f32 %v3523_v16 }
 0xb86   : > { %3824 = vrcp.f32 %v2187_v53  ;;  %v2230_v59 = vand.u32 2147483648, %v2187_v53  ;;  %v2228_v32 = vand.u32 2147483647, %v2187_v53  ;;  %vm2224_vm8 = vweird.f32 %v2187_v53 }
 0xb88   : > { %v2231_v63 = vor.u32 1.1754944e-38, %v2230_v59  ;;  %vm2229_vm10 = vcmp.eq.f32.partialorder %v2228_v32, 8.507059e+37 }
 0xb8b   : > { %v3823_v54 = vpop.eup %3822 }
 0xb8c   : > { %v3825_v21 = vpop.eup %3824  ;;  %v2188_v56 = vadd.f32 1.0, %v3823_v54 }
 0xb8d   : > { %v2220_v58 = vmul.f32 %v3825_v21, %v2187_v53  ;;  %vm2225_vm7 = vweird.f32 %v3825_v21 }
 0xb8e   : > { %3826 = vrcp.f32 %v2188_v56  ;;  %vm2226_vm9 = vmor %vm2224_vm8, %vm2225_vm7  ;;  %v2245_v9 = vand.u32 2147483648, %v2188_v56  ;;  %v2243_v14 = vand.u32 2147483647, %v2188_v56  ;;  %vm2239_vm12 = vweird.f32 %v2188_v56 }
 0xb8f   : > { %v2221_v24 = vsub.f32 1.0, %v2220_v58 }
 0xb90   : > { %v2246_v18 = vor.u32 1.1754944e-38, %v2245_v9  ;;  %vm2244_vm15 = vcmp.eq.f32.partialorder %v2243_v14, 8.507059e+37 }
 0xb91   : > { %v2222_v31 = vmul.f32 %v3825_v21, %v2221_v24 }
 0xb93   : > { %v2223_v62 = vadd.f32 %v3825_v21, %v2222_v31 }
 0xb94   : > { %v3827_v34 = vpop.eup %3826 }
 0xb95   : > { %v2235_v0 = vmul.f32 %v3827_v34, %v2188_v56  ;;  %v2266_v2 = vpop.permute.xlu0 %2265  ;;  %v2227_v4 = vsel %vm2226_vm9, %v3825_v21, %v2223_v62  ;;  %vm2240_vm11 = vweird.f32 %v3827_v34 }
 0xb96   : > { %v2277_v5 = vmul.f32 %v2266_v2, %v4520_v35  ;;  %v4532_v44 = vsel %vm2229_vm10, %v2231_v63, %v2227_v4  ;;  %vm2241_vm14 = vmor %vm2239_vm12, %vm2240_vm11  ;;  %v661_v63 = vld [vmem:[%s4061_s29 + $0xd8] sm:$0xff] }
 0xb97   : > { %v2236_v55 = vsub.f32 1.0, %v2235_v0  ;;  %v2251_v26 = vmul.f32 2.0, %v4532_v44  ;;  %v2259_v53 = vmul.f32 %v4532_v44, %v4493_v22  ;;  %v658_v22 = vld [vmem:[%s4061_s29 + $0xc0] sm:$0xff]  ;;  %v659_v0 = vld [vmem:[%s4061_s29 + $0xc8] sm:$0xff] }
 0xb98   : > { %2285 = vrot.lane.b32.xlu0 %v2277_v5, %s3933_s26 }
 0xb99   : > { %v3526_v11 = vadd.f32 -1.0, %v2251_v26  ;;  %v2237_v13 = vmul.f32 %v3827_v34, %v2236_v55 }
 0xb9b   : > { %2269 = vrot.lane.b32.xlu1 %v3526_v11, %s3932_s3  ;;  %v2238_v48 = vadd.f32 %v3827_v34, %v2237_v13  ;;  %v660_v13 = vld [vmem:[%s4061_s29 + $0xd0] sm:$0xff] }
 0xb9d   : > { %v740_v23 = vpop.permute.xlu0 %739  ;;  %v2242_v51 = vsel %vm2241_vm14, %v3827_v34, %v2238_v48  ;;  %v2268_v28 = vpop.permute.xlu1 %2267 }
 0xb9e   : > { %vm791_vm0 = vcmp.eq.s32.totalorder %v4085_v20, %v740_v23  ;;  %v2247_v36 = vsel %vm2244_vm15, %v2246_v18, %v2242_v51  ;;  %v2278_v57 = vmul.f32 %v2268_v28, %v4524_v41 }
 0xb9f   : > { %v824_v37 = vsel %vm791_vm0, 1.0, %v3931_v25  ;;  %v2252_v38 = vmul.f32 2.0, %v2247_v36  ;;  %v2260_v15 = vmul.f32 %v2247_v36, %v4497_v33 }
 0xba0   : > { %v845_v42 = vpack.c.bf16 %v824_v37, %v823_v17 }
 0xba1   : > { %v3527_v39 = vadd.f32 -1.0, %v2252_v38 }
 0xba2   : > { %3422 = vmatmul.msk.bf16.gmra.mxu0 %vm863_vm2, %v845_v42 }
 0xba3   : > { %2287 = vrot.lane.b32.xlu1 %v2278_v57, %s3933_s26  ;;  %2271 = vrot.lane.b32.xlu2 %v3527_v39, %s3932_s3 }
 0xbfd   : > { %v2272_v43 = vpop.permute.xlu2 %2271 }
 0xbfe   : > { %v2280_v45 = vmul.f32 %v2272_v43, %v2247_v36 }
 0xc00   : > { %2291 = vrot.lane.b32.xlu0 %v2280_v45, %s3933_s26 }
 0xc0a   : > { %v2286_v47 = vpop.permute.xlu0 %2285 }
 0xc0b   : > { %v4548_v50 = vadd.f32 %v2286_v47, %v2257_v46 }
 0xc0d   : > { %3828 = vtanh.f32 %v4548_v50  ;;  %v2270_v60 = vpop.permute.xlu1 %2269 }
 0xc0e   : > { %v2279_v7 = vmul.f32 %v2270_v60, %v4532_v44 }
 0xc10   : > { %2289 = vrot.lane.b32.xlu2 %v2279_v7, %s3933_s26 }
 0xc13   : > { %v3829_v1 = vpop.eup %3828 }
 0xc14   : > { %2309 = vrot.lane.b32.xlu1 %v3829_v1, %s3932_s3 }
 0xc15   : > { %v2288_v52 = vpop.permute.xlu1 %2287 }
 0xc16   : > { %v4556_v12 = vadd.f32 %v2288_v52, %v2258_v8 }
 0xc18   : > { %3830 = vtanh.f32 %v4556_v12 }
 0xc1e   : > { %v3831_v40 = vpop.eup %3830 }
 0xc1f   : > { %2311 = vrot.lane.b32.xlu2 %v3831_v40, %s3932_s3  ;;  %v979_v29 = vpop.f32.mrf.mxu0 }
 0xc27   : > { %v981_v30 = vpop.f32.mrf.mxu0 }
 0xc28   : > { %v1213_v16 = vpack.c.bf16 %v981_v30, %v979_v29 }
 0xc2a   : > { %3467 = vmatmul.msk.bf16.gmra.mxu3 %vm863_vm2, %v1213_v16 }
 0xc6a   : > { %v2290_v54 = vpop.permute.xlu2 %2289 }
 0xc6b   : > { %v4563_v21 = vadd.f32 %v2290_v54, %v2259_v53 }
 0xc6d   : > { %3832 = vtanh.f32 %v4563_v21 }
 0xc72   : > { %v2292_v56 = vpop.permute.xlu0 %2291 }
 0xc73   : > { %v3833_v58 = vpop.eup %3832  ;;  %v4567_v24 = vadd.f32 %v2292_v56, %v2260_v15 }
 0xc74   : > { %2313 = vrot.lane.b32.xlu0 %v3833_v58, %s3932_s3 }
 0xc75   : > { %3834 = vtanh.f32 %v4567_v24 }
 0xc79   : > { %v2312_v31 = vpop.permute.xlu2 %2311 }
 0xc7a   : > { %v2322_v62 = vmul.f32 %v2312_v31, %v4524_v41 }
 0xc7b   : > { %v3835_v59 = vpop.eup %3834 }
 0xc7c   : > { %2315 = vrot.lane.b32.xlu1 %v3835_v59, %s3932_s3 }
 0xc84   : > { %742 = vperm.xlu1 %3709, %v658_v22  }
 0xc86   : > { %v2310_v32 = vpop.permute.xlu1 %2309 }
 0xc87   : > { %v2321_v33 = vmul.f32 %v2310_v32, %v4520_v35 }
 0xc89   : > { %v2325_v34 = vpack.c.bf16 %v2322_v62, %v2321_v33 }
 0xc8b   : > { %2329 = vrot.lane.b32.xlu2 %v2325_v34, %s3933_s26 }
 0xc8c   : > { %751 = vperm.xlu1 %3709, %v661_v63  }
 0xc93   : > { %745 = vperm.xlu2 %3707, %v659_v0  }
 0xce5   : > { %v2330_v2 = vpop.permute.xlu2 %2329 }
 0xce6   : > { %3528 = vmatmul.msk.bf16.vlgmr.msra.gmra.mxu2 %vm863_vm2, %v2330_v2  ;;  %v2314_v4 = vpop.permute.xlu0 %2313 }
 0xce7   : > { %v2323_v55 = vmul.f32 %v2314_v4, %v4532_v44  ;;  %v1345_v44 = vpop.f32.mrf.mxu3 }
 0xce8   : > { %v1346_v18 = vadd.f32 %v4451_v49, %v1345_v44 }
 0xced   : > { %v746_v41 = vpop.permute.xlu2 %745 }
 0xcee   : > { %v2316_v5 = vpop.permute.xlu1 %2315  ;;  %vm793_vm1 = vcmp.eq.s32.totalorder %v4085_v20, %v746_v41 }
 0xcef   : > { %v2324_v26 = vmul.f32 %v2316_v5, %v2247_v36  ;;  %v826_v10 = vsel %vm793_vm1, 1.0, %v3931_v25  ;;  %v1347_v17 = vpop.f32.mrf.mxu3 }
 0xcf0   : > { %v1348_v57 = vadd.f32 %v4451_v49, %v1347_v17 }
 0xcf1   : > { %v2326_v9 = vpack.c.bf16 %v2324_v26, %v2323_v55 }
 0xcf3   : > { %2331 = vrot.lane.b32.xlu0 %v2326_v9, %s3933_s26 }
 0xcf6   : > { %v743_v35 = vpop.permute.xlu1 %742 }
 0xcf7   : > { %vm792_vm3 = vcmp.eq.s32.totalorder %v4085_v20, %v743_v35  ;;  %v1350_v35 = vpop.f32.mrf.mxu3 }
 0xcf8   : > { %v825_v11 = vsel %vm792_vm3, 1.0, %v3931_v25 }
 0xcf9   : > { %v846_v14 = vpack.c.bf16 %v826_v10, %v825_v11 }
 0xcfb   : > { %3423 = vmatmul.msk.bf16.gmra.mxu0 %vm863_vm2, %v846_v14  ;;  %748 = vperm.xlu0 %3708, %v660_v13   ;;  %v1351_v13 = vadd.f32 %v4451_v49, %v1350_v35 }
 0xcfe   : > { %v752_v23 = vpop.permute.xlu1 %751 }
 0xcff   : > { %vm795_vm4 = vcmp.eq.s32.totalorder %v4085_v20, %v752_v23 }
 0xd00   : > { %v828_v38 = vsel %vm795_vm4, 1.0, %v3931_v25 }
 0xd65   : > { %v2332_v48 = vpop.permute.xlu0 %2331 }
 0xd66   : > { %3529 = vmatmul.msk.bf16.gmra.mxu2 %vm863_vm2, %v2332_v48 }
 0xd69   : > { %v2348_v51 = vpop.f32.mrf.mxu2 }
 0xd6a   : > { %v2358_v28 = vadd.f32 %v2348_v51, %v1346_v18  ;;  %v1352_v18 = vpop.f32.mrf.mxu3 }
 0xd6b   : > { %v1353_v51 = vadd.f32 %v4451_v49, %v1352_v18 }
 0xd6c   : > { %v3530_v36 = vmul.f32 -1.442695, %v2358_v28 }
 0xd6d   : > { %v749_v37 = vpop.permute.xlu0 %748 }
 0xd6e   : > { %3836 = vpow2.f32 %v3530_v36  ;;  %vm794_vm5 = vcmp.eq.s32.totalorder %v4085_v20, %v749_v37 }
 0xd6f   : > { %v827_v42 = vsel %vm794_vm5, 1.0, %v3931_v25 }
 0xd70   : > { %v847_v39 = vpack.c.bf16 %v828_v38, %v827_v42 }
 0xd71   : > { %v2350_v43 = vpop.f32.mrf.mxu2 }
 0xd72   : > { %v2359_v45 = vadd.f32 %v2350_v43, %v1348_v57  ;;  %3424 = vmatmul.msk.bf16.gmra.mxu0 %vm863_vm2, %v847_v39 }
 0xd74   : > { %v3837_v46 = vpop.eup %3836  ;;  %v3531_v47 = vmul.f32 -1.442695, %v2359_v45 }
 0xd75   : > { %v2374_v60 = vadd.f32 1.0, %v3837_v46 }
 0xd76   : > { %3838 = vpow2.f32 %v3531_v47 }
 0xd77   : > { %3840 = vrcp.f32 %v2374_v60  ;;  %v2389_v53 = vand.u32 2147483648, %v2374_v60  ;;  %v2387_v15 = vand.u32 2147483647, %v2374_v60  ;;  %vm2383_vm7 = vweird.f32 %v2374_v60 }
 0xd78   : > { %v984_v7 = vpop.f32.mrf.mxu0 }
 0xd79   : > { %v2390_v59 = vor.u32 1.1754944e-38, %v2389_v53  ;;  %vm2388_vm9 = vcmp.eq.f32.partialorder %v2387_v15, 8.507059e+37 }
 0xd7c   : > { %v3839_v1 = vpop.eup %3838 }
 0xd7d   : > { %v3841_v8 = vpop.eup %3840  ;;  %v2375_v52 = vadd.f32 1.0, %v3839_v1 }
 0xd7e   : > { %v2379_v40 = vmul.f32 %v3841_v8, %v2374_v60  ;;  %vm2384_vm6 = vweird.f32 %v3841_v8 }
 0xd7f   : > { %3842 = vrcp.f32 %v2375_v52  ;;  %vm2385_vm8 = vmor %vm2383_vm7, %vm2384_vm6  ;;  %v2404_v34 = vand.u32 2147483648, %v2375_v52  ;;  %v2402_v2 = vand.u32 2147483647, %v2375_v52  ;;  %vm2398_vm11 = vweird.f32 %v2375_v52 }
 0xd80   : > { %v2380_v29 = vsub.f32 1.0, %v2379_v40  ;;  %v986_v30 = vpop.f32.mrf.mxu0 }
 0xd81   : > { %v1214_v16 = vpack.c.bf16 %v986_v30, %v984_v7  ;;  %v2405_v5 = vor.u32 1.1754944e-38, %v2404_v34  ;;  %vm2403_vm13 = vcmp.eq.f32.partialorder %v2402_v2, 8.507059e+37 }
 0xd82   : > { %v2381_v54 = vmul.f32 %v3841_v8, %v2380_v29 }
 0xd83   : > { %3468 = vmatmul.msk.bf16.gmra.mxu3 %vm863_vm2, %v1214_v16 }
 0xd84   : > { %v2382_v56 = vadd.f32 %v3841_v8, %v2381_v54 }
 0xd85   : > { %v3843_v58 = vpop.eup %3842 }
 0xd86   : > { %v2394_v22 = vmul.f32 %v3843_v58, %v2375_v52  ;;  %v2386_v31 = vsel %vm2385_vm8, %v3841_v8, %v2382_v56  ;;  %vm2399_vm10 = vweird.f32 %v3843_v58 }
 0xd87   : > { %v4596_v32 = vsel %vm2388_vm9, %v2390_v59, %v2386_v31  ;;  %vm2400_vm12 = vmor %vm2398_vm11, %vm2399_vm10 }
 0xd88   : > { %v2395_v62 = vsub.f32 1.0, %v2394_v22  ;;  %v2438_v33 = vmul.f32 2.0, %v4596_v32  ;;  %v2446_v2 = vmul.f32 %v4596_v32, %v4548_v50 }
 0xd8a   : > { %v3534_v63 = vadd.f32 -1.0, %v2438_v33  ;;  %v2396_v0 = vmul.f32 %v3843_v58, %v2395_v62 }
 0xd8c   : > { %2454 = vrot.lane.b32.xlu2 %v3534_v63, %s3932_s3  ;;  %v2397_v4 = vadd.f32 %v3843_v58, %v2396_v0 }
 0xd8e   : > { %v2401_v55 = vsel %vm2400_vm12, %v3843_v58, %v2397_v4 }
 0xd8f   : > { %v4600_v26 = vsel %vm2403_vm13, %v2405_v5, %v2401_v55 }
 0xd90   : > { %v2439_v9 = vmul.f32 2.0, %v4600_v26  ;;  %v2447_v50 = vmul.f32 %v4600_v26, %v4556_v12 }
 0xd92   : > { %v3535_v41 = vadd.f32 -1.0, %v2439_v9 }
 0xd94   : > { %2456 = vrot.lane.b32.xlu0 %v3535_v41, %s3932_s3 }
 0xde6   : > { %v2455_v10 = vpop.permute.xlu2 %2454 }
 0xde7   : > { %v2466_v11 = vmul.f32 %v2455_v10, %v4596_v32 }
 0xde9   : > { %2474 = vrot.lane.b32.xlu0 %v2466_v11, %s3933_s26  ;;  %v2353_v14 = vpop.f32.mrf.mxu2 }
 0xdea   : > { %v2360_v44 = vadd.f32 %v2353_v14, %v1351_v13 }
 0xdec   : > { %v3532_v48 = vmul.f32 -1.442695, %v2360_v44 }
 0xdee   : > { %3844 = vpow2.f32 %v3532_v48 }
 0xdef   : > { %v989_v23 = vpop.f32.mrf.mxu0 }
 0xdf1   : > { %v2355_v28 = vpop.f32.mrf.mxu2 }
 0xdf2   : > { %v2361_v36 = vadd.f32 %v2355_v28, %v1353_v51 }
 0xdf4   : > { %v3845_v17 = vpop.eup %3844  ;;  %v3533_v37 = vmul.f32 -1.442695, %v2361_v36 }
 0xdf5   : > { %v2376_v38 = vadd.f32 1.0, %v3845_v17 }
 0xdf6   : > { %3846 = vpow2.f32 %v3533_v37 }
 0xdf7   : > { %3848 = vrcp.f32 %v2376_v38  ;;  %v991_v42 = vpop.f32.mrf.mxu0  ;;  %v2419_v60 = vand.u32 2147483648, %v2376_v38  ;;  %v2417_v49 = vand.u32 2147483647, %v2376_v38  ;;  %vm2413_vm15 = vweird.f32 %v2376_v38 }
 0xdf8   : > { %v1215_v57 = vpack.c.bf16 %v991_v42, %v989_v23 }
 0xdf9   : > { %v2420_v52 = vor.u32 1.1754944e-38, %v2419_v60  ;;  %vm2418_vm1 = vcmp.eq.f32.partialorder %v2417_v49, 8.507059e+37 }
 0xdfa   : > { %3469 = vmatmul.msk.bf16.gmra.mxu3 %vm863_vm2, %v1215_v57  ;;  %v663_v57 = vld [vmem:[%s4061_s29 + $0xe8] sm:$0xff] }
 0xdfc   : > { %v3847_v39 = vpop.eup %3846 }
 0xdfd   : > { %v3849_v43 = vpop.eup %3848  ;;  %v2377_v45 = vadd.f32 1.0, %v3847_v39  ;;  %v664_v39 = vld [vmem:[%s4061_s29 + $0xf0] sm:$0xff] }
 0xdfe   : > { %v2409_v46 = vmul.f32 %v3849_v43, %v2376_v38  ;;  %vm2414_vm14 = vweird.f32 %v3849_v43 }
 0xdff   : > { %3850 = vrcp.f32 %v2377_v45  ;;  %vm2415_vm0 = vmor %vm2413_vm15, %vm2414_vm14  ;;  %v2434_v54 = vand.u32 2147483648, %v2377_v45  ;;  %v2432_v58 = vand.u32 2147483647, %v2377_v45  ;;  %vm2428_vm4 = vweird.f32 %v2377_v45 }
 0xe00   : > { %v2410_v47 = vsub.f32 1.0, %v2409_v46 }
 0xe01   : > { %v2435_v22 = vor.u32 1.1754944e-38, %v2434_v54  ;;  %vm2433_vm6 = vcmp.eq.f32.partialorder %v2432_v58, 8.507059e+37 }
 0xe02   : > { %v2411_v7 = vmul.f32 %v3849_v43, %v2410_v47 }
 0xe04   : > { %v2412_v1 = vadd.f32 %v3849_v43, %v2411_v7 }
 0xe05   : > { %v3851_v8 = vpop.eup %3850 }
 0xe06   : > { %v2424_v40 = vmul.f32 %v3851_v8, %v2377_v45  ;;  %v2416_v29 = vsel %vm2415_vm0, %v3849_v43, %v2412_v1  ;;  %vm2429_vm3 = vweird.f32 %v3851_v8  ;;  %v2457_v62 = vpop.permute.xlu0 %2456 }
 0xe07   : > { %v4609_v30 = vsel %vm2418_vm1, %v2420_v52, %v2416_v29  ;;  %vm2430_vm5 = vmor %vm2428_vm4, %vm2429_vm3  ;;  %v2467_v63 = vmul.f32 %v2457_v62, %v4600_v26  ;;  %v1355_v52 = vpop.f32.mrf.mxu3 }
 0xe08   : > { %v2425_v16 = vsub.f32 1.0, %v2424_v40  ;;  %v2440_v53 = vmul.f32 2.0, %v4609_v30  ;;  %v2448_v44 = vmul.f32 %v4609_v30, %v4563_v21  ;;  %v4659_v40 = vld [vmem:[%s4874_s6] ss:$0 sm:$0xff] }
 0xe09   : > { %v1356_v29 = vadd.f32 %v4659_v40, %v1355_v52 }
 0xe0a   : > { %v3536_v15 = vadd.f32 -1.0, %v2440_v53  ;;  %v2426_v56 = vmul.f32 %v3851_v8, %v2425_v16 }
 0xe0c   : > { %2458 = vrot.lane.b32.xlu1 %v3536_v15, %s3932_s3  ;;  %v2427_v59 = vadd.f32 %v3851_v8, %v2426_v56 }
 0xe0e   : > { %v2431_v31 = vsel %vm2430_vm5, %v3851_v8, %v2427_v59 }
 0xe0f   : > { %v2436_v33 = vsel %vm2433_vm6, %v2435_v22, %v2431_v31  ;;  %v1357_v54 = vpop.f32.mrf.mxu3 }
 0xe10   : > { %v2441_v34 = vmul.f32 2.0, %v2436_v33  ;;  %v2449_v12 = vmul.f32 %v2436_v33, %v4567_v24  ;;  %v662_v24 = vld [vmem:[%s4061_s29 + $0xe0] sm:$0xff]  ;;  %v1358_v15 = vadd.f32 %v4659_v40, %v1357_v54 }
 0xe12   : > { %v3537_v0 = vadd.f32 -1.0, %v2441_v34 }
 0xe14   : > { %2460 = vrot.lane.b32.xlu2 %v3537_v0, %s3932_s3  ;;  %2476 = vrot.lane.b32.xlu1 %v2467_v63, %s3933_s26 }
 0xe5b   : > { %v2475_v4 = vpop.permute.xlu0 %2474 }
 0xe5c   : > { %v4618_v5 = vadd.f32 %v2475_v4, %v2446_v2 }
 0xe5e   : > { %3852 = vtanh.f32 %v4618_v5 }
 0xe64   : > { %v3853_v55 = vpop.eup %3852 }
 0xe65   : > { %2498 = vrot.lane.b32.xlu1 %v3853_v55, %s3932_s3 }
 0xe6e   : > { %v2461_v9 = vpop.permute.xlu2 %2460 }
 0xe6f   : > { %v2469_v41 = vmul.f32 %v2461_v9, %v2436_v33 }
 0xe71   : > { %2480 = vrot.lane.b32.xlu0 %v2469_v41, %s3933_s26 }
 0xe7e   : > { %v2459_v35 = vpop.permute.xlu1 %2458 }
 0xe7f   : > { %v2468_v10 = vmul.f32 %v2459_v35, %v4609_v30 }
 0xe81   : > { %2478 = vrot.lane.b32.xlu2 %v2468_v10, %s3933_s26 }
 0xe86   : > { %v2477_v11 = vpop.permute.xlu1 %2476 }
 0xe87   : > { %v4627_v13 = vadd.f32 %v2477_v11, %v2447_v50 }
 0xe89   : > { %3854 = vtanh.f32 %v4627_v13 }
 0xe8f   : > { %v3855_v14 = vpop.eup %3854 }
 0xe90   : > { %2500 = vrot.lane.b32.xlu2 %v3855_v14, %s3932_s3 }
 0xed7   : > { %v2499_v36 = vpop.permute.xlu1 %2498 }
 0xed8   : > { %v2510_v17 = vmul.f32 %v2499_v36, %v4596_v32 }
 0xedb   : > { %v2479_v48 = vpop.permute.xlu2 %2478 }
 0xedc   : > { %v4633_v18 = vadd.f32 %v2479_v48, %v2448_v44 }
 0xede   : > { %3856 = vtanh.f32 %v4633_v18 }
 0xee3   : > { %v2481_v23 = vpop.permute.xlu0 %2480 }
 0xee4   : > { %v3857_v51 = vpop.eup %3856  ;;  %v4637_v28 = vadd.f32 %v2481_v23, %v2449_v12 }
 0xee5   : > { %2502 = vrot.lane.b32.xlu0 %v3857_v51, %s3932_s3 }
 0xee6   : > { %3858 = vtanh.f32 %v4637_v28 }
 0xeea   : > { %v2501_v21 = vpop.permute.xlu2 %2500 }
 0xeeb   : > { %v2511_v37 = vmul.f32 %v2501_v21, %v4600_v26 }
 0xeec   : > { %v3859_v38 = vpop.eup %3858 }
 0xeed   : > { %v2514_v42 = vpack.c.bf16 %v2511_v37, %v2510_v17  ;;  %2504 = vrot.lane.b32.xlu1 %v3859_v38, %s3932_s3 }
 0xeef   : > { %2518 = vrot.lane.b32.xlu2 %v2514_v42, %s3933_s26 }
 0xef5   : > { %754 = vperm.xlu1 %3709, %v662_v24  }
 0xef7   : > { %757 = vperm.xlu2 %3707, %v663_v57   ;;  %v665_v57 = vld [vmem:[%s4061_s29 + $0xf8] sm:$0xff] }
 0xeff   : > { %760 = vperm.xlu2 %3707, %v664_v39  }
 0xf49   : > { %v2519_v43 = vpop.permute.xlu2 %2518 }
 0xf4a   : > { %3538 = vmatmul.msk.bf16.vlgmr.msra.gmra.mxu1 %vm863_vm2, %v2519_v43 }
 0xf51   : > { %v758_v60 = vpop.permute.xlu2 %757 }
 0xf52   : > { %vm797_vm7 = vcmp.eq.s32.totalorder %v4085_v20, %v758_v60 }
 0xf53   : > { %v830_v49 = vsel %vm797_vm7, 1.0, %v3931_v25 }
 0xf57   : > { %v2503_v45 = vpop.permute.xlu0 %2502 }
 0xf58   : > { %v2512_v32 = vmul.f32 %v2503_v45, %v4609_v30 }
 0xf5f   : > { %v2505_v46 = vpop.permute.xlu1 %2504 }
 0xf60   : > { %v2513_v26 = vmul.f32 %v2505_v46, %v2436_v33  ;;  %v1360_v46 = vpop.f32.mrf.mxu3 }
 0xf62   : > { %v2515_v47 = vpack.c.bf16 %v2513_v26, %v2512_v32  ;;  %v1361_v32 = vadd.f32 %v4659_v40, %v1360_v46 }
 0xf64   : > { %2520 = vrot.lane.b32.xlu0 %v2515_v47, %s3933_s26 }
 0xf67   : > { %v755_v7 = vpop.permute.xlu1 %754 }
 0xf68   : > { %vm796_vm8 = vcmp.eq.s32.totalorder %v4085_v20, %v755_v7  ;;  %v1362_v7 = vpop.f32.mrf.mxu3 }
 0xf69   : > { %v829_v1 = vsel %vm796_vm8, 1.0, %v3931_v25 }
 0xf6a   : > { %v848_v8 = vpack.c.bf16 %v830_v49, %v829_v1  ;;  %v1363_v49 = vadd.f32 %v4659_v40, %v1362_v7 }
 0xf6c   : > { %3425 = vmatmul.msk.bf16.gmra.mxu0 %vm863_vm2, %v848_v8 }
 0xfc7   : > { %v2537_v30 = vpop.f32.mrf.mxu1 }
 0xfc8   : > { %v2547_v16 = vadd.f32 %v2537_v30, %v1356_v29 }
 0xfca   : > { %v3540_v53 = vmul.f32 -1.442695, %v2547_v16 }
 0xfcc   : > { %3860 = vpow2.f32 %v3540_v53  ;;  %v761_v53 = vpop.permute.xlu2 %760 }
 0xfcd   : > { %vm798_vm1 = vcmp.eq.s32.totalorder %v4085_v20, %v761_v53 }
 0xfcf   : > { %v2539_v56 = vpop.f32.mrf.mxu1 }
 0xfd0   : > { %v2548_v58 = vadd.f32 %v2539_v56, %v1358_v15  ;;  %v831_v56 = vsel %vm798_vm1, 1.0, %v3931_v25 }
 0xfd2   : > { %v3861_v59 = vpop.eup %3860  ;;  %v3541_v22 = vmul.f32 -1.442695, %v2548_v58 }
 0xfd3   : > { %v2563_v31 = vadd.f32 1.0, %v3861_v59 }
 0xfd4   : > { %3862 = vpow2.f32 %v3541_v22 }
 0xfd5   : > { %3864 = vrcp.f32 %v2563_v31  ;;  %v2578_v4 = vand.u32 2147483648, %v2563_v31  ;;  %v2576_v9 = vand.u32 2147483647, %v2563_v31  ;;  %vm2572_vm10 = vweird.f32 %v2563_v31 }
 0xfd6   : > { %v2521_v62 = vpop.permute.xlu0 %2520 }
 0xfd7   : > { %3539 = vmatmul.msk.bf16.gmra.mxu1 %vm863_vm2, %v2521_v62  ;;  %v2579_v10 = vor.u32 1.1754944e-38, %v2578_v4  ;;  %vm2577_vm12 = vcmp.eq.f32.partialorder %v2576_v9, 8.507059e+37 }
 0xfda   : > { %v3863_v33 = vpop.eup %3862 }
 0xfdb   : > { %v3865_v34 = vpop.eup %3864  ;;  %v2564_v63 = vadd.f32 1.0, %v3863_v33 }
 0xfdc   : > { %v2568_v0 = vmul.f32 %v3865_v34, %v2563_v31  ;;  %vm2573_vm9 = vweird.f32 %v3865_v34 }
 0xfdd   : > { %3866 = vrcp.f32 %v2564_v63  ;;  %vm2574_vm11 = vmor %vm2572_vm10, %vm2573_vm9  ;;  %v2593_v12 = vand.u32 2147483648, %v2564_v63  ;;  %v2591_v36 = vand.u32 2147483647, %v2564_v63  ;;  %vm2587_vm14 = vweird.f32 %v2564_v63 }
 0xfde   : > { %v2569_v2 = vsub.f32 1.0, %v2568_v0 }
 0xfdf   : > { %v2594_v37 = vor.u32 1.1754944e-38, %v2593_v12  ;;  %vm2592_vm0 = vcmp.eq.f32.partialorder %v2591_v36, 8.507059e+37 }
 0xfe0   : > { %v2570_v55 = vmul.f32 %v3865_v34, %v2569_v2 }
 0xfe2   : > { %v2571_v41 = vadd.f32 %v3865_v34, %v2570_v55 }
 0xfe3   : > { %v3867_v35 = vpop.eup %3866 }
 0xfe4   : > { %v2583_v50 = vmul.f32 %v3867_v35, %v2564_v63  ;;  %v2575_v11 = vsel %vm2574_vm11, %v3865_v34, %v2571_v41  ;;  %vm2588_vm13 = vweird.f32 %v3867_v35 }
 0xfe5   : > { %v4664_v14 = vsel %vm2577_vm12, %v2579_v10, %v2575_v11  ;;  %vm2589_vm15 = vmor %vm2587_vm14, %vm2588_vm13 }
 0xfe6   : > { %v2584_v44 = vsub.f32 1.0, %v2583_v50  ;;  %v2627_v48 = vmul.f32 2.0, %v4664_v14 }
 0xfe8   : > { %v3544_v23 = vadd.f32 -1.0, %v2627_v48  ;;  %v2585_v51 = vmul.f32 %v3867_v35, %v2584_v44 }
 0xfe9   : > { %v994_v21 = vpop.f32.mrf.mxu0 }
 0xfea   : > { %2643 = vrot.lane.b32.xlu0 %v3544_v23, %s3932_s3  ;;  %v2586_v17 = vadd.f32 %v3867_v35, %v2585_v51 }
 0xfec   : > { %v2590_v38 = vsel %vm2589_vm15, %v3867_v35, %v2586_v17 }
 0xfed   : > { %v4668_v42 = vsel %vm2592_vm0, %v2594_v37, %v2590_v38 }
 0xfee   : > { %v2628_v24 = vmul.f32 2.0, %v4668_v42  ;;  %v2636_v7 = vmul.f32 %v4668_v42, %v4627_v13 }
 0xff0   : > { %v3545_v39 = vadd.f32 -1.0, %v2628_v24  ;;  %v2635_v24 = vmul.f32 %v4664_v14, %v4618_v5 }
 0xff1   : > { %v996_v43 = vpop.f32.mrf.mxu0 }
 0xff2   : > { %v1216_v45 = vpack.c.bf16 %v996_v43, %v994_v21  ;;  %2645 = vrot.lane.b32.xlu1 %v3545_v39, %s3932_s3  ;;  %763 = vperm.xlu0 %3708, %v665_v57  }
 0xff4   : > { %3470 = vmatmul.msk.bf16.gmra.mxu3 %vm863_vm2, %v1216_v45 }
0x1054   : > { %v2542_v26 = vpop.f32.mrf.mxu1 }
0x1055   : > { %v2549_v47 = vadd.f32 %v2542_v26, %v1361_v32 }
0x1057   : > { %v3542_v60 = vmul.f32 -1.442695, %v2549_v47 }
0x1059   : > { %3868 = vpow2.f32 %v3542_v60 }
0x105c   : > { %v2544_v1 = vpop.f32.mrf.mxu1  ;;  %v2644_v8 = vpop.permute.xlu0 %2643 }
0x105d   : > { %v2550_v52 = vadd.f32 %v2544_v1, %v1363_v49  ;;  %v2655_v29 = vmul.f32 %v2644_v8, %v4664_v14 }
0x105f   : > { %v3869_v30 = vpop.eup %3868  ;;  %v3543_v16 = vmul.f32 -1.442695, %v2550_v52  ;;  %2663 = vrot.lane.b32.xlu0 %v2655_v29, %s3933_s26 }
0x1060   : > { %v2565_v54 = vadd.f32 1.0, %v3869_v30 }
0x1061   : > { %3870 = vpow2.f32 %v3543_v16 }
0x1062   : > { %3872 = vrcp.f32 %v2565_v54  ;;  %v2608_v63 = vand.u32 2147483648, %v2565_v54  ;;  %v2606_v2 = vand.u32 2147483647, %v2565_v54  ;;  %vm2602_vm5 = vweird.f32 %v2565_v54 }
0x1064   : > { %v764_v15 = vpop.permute.xlu0 %763  ;;  %v2609_v55 = vor.u32 1.1754944e-38, %v2608_v63  ;;  %vm2607_vm7 = vcmp.eq.f32.partialorder %v2606_v2, 8.507059e+37  ;;  %v2646_v36 = vpop.permute.xlu1 %2645 }
0x1065   : > { %vm799_vm3 = vcmp.eq.s32.totalorder %v4085_v20, %v764_v15  ;;  %v2656_v37 = vmul.f32 %v2646_v36, %v4668_v42 }
0x1066   : > { %v832_v58 = vsel %vm799_vm3, 1.0, %v3931_v25 }
0x1067   : > { %v3871_v59 = vpop.eup %3870  ;;  %v849_v22 = vpack.c.bf16 %v832_v58, %v831_v56 }
0x1068   : > { %v3873_v31 = vpop.eup %3872  ;;  %v2566_v62 = vadd.f32 1.0, %v3871_v59 }
0x1069   : > { %v2598_v33 = vmul.f32 %v3873_v31, %v2565_v54  ;;  %3426 = vmatmul.msk.bf16.gmra.mxu0 %vm863_vm2, %v849_v22  ;;  %vm2603_vm4 = vweird.f32 %v3873_v31 }
0x106a   : > { %3874 = vrcp.f32 %v2566_v62  ;;  %vm2604_vm6 = vmor %vm2602_vm5, %vm2603_vm4  ;;  %v2623_v50 = vand.u32 2147483648, %v2566_v62  ;;  %v2621_v48 = vand.u32 2147483647, %v2566_v62  ;;  %vm2617_vm9 = vweird.f32 %v2566_v62 }
0x106b   : > { %v2599_v34 = vsub.f32 1.0, %v2598_v33 }
0x106c   : > { %v2624_v23 = vor.u32 1.1754944e-38, %v2623_v50  ;;  %vm2622_vm11 = vcmp.eq.f32.partialorder %v2621_v48, 8.507059e+37 }
0x106d   : > { %v2600_v0 = vmul.f32 %v3873_v31, %v2599_v34 }
0x106f   : > { %v2601_v4 = vadd.f32 %v3873_v31, %v2600_v0 }
0x1070   : > { %v3875_v20 = vpop.eup %3874 }
0x1071   : > { %v2613_v9 = vmul.f32 %v3875_v20, %v2566_v62  ;;  %v2605_v25 = vsel %vm2604_vm6, %v3873_v31, %v2601_v4  ;;  %vm2618_vm8 = vweird.f32 %v3875_v20 }
0x1072   : > { %v4683_v41 = vsel %vm2607_vm7, %v2609_v55, %v2605_v25  ;;  %vm2619_vm10 = vmor %vm2617_vm9, %vm2618_vm8 }
0x1073   : > { %v2614_v35 = vsub.f32 1.0, %v2613_v9  ;;  %v2629_v10 = vmul.f32 2.0, %v4683_v41  ;;  %v2637_v52 = vmul.f32 %v4683_v41, %v4633_v18 }
0x1075   : > { %v3546_v11 = vadd.f32 -1.0, %v2629_v10  ;;  %v2615_v44 = vmul.f32 %v3875_v20, %v2614_v35 }
0x1077   : > { %2647 = vrot.lane.b32.xlu1 %v3546_v11, %s3932_s3  ;;  %v2616_v12 = vadd.f32 %v3875_v20, %v2615_v44 }
0x1079   : > { %v2620_v51 = vsel %vm2619_vm10, %v3875_v20, %v2616_v12 }
0x107a   : > { %v2625_v21 = vsel %vm2622_vm11, %v2624_v23, %v2620_v51 }
0x107b   : > { %v2630_v17 = vmul.f32 2.0, %v2625_v21  ;;  %v2638_v13 = vmul.f32 %v2625_v21, %v4637_v28 }
0x107d   : > { %v3547_v38 = vadd.f32 -1.0, %v2630_v17 }
0x107f   : > { %2665 = vrot.lane.b32.xlu1 %v2656_v37, %s3933_s26  ;;  %2649 = vrot.lane.b32.xlu2 %v3547_v38, %s3932_s3 }
0x10d1   : > { %v2664_v57 = vpop.permute.xlu0 %2663 }
0x10d2   : > { %v4692_v39 = vadd.f32 %v2664_v57, %v2635_v24 }
0x10d4   : > { %3876 = vtanh.f32 %v4692_v39 }
0x10d9   : > { %v2650_v43 = vpop.permute.xlu2 %2649 }
0x10da   : > { %v3877_v45 = vpop.eup %3876  ;;  %v2658_v46 = vmul.f32 %v2650_v43, %v2625_v21 }
0x10db   : > { %2687 = vrot.lane.b32.xlu1 %v3877_v45, %s3932_s3 }
0x10dc   : > { %2669 = vrot.lane.b32.xlu0 %v2658_v46, %s3933_s26 }
0x10e6   : > { %v999_v32 = vpop.f32.mrf.mxu0 }
0x10e9   : > { %v2648_v26 = vpop.permute.xlu1 %2647 }
0x10ea   : > { %v2657_v47 = vmul.f32 %v2648_v26, %v4683_v41 }
0x10ec   : > { %2667 = vrot.lane.b32.xlu2 %v2657_v47, %s3933_s26 }
0x10ee   : > { %v1001_v60 = vpop.f32.mrf.mxu0 }
0x10ef   : > { %v1217_v5 = vpack.c.bf16 %v1001_v60, %v999_v32 }
0x10f1   : > { %v2666_v49 = vpop.permute.xlu1 %2665  ;;  %3471 = vmatmul.msk.bf16.gmra.mxu3 %vm863_vm2, %v1217_v5 }
0x10f2   : > { %v4702_v1 = vadd.f32 %v2666_v49, %v2636_v7 }
0x10f4   : > { %3878 = vtanh.f32 %v4702_v1 }
0x10fa   : > { %v3879_v8 = vpop.eup %3878 }
0x10fb   : > { %2689 = vrot.lane.b32.xlu2 %v3879_v8, %s3932_s3 }
0x1146   : > { %v2668_v29 = vpop.permute.xlu2 %2667 }
0x1147   : > { %v4708_v30 = vadd.f32 %v2668_v29, %v2637_v52 }
0x1149   : > { %3880 = vtanh.f32 %v4708_v30 }
0x114d   : > { %v2688_v15 = vpop.permute.xlu1 %2687 }
0x114e   : > { %v2670_v16 = vpop.permute.xlu0 %2669  ;;  %v2699_v58 = vmul.f32 %v2688_v15, %v4664_v14  ;;  %v1365_v14 = vpop.f32.mrf.mxu3 }
0x114f   : > { %v3881_v53 = vpop.eup %3880  ;;  %v4712_v54 = vadd.f32 %v2670_v16, %v2638_v13 }
0x1150   : > { %2691 = vrot.lane.b32.xlu0 %v3881_v53, %s3932_s3 }
0x1151   : > { %3882 = vtanh.f32 %v4712_v54 }
0x1155   : > { %v2690_v56 = vpop.permute.xlu2 %2689 }
0x1156   : > { %v2700_v18 = vmul.f32 %v2690_v56, %v4668_v42  ;;  %v1366_v42 = vadd.f32 %v4659_v40, %v1365_v14  ;;  %v1367_v20 = vpop.f32.mrf.mxu3 }
0x1157   : > { %v3883_v59 = vpop.eup %3882  ;;  %v1368_v55 = vadd.f32 %v4659_v40, %v1367_v20 }
0x1158   : > { %v2703_v22 = vpack.c.bf16 %v2700_v18, %v2699_v58  ;;  %2693 = vrot.lane.b32.xlu1 %v3883_v59, %s3932_s3 }
0x115a   : > { %2707 = vrot.lane.b32.xlu2 %v2703_v22, %s3933_s26 }
0x1174   : > { %v1370_v13 = vpop.f32.mrf.mxu3 }
0x1175   : > { %v1371_v16 = vadd.f32 %v4659_v40, %v1370_v13 }
0x117c   : > { %v1372_v58 = vpop.f32.mrf.mxu3 }
0x117d   : > { %v1373_v18 = vadd.f32 %v4659_v40, %v1372_v58 }
0x11b4   : > { %v2708_v28 = vpop.permute.xlu2 %2707 }
0x11b5   : > { %3548 = vmatmul.msk.bf16.vlgmr.msrb.gmra.mxu2 %vm863_vm2, %v2708_v28 }
0x11c2   : > { %v2692_v31 = vpop.permute.xlu0 %2691 }
0x11c3   : > { %v2701_v33 = vmul.f32 %v2692_v31, %v4683_v41 }
0x11ca   : > { %v2694_v62 = vpop.permute.xlu1 %2693 }
0x11cb   : > { %v2702_v34 = vmul.f32 %v2694_v62, %v2625_v21 }
0x11cd   : > { %v2704_v63 = vpack.c.bf16 %v2702_v34, %v2701_v33 }
0x11cf   : > { %2709 = vrot.lane.b32.xlu0 %v2704_v63, %s3933_s26 }
0x1238   : > { %v2726_v0 = vpop.f32.mrf.mxu2 }
0x1239   : > { %v2736_v2 = vadd.f32 %v2726_v0, %v1366_v42 }
0x123b   : > { %v3550_v4 = vmul.f32 -1.442695, %v2736_v2 }
0x123d   : > { %3884 = vpow2.f32 %v3550_v4 }
0x1240   : > { %v2728_v9 = vpop.f32.mrf.mxu2 }
0x1241   : > { %v2737_v25 = vadd.f32 %v2728_v9, %v1368_v55  ;;  %v2710_v35 = vpop.permute.xlu0 %2709 }
0x1242   : > { %3549 = vmatmul.msk.bf16.gmra.mxu2 %vm863_vm2, %v2710_v35 }
0x1243   : > { %v3885_v41 = vpop.eup %3884  ;;  %v3551_v10 = vmul.f32 -1.442695, %v2737_v25 }
0x1244   : > { %v2752_v50 = vadd.f32 1.0, %v3885_v41 }
0x1245   : > { %3886 = vpow2.f32 %v3551_v10 }
0x1246   : > { %3888 = vrcp.f32 %v2752_v50  ;;  %v2767_v51 = vand.u32 2147483648, %v2752_v50  ;;  %v2765_v21 = vand.u32 2147483647, %v2752_v50  ;;  %vm2761_vm13 = vweird.f32 %v2752_v50 }
0x1248   : > { %v2768_v38 = vor.u32 1.1754944e-38, %v2767_v51  ;;  %vm2766_vm15 = vcmp.eq.f32.partialorder %v2765_v21, 8.507059e+37 }
0x124b   : > { %v3887_v11 = vpop.eup %3886 }
0x124c   : > { %v3889_v44 = vpop.eup %3888  ;;  %v2753_v48 = vadd.f32 1.0, %v3887_v11 }
0x124d   : > { %v2757_v12 = vmul.f32 %v3889_v44, %v2752_v50  ;;  %vm2762_vm12 = vweird.f32 %v3889_v44 }
0x124e   : > { %3890 = vrcp.f32 %v2753_v48  ;;  %vm2763_vm14 = vmor %vm2761_vm13, %vm2762_vm12  ;;  %v2782_v32 = vand.u32 2147483648, %v2753_v48  ;;  %v2780_v60 = vand.u32 2147483647, %v2753_v48  ;;  %vm2776_vm1 = vweird.f32 %v2753_v48 }
0x124f   : > { %v2758_v23 = vsub.f32 1.0, %v2757_v12 }
0x1250   : > { %v2783_v7 = vor.u32 1.1754944e-38, %v2782_v32  ;;  %vm2781_vm4 = vcmp.eq.f32.partialorder %v2780_v60, 8.507059e+37 }
0x1251   : > { %v2759_v36 = vmul.f32 %v3889_v44, %v2758_v23 }
0x1253   : > { %v2760_v17 = vadd.f32 %v3889_v44, %v2759_v36 }
0x1254   : > { %v3891_v37 = vpop.eup %3890 }
0x1255   : > { %v2772_v24 = vmul.f32 %v3891_v37, %v2753_v48  ;;  %v2764_v57 = vsel %vm2763_vm14, %v3889_v44, %v2760_v17  ;;  %vm2777_vm0 = vweird.f32 %v3891_v37 }
0x1256   : > { %v4726_v43 = vsel %vm2766_vm15, %v2768_v38, %v2764_v57  ;;  %vm2778_vm3 = vmor %vm2776_vm1, %vm2777_vm0  ;;  %vm3288_vm15 = vcmask 64512  }
0x1257   : > { %v2773_v45 = vsub.f32 1.0, %v2772_v24  ;;  %v2816_v46 = vmul.f32 2.0, %v4726_v43 }
0x1259   : > { %v2774_v26 = vmul.f32 %v3891_v37, %v2773_v45  ;;  %v3554_v47 = vadd.f32 -1.0, %v2816_v46  ;;  %v3918_v45 = vld [vmem:[%s4876_s8] ss:$0 sm:$0xff] }
0x125a   : > { %v1189_v46 = vadd.f32 %v3918_v45, %v4267_v3  ;;  %v1191_v3 = vadd.f32 %v3918_v45, %v4271_v27 }
0x125b   : > { %2832 = vrot.lane.b32.xlu1 %v3554_v47, %s3932_s3  ;;  %v2775_v5 = vadd.f32 %v3891_v37, %v2774_v26  ;;  %v2824_v26 = vmul.f32 %v4726_v43, %v4692_v39 }
0x125c   : > { %v1198_v32 = vmax.f32 %v1189_v46, 0.0  ;;  %v3654_v46 = vld [vmem:[%s4877_s9] sm:$0xff] }
0x125d   : > { %v2779_v49 = vsel %vm2778_vm3, %v3891_v37, %v2775_v5  ;;  %vm3334_vm3 = vcmask 57344  }
0x125e   : > { %v4730_v8 = vsel %vm2781_vm4, %v2783_v7, %v2779_v49  ;;  %v1200_v7 = vmax.f32 %v4276_v6, 0.0 }
0x125f   : > { %v2817_v52 = vmul.f32 2.0, %v4730_v8 }
0x1261   : > { %v3555_v29 = vadd.f32 -1.0, %v2817_v52 }
0x1263   : > { %2834 = vrot.lane.b32.xlu2 %v3555_v29, %s3932_s3  ;;  %v2825_v29 = vmul.f32 %v4730_v8, %v4702_v1 }
0x12bd   : > { %v2835_v17 = vpop.permute.xlu2 %2834 }
0x12be   : > { %v2845_v24 = vmul.f32 %v2835_v17, %v4730_v8 }
0x12c5   : > { %v2731_v53 = vpop.f32.mrf.mxu2 }
0x12c6   : > { %v2738_v15 = vadd.f32 %v2731_v53, %v1371_v16  ;;  %v1199_v16 = vmax.f32 %v1191_v3, 0.0 }
0x12c8   : > { %v3552_v56 = vmul.f32 -1.442695, %v2738_v15 }
0x12ca   : > { %3892 = vpow2.f32 %v3552_v56  ;;  %v1196_v56 = vadd.f32 %v3918_v45, %v4292_v19 }
0x12cc   : > { %v1201_v58 = vmax.f32 %v1196_v56, 0.0 }
0x12cd   : > { %v2833_v59 = vpop.permute.xlu1 %2832  ;;  %v2733_v22 = vpop.f32.mrf.mxu2 }
0x12ce   : > { %v2844_v28 = vmul.f32 %v2833_v59, %v4726_v43  ;;  %v2739_v31 = vadd.f32 %v2733_v22, %v1373_v18 }
0x12d0   : > { %v3893_v62 = vpop.eup %3892  ;;  %v3553_v33 = vmul.f32 -1.442695, %v2739_v31  ;;  %2852 = vrot.lane.b32.xlu2 %v2844_v28, %s3933_s26 }
0x12d1   : > { %v2754_v34 = vadd.f32 1.0, %v3893_v62 }
0x12d2   : > { %3894 = vpow2.f32 %v3553_v33 }
0x12d3   : > { %3896 = vrcp.f32 %v2754_v34  ;;  %v2797_v4 = vand.u32 2147483648, %v2754_v34  ;;  %v2795_v20 = vand.u32 2147483647, %v2754_v34  ;;  %vm2791_vm6 = vweird.f32 %v2754_v34 }
0x12d5   : > { %v2798_v25 = vor.u32 1.1754944e-38, %v2797_v4  ;;  %vm2796_vm8 = vcmp.eq.f32.partialorder %v2795_v20, 8.507059e+37 }
0x12d8   : > { %v3895_v63 = vpop.eup %3894 }
0x12d9   : > { %v3897_v14 = vpop.eup %3896  ;;  %v2755_v42 = vadd.f32 1.0, %v3895_v63 }
0x12da   : > { %v2787_v0 = vmul.f32 %v3897_v14, %v2754_v34  ;;  %vm2792_vm5 = vweird.f32 %v3897_v14 }
0x12db   : > { %3898 = vrcp.f32 %v2755_v42  ;;  %vm2793_vm7 = vmor %vm2791_vm6, %vm2792_vm5  ;;  %v2812_v44 = vand.u32 2147483648, %v2755_v42  ;;  %v2810_v23 = vand.u32 2147483647, %v2755_v42  ;;  %vm2806_vm10 = vweird.f32 %v2755_v42 }
0x12dc   : > { %v2788_v2 = vsub.f32 1.0, %v2787_v0 }
0x12dd   : > { %v2813_v36 = vor.u32 1.1754944e-38, %v2812_v44  ;;  %vm2811_vm12 = vcmp.eq.f32.partialorder %v2810_v23, 8.507059e+37 }
0x12de   : > { %v2789_v40 = vmul.f32 %v3897_v14, %v2788_v2 }
0x12e0   : > { %v2790_v55 = vadd.f32 %v3897_v14, %v2789_v40 }
0x12e1   : > { %v3899_v9 = vpop.eup %3898 }
0x12e2   : > { %v2802_v35 = vmul.f32 %v3899_v9, %v2755_v42  ;;  %v2794_v41 = vsel %vm2793_vm7, %v3897_v14, %v2790_v55  ;;  %vm2807_vm9 = vweird.f32 %v3899_v9 }
0x12e3   : > { %v4738_v10 = vsel %vm2796_vm8, %v2798_v25, %v2794_v41  ;;  %vm2808_vm11 = vmor %vm2806_vm10, %vm2807_vm9 }
0x12e4   : > { %v2803_v50 = vsub.f32 1.0, %v2802_v35  ;;  %v2818_v11 = vmul.f32 2.0, %v4738_v10  ;;  %v2826_v27 = vmul.f32 %v4738_v10, %v4708_v30 }
0x12e6   : > { %v2804_v48 = vmul.f32 %v3899_v9, %v2803_v50  ;;  %v3556_v12 = vadd.f32 -1.0, %v2818_v11 }
0x12e8   : > { %2836 = vrot.lane.b32.xlu0 %v3556_v12, %s3932_s3  ;;  %v2805_v51 = vadd.f32 %v3899_v9, %v2804_v48 }
0x12ea   : > { %v2809_v21 = vsel %vm2808_vm11, %v3899_v9, %v2805_v51 }
0x12eb   : > { %v4742_v37 = vsel %vm2811_vm12, %v2813_v36, %v2809_v21 }
0x12ec   : > { %v2819_v38 = vmul.f32 2.0, %v4742_v37  ;;  %v2827_v22 = vmul.f32 %v4742_v37, %v4712_v54 }
0x12ee   : > { %v3557_v57 = vadd.f32 -1.0, %v2819_v38  ;;  %v3655_v38 = vld [vmem:[%s4877_s9 + $0x8] sm:$0xff] }
0x12ef   : > { %3011 = vmatpush.bf16.msra.mxu2 %v3655_v38  ;;  %v3671_v38 = vld [vmem:[%s4883_s15 + $0x28] sm:$0xff] }
0x12f0   : > { %2854 = vrot.lane.b32.xlu0 %v2845_v24, %s3933_s26  ;;  %2838 = vrot.lane.b32.xlu1 %v3557_v57, %s3932_s3 }
0x12f3   : > { %3012 = vmatpush.bf16.msra.mxu2 %v3654_v46 }
0x12f8   : > { %2896 = vrot.lane.b32.xlu0 %v1198_v32, %s3934_s2 }
0x132a   : > { %v2853_v47 = vpop.permute.xlu2 %2852 }
0x132b   : > { %v2864_v60 = vadd.f32 %v2853_v47, %v2824_v26 }
0x132d   : > { %3900 = vtanh.f32 %v2864_v60 }
0x1333   : > { %v3901_v5 = vpop.eup %3900 }
0x1334   : > { %2876 = vrot.lane.b32.xlu0 %v3901_v5, %s3932_s3  ;;  %v3281_v5 = vld [vmem:[#allocation2] sm:$0x1] }
0x133c   : > { %2900 = vrot.lane.b32.xlu0 %v1200_v7, %s3934_s2 }
0x135a   : > { %v2837_v49 = vpop.permute.xlu0 %2836 }
0x135b   : > { %v2846_v52 = vmul.f32 %v2837_v49, %v4738_v10 }
0x135d   : > { %2856 = vrot.lane.b32.xlu1 %v2846_v52, %s3933_s26 }
0x1362   : > { %v2855_v39 = vpop.permute.xlu0 %2854  ;;  %v2839_v13 = vpop.permute.xlu1 %2838 }
0x1363   : > { %v2865_v53 = vadd.f32 %v2855_v39, %v2825_v29  ;;  %v2847_v15 = vmul.f32 %v2839_v13, %v4742_v37 }
0x1365   : > { %3902 = vtanh.f32 %v2865_v53  ;;  %2898 = vrot.lane.b32.xlu1 %v1199_v16, %s3934_s2  ;;  %2858 = vrot.lane.b32.xlu2 %v2847_v15, %s3933_s26 }
0x136a   : > { %v2897_v19 = vpop.permute.xlu0 %2896 }
0x136b   : > { %v3903_v6 = vpop.eup %3902 }
0x136d   : > { %2878 = vrot.lane.b32.xlu1 %v3903_v6, %s3932_s3 }
0x1375   : > { %2902 = vrot.lane.b32.xlu1 %v1201_v58, %s3934_s2 }
0x13a6   : > { %v2877_v34 = vpop.permute.xlu0 %2876 }
0x13a7   : > { %v2888_v14 = vmul.f32 %v2877_v34, %v4726_v43 }
0x13a9   : > { %v2908_v2 = vadd.f32 %v2897_v19, %v2888_v14  ;;  %v3663_v14 = vld [vmem:[%s4879_s11 + $0x8] sm:$0xff] }
0x13ab   : > { %v2912_v55 = vmul.f32 %v2908_v2, %v2908_v2 }
0x13ae   : > { %v2901_v4 = vpop.permute.xlu0 %2900 }
0x13bf   : > { %v2859_v59 = vpop.permute.xlu2 %2858 }
0x13c0   : > { %v2867_v28 = vadd.f32 %v2859_v59, %v2827_v22  ;;  %v3658_v22 = vld [vmem:[%s4877_s9 + $0x20] sm:$0xff] }
0x13cf   : > { %v2857_v1 = vpop.permute.xlu1 %2856 }
0x13d0   : > { %v2866_v18 = vadd.f32 %v2857_v1, %v2826_v27  ;;  %v3657_v27 = vld [vmem:[%s4877_s9 + $0x18] sm:$0xff]  ;;  %v3656_v1 = vld [vmem:[%s4877_s9 + $0x10] sm:$0xff] }
0x13d1   : > { %2980 = vmatpush.bf16.msrb.mxu1 %v3657_v27 }
0x13d2   : > { %3904 = vtanh.f32 %v2866_v18  ;;  %v3659_v18 = vld [vmem:[%s4877_s9 + $0x28] sm:$0xff] }
0x13d3   : > { %3906 = vtanh.f32 %v2867_v28  ;;  %v3661_v28 = vld [vmem:[%s4877_s9 + $0x38] sm:$0xff] }
0x13d4   : > { %3084 = vmatpush.bf16.msrb.mxu2 %v3661_v28 }
0x13d5   : > { %2981 = vmatpush.bf16.msrb.mxu1 %v3656_v1 }
0x13d7   : > { %v2899_v33 = vpop.permute.xlu1 %2898 }
0x13d8   : > { %v3905_v31 = vpop.eup %3904 }
0x13d9   : > { %2880 = vrot.lane.b32.xlu2 %v3905_v31, %s3932_s3  ;;  %v3907_v62 = vpop.eup %3906  ;;  %3047 = vmatpush.bf16.msra.mxu1 %v3659_v18  ;;  %v3660_v31 = vld [vmem:[%s4877_s9 + $0x30] sm:$0xff] }
0x13da   : > { %3085 = vmatpush.bf16.msrb.mxu2 %v3660_v31 }
0x13dd   : > { %3048 = vmatpush.bf16.msra.mxu1 %v3658_v22 }
0x13df   : > { %v2879_v63 = vpop.permute.xlu1 %2878 }
0x13e0   : > { %v2889_v30 = vmul.f32 %v2879_v63, %v4730_v8 }
0x13e1   : > { %2882 = vrot.lane.b32.xlu2 %v3907_v62, %s3932_s3  ;;  %s624_s3 = scalar_lea.vmem %s4887_s19, %s4903_s21 }
0x13e2   : > { %v2909_v54 = vadd.f32 %v2899_v33, %v2889_v30 }
0x13e4   : > { %v2916_v20 = vmul.f32 %v2909_v54, %v2909_v54  ;;  %v2913_v25 = vadd.f32 %v2909_v54, %v2908_v2  ;;  %v2914_v35 = vmax.f32 %v2908_v2, %v2909_v54  ;;  %v2915_v24 = vmin.f32 %v2908_v2, %v2909_v54 }
0x13e6   : > { %v2917_v44 = vadd.f32 %v2916_v20, %v2912_v55  ;;  %v3712_v20 = vld [vmem:[%s4878_s10] ss:$0 sm:$0xff] }
0x13e7   : > { %v2903_v11 = vpop.permute.xlu1 %2902 }
0x1433   : > { %v2881_v42 = vpop.permute.xlu2 %2880 }
0x1434   : > { %v2890_v0 = vmul.f32 %v2881_v42, %v4738_v10 }
0x1436   : > { %v2910_v40 = vadd.f32 %v2901_v4, %v2890_v0  ;;  %v3662_v0 = vld [vmem:[%s4879_s11] sm:$0xff] }
0x1438   : > { %v2921_v41 = vmul.f32 %v2910_v40, %v2910_v40  ;;  %v2918_v8 = vadd.f32 %v2913_v25, %v2910_v40  ;;  %v2919_v43 = vmax.f32 %v2914_v35, %v2910_v40  ;;  %v2920_v26 = vmin.f32 %v2915_v24, %v2910_v40  ;;  %v3670_v24 = vld [vmem:[%s4883_s15 + $0x20] sm:$0xff] }
0x143a   : > { %v2922_v12 = vadd.f32 %v2921_v41, %v2917_v44  ;;  %v3664_v44 = vld [vmem:[%s4881_s13] sm:$0xff] }
0x143b   : > { %v2883_v9 = vpop.permute.xlu2 %2882 }
0x143c   : > { %v2891_v50 = vmul.f32 %v2883_v9, %v4742_v37 }
0x143e   : > { %v2911_v48 = vadd.f32 %v2903_v11, %v2891_v50  ;;  %v3665_v11 = vld [vmem:[%s4881_s13 + $0x8] sm:$0xff] }
0x1440   : > { %v2926_v23 = vmul.f32 %v2911_v48, %v2911_v48  ;;  %v2924_v10 = vmax.f32 %v2919_v43, %v2911_v48  ;;  %v2923_v51 = vadd.f32 %v2918_v8, %v2911_v48  ;;  %v2925_v60 = vmin.f32 %v2920_v26, %v2911_v48  ;;  %v3669_v8 = vld [vmem:[%s4883_s15 + $0x18] sm:$0xff]  ;;  %v3713_v48 = vld [vmem:[%s4880_s12] ss:$0 sm:$0xff] }
0x1442   : > { %v2927_v36 = vadd.f32 %v2926_v23, %v2922_v12  ;;  %v2951_v21 = vpack.c.bf16 %v2924_v10, %v2924_v10  ;;  %v2928_v17 = vmul.f32 0.25, %v2923_v51  ;;  %v3018_v49 = vpack.c.bf16 %v2925_v60, %v2925_v60 }
0x1443   : > { %v3240_v60 = vpack.c.bf16 %v4263_v61, %v4263_v61 }
0x1444   : > { %v2929_v57 = vmul.f32 0.25, %v2927_v36  ;;  %2957 = vrot.lane.b32.xlu0 %v2951_v21, %s3933_s26  ;;  %v2946_v37 = vpack.c.bf16 %v2928_v17, %v2928_v17  ;;  %v2930_v45 = vmul.f32 %v2928_v17, %v2928_v17  ;;  %v3667_v36 = vld [vmem:[%s4883_s15 + $0x8] sm:$0xff]  ;;  %v3668_v21 = vld [vmem:[%s4883_s15 + $0x10] sm:$0xff]  ;;  %v3666_v17 = vld [vmem:[%s4883_s15] sm:$0xff] }
0x1446   : > { %2988 = vrot.lane.b32.xlu2 %v2946_v37, %s3933_s26  ;;  %v2931_v32 = vsub.f32 %v2929_v57, %v2930_v45  ;;  %v3714_v57 = vld [vmem:[%s4882_s14] ss:$0 sm:$0xff] }
0x1448   : > { %v2932_v47 = vmax.f32 %v2931_v32, 0.0 }
0x144a   : > { %v2933_v7 = vadd.f32 1e-05, %v2932_v47 }
0x144c   : > { %3284 = vperm.xlu0 %3708, %v3281_v5   ;;  %3908 = vrsqrt.f32 %v2933_v7  ;;  %vm2941_vm13 = vcmp.eq.f32.partialorder %v2933_v7, inf  ;;  %v2944_v15 = vand.u32 2147483648, %v2933_v7  ;;  %vm2943_vm14 = vcmp.eq.f32.partialorder %v2933_v7, 0.0 }
0x144e   : > { %3024 = vrot.lane.b32.xlu2 %v3018_v49, %s3933_s26 }
0x1452   : > { %v3909_v52 = vpop.eup %3908 }
0x1453   : > { %v2935_v3 = vmul.f32 %v3909_v52, %v2933_v7 }
0x1455   : > { %v2936_v29 = vmul.f32 %v3909_v52, %v2935_v3  ;;  %v3715_v3 = vld [vmem:[%s4884_s16] ss:$0 sm:$0xff] }
0x1457   : > { %v2937_v39 = vmul.f32 0.5, %v2936_v29 }
0x1459   : > { %v2938_v13 = vsub.f32 1.5, %v2937_v39 }
0x145b   : > { %v2939_v16 = vmul.f32 %v3909_v52, %v2938_v13 }
0x145d   : > { %v2940_v53 = vmul.f32 %v2939_v16, %v2933_v7 }
0x145f   : > { %v2942_v6 = vsel %vm2941_vm13, %v2933_v7, %v2940_v53 }
0x1460   : > { %v2945_v56 = vsel %vm2943_vm14, %v2944_v15, %v2942_v6 }
0x1461   : > { %v3055_v58 = vpack.c.bf16 %v2945_v56, %v2945_v56 }
0x1463   : > { %3061 = vrot.lane.b32.xlu1 %v3055_v58, %s3933_s26 }
0x14a0   : > { %v2989_v59 = vpop.permute.xlu2 %2988 }
0x14a1   : > { %3575 = vmatmul.msk.bf16.vlgmr.msra.gmra.mxu2 %vm863_vm2, %v2989_v59 }
0x14a2   : > { %3166 = vmatpush.bf16.msra.mxu2 %v3665_v11 }
0x14a6   : > { %3167 = vmatpush.bf16.msra.mxu2 %v3664_v44 }
0x14a8   : > { %v3025_v19 = vpop.permute.xlu2 %3024 }
0x14b6   : > { %v2958_v62 = vpop.permute.xlu0 %2957 }
0x14b7   : > { %3566 = vmatmul.msk.bf16.vlgmr.msrb.gmra.mxu1 %vm863_vm2, %v2958_v62 }
0x14b8   : > { %3128 = vmatpush.bf16.msrb.mxu1 %v3663_v14 }
0x14bc   : > { %3129 = vmatpush.bf16.msrb.mxu1 %v3662_v0 }
0x14be   : > { %v3285_v6 = vpop.permute.xlu0 %3284 }
0x14bf   : > { %v3287_v56 = vperm.slane %v3285_v6, 0 }
0x14c7   : > { %3584 = vmatmul.msk.bf16.vlgmr.msra.gmra.mxu1 %vm863_vm2, %v3025_v19 }
0x14c8   : > { %3205 = vmatpush.bf16.msra.mxu1 %v3669_v8 }
0x14cc   : > { %3206 = vmatpush.bf16.msra.mxu1 %v3668_v21 }
0x14d5   : > { %v3062_v33 = vpop.permute.xlu1 %3061 }
0x14d6   : > { %3593 = vmatmul.msk.bf16.vlgmr.msrb.gmra.mxu2 %vm863_vm2, %v3062_v33 }
0x14d7   : > { %3233 = vmatpush.bf16.msrb.mxu2 %v3667_v36 }
0x14db   : > { %3234 = vmatpush.bf16.msrb.mxu2 %v3666_v17 }
0x1524   : > { %v3014_v34 = vpop.f32.mrf.mxu2 }
0x152c   : > { %v3016_v63 = vpop.f32.mrf.mxu2 }
0x1534   : > { %v2983_v30 = vpop.f32.mrf.mxu1 }
0x1535   : > { %v3015_v4 = vadd.f32 %v3014_v34, %v2983_v30 }
0x153c   : > { %v2985_v42 = vpop.f32.mrf.mxu1 }
0x1544   : > { %v3050_v54 = vpop.f32.mrf.mxu1 }
0x1545   : > { %v3054_v40 = vadd.f32 %v3050_v54, %v3015_v4 }
0x154c   : > { %v3052_v2 = vpop.f32.mrf.mxu1 }
0x1559   : > { %v3087_v55 = vpop.f32.mrf.mxu2 }
0x155a   : > { %v3091_v9 = vadd.f32 %v3087_v55, %v3054_v40 }
0x155c   : > { %v3096_v25 = vadd.f32 %v3712_v20, %v3091_v9 }
0x155e   : > { %v3097_v35 = vmax.f32 %v3096_v25, 0.0 }
0x1560   : > { %v3098_v41 = vpack.c.bf16 %v3097_v35, %v3097_v35 }
0x1561   : > { %v3089_v50 = vpop.f32.mrf.mxu2 }
0x1562   : > { %3602 = vmatmul.msk.bf16.vlgmr.msrb.gmra.mxu1 %vm863_vm2, %v3098_v41 }
0x1563   : > { %3266 = vmatpush.bf16.msrb.mxu1 %v3671_v38 }
0x1567   : > { %3267 = vmatpush.bf16.msrb.mxu1 %v3670_v24 }
0x15df   : > { %v3131_v43 = vpop.f32.mrf.mxu1 }
0x15e0   : > { %v3132_v12 = vadd.f32 %v3713_v48, %v3131_v43 }
0x15e2   : > { %v3135_v23 = vmax.f32 %v3132_v12, 0.0 }
0x15e4   : > { %v3136_v10 = vpack.c.bf16 %v3135_v23, %v3135_v23 }
0x15e6   : > { %3611 = vmatmul.msk.bf16.vlgmr.msra.gmra.mxu2 %vm863_vm2, %v3136_v10 }
0x15e7   : > { %v3133_v51 = vpop.f32.mrf.mxu1 }
0x1669   : > { %v3169_v37 = vpop.f32.mrf.mxu2 }
0x166a   : > { %v3170_v45 = vadd.f32 %v3714_v57, %v3169_v37 }
0x166c   : > { %v3173_v46 = vmul.f32 %v3170_v45, %v4263_v61  ;;  %v3179_v32 = vpack.c.bf16 %v3170_v45, %v3170_v45  ;;  %v3280_v61 = vld [vmem:[%s4885_s17] sm:$0x1] }
0x166e   : > { %v3174_v26 = vpack.c.bf16 %v3173_v46, %v3173_v46  ;;  %3620 = vmatmul.msk.bf16.vlgmr.msra.gmra.mxu1 %vm863_vm2, %v3179_v32 }
0x1670   : > { %3629 = vmatmul.msk.bf16.vlgmr.msrb.gmra.mxu2 %vm863_vm2, %v3174_v26 }
0x1671   : > { %v3171_v47 = vpop.f32.mrf.mxu2 }
0x167e   : > { %3638 = vmatmul.msk.bf16.vlgmr.msrb.gmra.mxu1 %vm863_vm2, %v3240_v60 }
0x16eb   : > { %v3208_v5 = vpop.f32.mrf.mxu1 }
0x16f3   : > { %v3210_v7 = vpop.f32.mrf.mxu1  ;;  %v3236_v49 = vpop.f32.mrf.mxu2 }
0x16f4   : > { %v3237_v52 = vadd.f32 %v3236_v49, %v3208_v5 }
0x16fb   : > { %v3238_v29 = vpop.f32.mrf.mxu2  ;;  %v3269_v39 = vpop.f32.mrf.mxu1 }
0x16fc   : > { %v3273_v13 = vadd.f32 %v3269_v39, %v3237_v52 }
0x16fe   : > { %v3278_v16 = vadd.f32 %v3715_v3, %v3273_v13 }
0x1700   : > { %v3279_v53 = vmax.f32 %v3278_v16, 0.0 }
0x1702   : > { %3639 = vmatpush.xpose.msk.msra.mxu2 %vm3288_vm15, %v3279_v53 }
0x1703   : > { %v3271_v15 = vpop.f32.mrf.mxu1 }
0x1705   : > { %3640 = vmatmul.msk.f32.vlgmr.msra.gmra.mxu2 %vm3288_vm15, %v3280_v61 }
0x1788   : > { %v3312_v58 = vpop.f32.mrf.mxu2 }
0x1789   : > { %v3313_v27 = vadd.f32 %v3312_v58, %v3287_v56 }
0x178b   : > { %v3641_v1 = vmul.f32 -1.442695, %v3313_v27 }
0x178d   : > { %3910 = vpow2.f32 %v3641_v1 }
0x1793   : > { %v3911_v18 = vpop.eup %3910 }
0x1794   : > { %v3318_v59 = vadd.f32 1.0, %v3911_v18 }
0x1796   : > { %3912 = vrcp.f32 %v3318_v59  ;;  %v3330_v62 = vand.u32 2147483648, %v3318_v59  ;;  %v3328_v33 = vand.u32 2147483647, %v3318_v59  ;;  %vm3324_vm0 = vweird.f32 %v3318_v59 }
0x1798   : > { %v3331_v63 = vor.u32 1.1754944e-38, %v3330_v62  ;;  %vm3329_vm4 = vcmp.eq.f32.partialorder %v3328_v33, 8.507059e+37 }
0x179c   : > { %v3913_v22 = vpop.eup %3912 }
0x179d   : > { %v3320_v28 = vmul.f32 %v3913_v22, %v3318_v59  ;;  %vm3325_vm2 = vweird.f32 %v3913_v22 }
0x179e   : > { %vm3326_vm1 = vmor %vm3324_vm0, %vm3325_vm2 }
0x179f   : > { %v3321_v31 = vsub.f32 1.0, %v3320_v28 }
0x17a1   : > { %v3322_v19 = vmul.f32 %v3913_v22, %v3321_v31 }
0x17a3   : > { %v3323_v34 = vadd.f32 %v3913_v22, %v3322_v19 }
0x17a5   : > { %v3327_v30 = vsel %vm3326_vm1, %v3913_v22, %v3323_v34 }
0x17a6   : > { %v3332_v14 = vsel %vm3329_vm4, %v3331_v63, %v3327_v30 }
0x17a7   : > { %3335 = vst.msk [vmem:[%s624_s3] sm:$0x1] %vm3334_vm3, %v3332_v14 }
0x17a8 PF: > { %s31_s20 = sadd.s32 1, %s3925_s20  }
0x17a9   : > { %p28_p6 = scmp.ge.s32.totalorder %s31_s20, 4  }
0x17ab   :  { %30 = sbr.rel (!%p28_p6) target bundleno = 5 (0x5), region = 129 }

</bundles_post_ra>
